<compile_context>
chip_gen: v7x
topology: tpu7x:2x2x1
jax: 0.10.0
libtpu: 0.0.40
codegen_flags: <defaults>
</compile_context>

<pallas_src>
from functools import partial

import jax
import jax.numpy as jnp
from jax import lax
from jax.experimental import pallas as pl
from jax.experimental.pallas import tpu as pltpu

# ----------------------- hyperparameters (small T5-ish) -----------------------
VOCAB = 64
VPAD = 128          # lane-padded vocab (lane-dense logits / LM head)
D_MODEL = 32
NUM_HEADS = 4
D_KV = 8            # head dim ; NUM_HEADS * D_KV == D_MODEL
D_FF = 64
REL_BUCKETS = 32
REL_MAX_DIST = 128
EPS = 1e-6
NEG_INF = -1e9

assert NUM_HEADS * D_KV == D_MODEL

# rows inside the packed (8, D) LayerNorm-weight table
LN_E1, LN_E2, LN_EF, LN_D1, LN_D2, LN_D3, LN_DF = range(7)
# indices inside the packed (3, 4, H, D_KV, D) attention-weight table
BLK_ENC, BLK_DEC, BLK_XATT = 0, 1, 2
MAT_Q, MAT_K, MAT_V, MAT_O = 0, 1, 2, 3
FFN_ENC, FFN_DEC = 0, 1


# ========================= single fused Pallas kernel =========================

def _t5_fused_kernel(tokens_ref, mbias_ref, enc_bias_ref, dec_bias_ref,
                     embed_ref, ln_ref, attn_ref, ffn_ref,
                     out_ref, *, S_enc, S_dec):
    """One grid step == one batch element. All weights VMEM-resident."""
    f32 = jnp.float32
    D, H = D_MODEL, NUM_HEADS

    def dot(a, b):
        return jnp.dot(a, b, preferred_element_type=f32)

    def dot_t(a, b):
        # a @ b.T without an explicit transpose: contract the last dims.
        return lax.dot_general(a, b, (((1,), (1,)), ((), ())),
                               preferred_element_type=f32)

    def rms(x, row):
        # T5LayerNorm: no mean subtraction, no bias.
        var = jnp.mean(x * x, axis=-1, keepdims=True)
        return x * lax.rsqrt(var + EPS) * ln_ref[row:row + 1, :]

    def softmax(s):
        # Exact divide (no approx reciprocal) for parity with the reference.
        m = jnp.max(s, axis=-1, keepdims=True)
        p = jnp.exp(s - m)
        return p / jnp.sum(p, axis=-1, keepdims=True)

    def attend(xq, xkv, blk, bias_fn):
        """Heads are selected by indexing the LEADING dims of the packed
        per-head weight table (address offset only, no lane-granular slicing,
        no relayout). Per-head context is folded straight into the output
        projection and accumulated (no lane concat, no axis-0 concat).
        T5 attention: NO 1/sqrt(d_k) scaling, additive bias."""
        out = jnp.zeros((xq.shape[0], D), f32)
        for h in range(H):                                   # static unroll, H=4
            q = dot_t(xq, attn_ref[blk, MAT_Q, h])           # (Sq, Dkv)
            k = dot_t(xkv, attn_ref[blk, MAT_K, h])          # (Sk, Dkv)
            v = dot_t(xkv, attn_ref[blk, MAT_V, h])          # (Sk, Dkv)
            p = softmax(dot_t(q, k) + bias_fn(h))            # (Sq, Sk)
            out = out + dot(dot(p, v), attn_ref[blk, MAT_O, h])   # (Sq, D)
        return out

    def ffn(x, idx):
        hdn = jnp.maximum(dot(x, ffn_ref[idx, 0]), 0.0)      # (S, D_FF)
        return dot_t(hdn, ffn_ref[idx, 1])                   # wff stored transposed

    emb = embed_ref[...]                                     # (VPAD, D); rows>=VOCAB are 0
    tokens = tokens_ref[...]                                 # (S_enc+2*S_dec, 1) int32
    S_emb = S_enc + S_dec
    ids = tokens[0:S_emb, :]                                 # enc ids | dec input ids
    labels = tokens[S_emb:S_emb + S_dec, :]                  # (S_dec, 1)

    # One lane-dense one-hot embedding matmul for encoder + decoder together.
    col_e = lax.broadcasted_iota(jnp.int32, (S_emb, VPAD), 1)
    emb_all = dot((col_e == ids).astype(f32), emb)           # (S_emb, D)
    x = emb_all[0:S_enc, :]
    y = emb_all[S_enc:S_emb, :]

    # Biases hoisted: computed once per batch, outside the head loops.
    mbias = mbias_ref[0]                                     # (1, S_enc) padding bias
    enc_bias = enc_bias_ref[...] + mbias                     # (H, S_enc, S_enc)
    dec_bias = dec_bias_ref[...]                             # (H, S_dec, S_dec) incl. causal

    # -------------------------------- encoder --------------------------------
    xn = rms(x, LN_E1)
    x = x + attend(xn, xn, BLK_ENC, lambda h: enc_bias[h])
    x = x + ffn(rms(x, LN_E2), FFN_ENC)
    enc_h = rms(x, LN_EF)                                    # (S_enc, D)

    # -------------------------------- decoder --------------------------------
    yn = rms(y, LN_D1)
    y = y + attend(yn, yn, BLK_DEC, lambda h: dec_bias[h])
    y = y + attend(rms(y, LN_D2), enc_h, BLK_XATT, lambda h: mbias)
    y = y + ffn(rms(y, LN_D3), FFN_DEC)
    dec_h = rms(y, LN_DF)                                    # (S_dec, D)

    # --------------------- tied LM head + cross-entropy ----------------------
    logits = dot_t(dec_h * (D ** -0.5), emb)                 # (S_dec, VPAD); pad cols == 0
    col = lax.broadcasted_iota(jnp.int32, (S_dec, VPAD), 1)
    masked = jnp.where(col < VOCAB, logits, NEG_INF)         # keep pad cols out of CE
    m = jnp.max(masked, axis=-1, keepdims=True)
    sh = masked - m
    lse = jnp.log(jnp.sum(jnp.exp(sh), axis=-1, keepdims=True))
    logprobs = sh - lse
    picked = jnp.sum(jnp.where(col == labels, logprobs, 0.0),
                     axis=-1, keepdims=True)                 # (S_dec, 1)
    valid = (labels != -100).astype(f32)                     # (S_dec, 1)
    nll = jnp.sum(-picked * valid, axis=0, keepdims=True)    # (1, 1)
    nvalid = jnp.sum(valid, axis=0, keepdims=True)           # (1, 1)

    # Single lane-dense (S_dec, 128) store: real logits in cols [0, VOCAB),
    # per-batch loss sums stashed in the (zero) pad columns VOCAB / VOCAB+1.
    out_ref[...] = (logits
                    + jnp.where(col == VOCAB, nll, 0.0)
                    + jnp.where(col == VOCAB + 1, nvalid, 0.0))


# ============================== plain-JAX glue ================================

def relative_position_bucket(relative_position, bidirectional,
                             num_buckets=REL_BUCKETS, max_distance=REL_MAX_DIST):
    relative_buckets = jnp.zeros_like(relative_position)
    if bidirectional:
        num_buckets //= 2
        relative_buckets += (relative_position > 0).astype(jnp.int32) * num_buckets
        relative_position = jnp.abs(relative_position)
    else:
        relative_position = -jnp.minimum(relative_position, 0)
    max_exact = num_buckets // 2
    is_small = relative_position < max_exact
    rp = jnp.maximum(relative_position, 1).astype(jnp.float32)
    rel_if_large = max_exact + (
        jnp.log(rp / max_exact) / jnp.log(max_distance / max_exact)
        * (num_buckets - max_exact)
    ).astype(jnp.int32)
    rel_if_large = jnp.minimum(rel_if_large, num_buckets - 1)
    relative_buckets += jnp.where(is_small, relative_position, rel_if_large)
    return relative_buckets


def relative_position_bias(rel_emb, q_len, k_len, bidirectional):
    ctx = jnp.arange(q_len, dtype=jnp.int32)[:, None]
    mem = jnp.arange(k_len, dtype=jnp.int32)[None, :]
    buckets = relative_position_bucket(mem - ctx, bidirectional)      # (Sq, Sk)
    bias = jnp.take(rel_emb, buckets, axis=0)                         # (Sq, Sk, H)
    return jnp.transpose(bias, (2, 0, 1)).astype(jnp.float32)         # (H, Sq, Sk)


def shift_tokens_right(labels, decoder_start_token_id=0, pad_token_id=0):
    shifted = jnp.concatenate(
        [jnp.full((labels.shape[0], 1), decoder_start_token_id, dtype=labels.dtype),
         labels[:, :-1]], axis=1)
    return jnp.where(shifted == -100, pad_token_id, shifted)


def init_params(key):
    def nrm(k, shape, scale=0.02):
        return (scale * jax.random.normal(k, shape)).astype(jnp.float32)

    k_emb, k_erel, k_drel, k_attn, k_ffn = jax.random.split(key, 5)
    embed = jnp.zeros((VPAD, D_MODEL), jnp.float32)
    embed = embed.at[:VOCAB].set(nrm(k_emb, (VOCAB, D_MODEL), scale=1.0))
    return {
        # vocab lane-padded to 128; rows >= VOCAB stay exactly zero
        "embed": embed,
        "enc_rel": nrm(k_erel, (REL_BUCKETS, NUM_HEADS)),
        "dec_rel": nrm(k_drel, (REL_BUCKETS, NUM_HEADS)),
        # [block: enc-self|dec-self|cross][mat: q^T,k^T,v^T,o][head] -> (D_KV, D)
        "attn_w": nrm(k_attn, (3, 4, NUM_HEADS, D_KV, D_MODEL)),
        # [stack: enc|dec][wi (D,D_FF) | wff^T (D,D_FF)]
        "ffn_w": nrm(k_ffn, (2, 2, D_MODEL, D_FF)),
        # 7 RMSNorm weight rows (all init to 1) + 1 pad row
        "ln_w": jnp.ones((8, D_MODEL), jnp.float32),
    }


def model_wrapper_forward(params, input_ids, attention_mask, labels):
    """ModelWrapper.forward: model(input_ids, attention_mask, labels) -> (loss, logits)."""
    B, S_enc = input_ids.shape
    S_dec = labels.shape[1]
    S_tok = S_enc + 2 * S_dec

    dec_ids = shift_tokens_right(labels)
    # Pack enc ids | dec input ids | labels into one int operand (one DMA).
    tokens = jnp.concatenate([input_ids, dec_ids, labels],
                             axis=1).astype(jnp.int32).reshape(B * S_tok, 1)

    # Padding-mask bias hoisted out of the kernel (computed once).
    mask_bias = ((1.0 - attention_mask.astype(jnp.float32)) * NEG_INF
                 ).reshape(B, 1, S_enc)

    enc_pos_bias = relative_position_bias(params["enc_rel"], S_enc, S_enc, True)
    causal = jnp.where(jnp.tril(jnp.ones((S_dec, S_dec), jnp.float32)) > 0,
                       0.0, NEG_INF)
    dec_pos_bias = (relative_position_bias(params["dec_rel"], S_dec, S_dec, False)
                    + causal[None])

    def full_spec(shape):
        zeros = (0,) * len(shape)
        return pl.BlockSpec(shape, lambda b: zeros)          # resident across grid

    out = pl.pallas_call(
        partial(_t5_fused_kernel, S_enc=S_enc, S_dec=S_dec),
        out_shape=jax.ShapeDtypeStruct((B * S_dec, VPAD), jnp.float32),
        grid=(B,),
        in_specs=[
            pl.BlockSpec((S_tok, 1), lambda b: (b, 0)),          # per-batch tokens
            pl.BlockSpec((1, 1, S_enc), lambda b: (b, 0, 0)),    # per-batch mask bias
            full_spec((NUM_HEADS, S_enc, S_enc)),                # enc rel-pos bias
            full_spec((NUM_HEADS, S_dec, S_dec)),                # dec rel-pos + causal
            full_spec((VPAD, D_MODEL)),                          # padded embed table
            full_spec((8, D_MODEL)),                             # packed LN weights
            full_spec((3, 4, NUM_HEADS, D_KV, D_MODEL)),         # packed attn weights
            full_spec((2, 2, D_MODEL, D_FF)),                    # packed FFN weights
        ],
        out_specs=pl.BlockSpec((S_dec, VPAD), lambda b: (b, 0)),
        compiler_params=pltpu.CompilerParams(
            dimension_semantics=("parallel",)),                  # 2nd TC on v7x
    )(tokens, mask_bias, enc_pos_bias, dec_pos_bias,
      params["embed"], params["ln_w"], params["attn_w"], params["ffn_w"])

    out3 = out.reshape(B, S_dec, VPAD)
    logits = out3[:, :, :VOCAB]
    nll_total = jnp.sum(out3[:, 0, VOCAB])
    valid_total = jnp.sum(out3[:, 0, VOCAB + 1])
    loss = nll_total / jnp.maximum(valid_total, 1.0)
    return loss, logits


# ==================================== main ====================================

if __name__ == "__main__":
    key = jax.random.PRNGKey(0)
    k_param, k_ids, k_lab = jax.random.split(key, 3)

    params = init_params(k_param)

    B, S = 2, 8
    input_ids = jax.random.randint(k_ids, (B, S), 1, VOCAB, dtype=jnp.int32)
    attention_mask = jnp.ones((B, S), dtype=jnp.int32).at[1, 6:].set(0)   # pad tail of row 1
    labels = jax.random.randint(k_lab, (B, S), 1, VOCAB, dtype=jnp.int32)
    labels = labels.at[1, 5:].set(-100)                                   # ignored positions

    fwd = jax.jit(model_wrapper_forward)
    loss, logits = fwd(params, input_ids, attention_mask, labels)
    jax.block_until_ready((loss, logits))

    assert logits.shape == (B, S, VOCAB)
    assert jnp.isfinite(loss)
    print("KERNEL_OK")
</pallas_src>

<mosaic_0001>
module attributes {stable_mosaic.version = 11 : i64} {
  func.func @_t5_fused_kernel(%arg0: i32, %arg1: memref<24x1xi32, #tpu.memory_space<vmem>>, %arg2: memref<1x1x8xf32, #tpu.memory_space<vmem>>, %arg3: memref<4x8x8xf32, #tpu.memory_space<vmem>>, %arg4: memref<4x8x8xf32, #tpu.memory_space<vmem>>, %arg5: memref<128x32xf32, #tpu.memory_space<vmem>>, %arg6: memref<8x32xf32, #tpu.memory_space<vmem>>, %arg7: memref<3x4x4x8x32xf32, #tpu.memory_space<vmem>>, %arg8: memref<2x2x32x64xf32, #tpu.memory_space<vmem>>, %arg9: memref<8x128xf32, #tpu.memory_space<vmem>>) attributes {dimension_semantics = [#tpu.dimension_semantics<parallel>], iteration_bounds = array<i64: 2>, scalar_prefetch = 0 : i64, scratch_operands = 0 : i64, tpu.core_type = #tpu.core_type<tc>, window_params = [{transform_indices = @transform_0, window_bounds = array<i64: 24, 1>}, {transform_indices = @transform_1, window_bounds = array<i64: 1, 1, 8>}, {pipeline_mode = #tpu.pipeline_mode<synchronous>, transform_indices = @transform_2, window_bounds = array<i64: 4, 8, 8>}, {pipeline_mode = #tpu.pipeline_mode<synchronous>, transform_indices = @transform_3, window_bounds = array<i64: 4, 8, 8>}, {pipeline_mode = #tpu.pipeline_mode<synchronous>, transform_indices = @transform_4, window_bounds = array<i64: 128, 32>}, {pipeline_mode = #tpu.pipeline_mode<synchronous>, transform_indices = @transform_5, window_bounds = array<i64: 8, 32>}, {pipeline_mode = #tpu.pipeline_mode<synchronous>, transform_indices = @transform_6, window_bounds = array<i64: 3, 4, 4, 8, 32>}, {pipeline_mode = #tpu.pipeline_mode<synchronous>, transform_indices = @transform_7, window_bounds = array<i64: 2, 2, 32, 64>}, {transform_indices = @transform_8, window_bounds = array<i64: 8, 128>}]} {
    %c0 = arith.constant 0 : index
    %c0_0 = arith.constant 0 : index
    %0 = vector.load %arg5[%c0, %c0_0] : memref<128x32xf32, #tpu.memory_space<vmem>>, vector<128x32xf32>
    %c0_1 = arith.constant 0 : index
    %c0_2 = arith.constant 0 : index
    %1 = vector.load %arg1[%c0_1, %c0_2] : memref<24x1xi32, #tpu.memory_space<vmem>>, vector<24x1xi32>
    %2 = vector.extract_strided_slice %1 {offsets = [0, 0], sizes = [16, 1], strides = [1, 1]} : vector<24x1xi32> to vector<16x1xi32>
    %3 = vector.extract_strided_slice %1 {offsets = [16, 0], sizes = [8, 1], strides = [1, 1]} : vector<24x1xi32> to vector<8x1xi32>
    %4 = tpu.iota {dimensions = array<i32: 1>} : vector<16x128xi32>
    %5 = vector.broadcast %2 : vector<16x1xi32> to vector<16x128xi32>
    %6 = arith.cmpi eq, %4, %5 : vector<16x128xi32>
    %7 = arith.extui %6 : vector<16x128xi1> to vector<16x128xi32>
    %8 = arith.sitofp %7 : vector<16x128xi32> to vector<16x128xf32>
    %cst = arith.constant dense<0.000000e+00> : vector<16x32xf32>
    %9 = tpu.matmul %8, %0, %cst {dimension_numbers = #tpu.dot_dimension_numbers<[1], [0], [0], [1], [0, 0, 1, 1], [], []>} : vector<16x128xf32>, vector<128x32xf32>, vector<16x32xf32> -> vector<16x32xf32>
    %10 = vector.extract_strided_slice %9 {offsets = [0, 0], sizes = [8, 32], strides = [1, 1]} : vector<16x32xf32> to vector<8x32xf32>
    %11 = vector.extract_strided_slice %9 {offsets = [8, 0], sizes = [8, 32], strides = [1, 1]} : vector<16x32xf32> to vector<8x32xf32>
    %c0_3 = arith.constant 0 : index
    %c0_4 = arith.constant 0 : index
    %c0_5 = arith.constant 0 : index
    %12 = vector.load %arg2[%c0_3, %c0_4, %c0_5] : memref<1x1x8xf32, #tpu.memory_space<vmem>>, vector<1x1x8xf32>
    %13 = vector.shape_cast %12 : vector<1x1x8xf32> to vector<1x8xf32>
    %c0_6 = arith.constant 0 : index
    %c0_7 = arith.constant 0 : index
    %c0_8 = arith.constant 0 : index
    %14 = vector.load %arg3[%c0_6, %c0_7, %c0_8] : memref<4x8x8xf32, #tpu.memory_space<vmem>>, vector<4x8x8xf32>
    %15 = vector.shape_cast %13 : vector<1x8xf32> to vector<1x1x8xf32>
    %16 = vector.broadcast %15 : vector<1x1x8xf32> to vector<4x8x8xf32>
    %17 = arith.addf %14, %16 : vector<4x8x8xf32>
    %c0_9 = arith.constant 0 : index
    %c0_10 = arith.constant 0 : index
    %c0_11 = arith.constant 0 : index
    %18 = vector.load %arg4[%c0_9, %c0_10, %c0_11] : memref<4x8x8xf32, #tpu.memory_space<vmem>>, vector<4x8x8xf32>
    %19 = arith.mulf %10, %10 : vector<8x32xf32>
    %cst_12 = arith.constant dense<0.000000e+00> : vector<8xf32>
    %20 = vector.multi_reduction <add>, %19, %cst_12 [1] : vector<8x32xf32> to vector<8xf32>
    %21 = vector.shape_cast %20 : vector<8xf32> to vector<8x1xf32>
    %cst_13 = arith.constant 3.200000e+01 : f32
    %22 = vector.broadcast %cst_13 : f32 to vector<8x1xf32>
    %23 = arith.divf %21, %22 : vector<8x1xf32>
    %cst_14 = arith.constant 9.99999997E-7 : f32
    %24 = vector.broadcast %cst_14 : f32 to vector<8x1xf32>
    %25 = arith.addf %23, %24 : vector<8x1xf32>
    %26 = math.rsqrt %25 : vector<8x1xf32>
    %27 = vector.broadcast %26 : vector<8x1xf32> to vector<8x32xf32>
    %28 = arith.mulf %10, %27 : vector<8x32xf32>
    %c0_15 = arith.constant 0 : index
    %c0_16 = arith.constant 0 : index
    %29 = vector.load %arg6[%c0_15, %c0_16] : memref<8x32xf32, #tpu.memory_space<vmem>>, vector<1x32xf32>
    %30 = vector.broadcast %29 : vector<1x32xf32> to vector<8x32xf32>
    %31 = arith.mulf %28, %30 : vector<8x32xf32>
    %cst_17 = arith.constant 0.000000e+00 : f32
    %32 = vector.broadcast %cst_17 : f32 to vector<8x32xf32>
    %c0_18 = arith.constant 0 : index
    %c0_19 = arith.constant 0 : index
    %c0_20 = arith.constant 0 : index
    %c0_21 = arith.constant 0 : index
    %c0_22 = arith.constant 0 : index
    %33 = vector.load %arg7[%c0_18, %c0_19, %c0_20, %c0_21, %c0_22] : memref<3x4x4x8x32xf32, #tpu.memory_space<vmem>>, vector<1x1x1x8x32xf32>
    %34 = vector.shape_cast %33 : vector<1x1x1x8x32xf32> to vector<8x32xf32>
    %cst_23 = arith.constant dense<0.000000e+00> : vector<8x8xf32>
    %35 = tpu.matmul %31, %34, %cst_23 {dimension_numbers = #tpu.dot_dimension_numbers<[1], [1], [0], [0], [0, 0, 1, 0], [], []>} : vector<8x32xf32>, vector<8x32xf32>, vector<8x8xf32> -> vector<8x8xf32>
    %c0_24 = arith.constant 0 : index
    %c1 = arith.constant 1 : index
    %c0_25 = arith.constant 0 : index
    %c0_26 = arith.constant 0 : index
    %c0_27 = arith.constant 0 : index
    %36 = vector.load %arg7[%c0_24, %c1, %c0_25, %c0_26, %c0_27] : memref<3x4x4x8x32xf32, #tpu.memory_space<vmem>>, vector<1x1x1x8x32xf32>
    %37 = vector.shape_cast %36 : vector<1x1x1x8x32xf32> to vector<8x32xf32>
    %cst_28 = arith.constant dense<0.000000e+00> : vector<8x8xf32>
    %38 = tpu.matmul %31, %37, %cst_28 {dimension_numbers = #tpu.dot_dimension_numbers<[1], [1], [0], [0], [0, 0, 1, 0], [], []>} : vector<8x32xf32>, vector<8x32xf32>, vector<8x8xf32> -> vector<8x8xf32>
    %c0_29 = arith.constant 0 : index
    %c2 = arith.constant 2 : index
    %c0_30 = arith.constant 0 : index
    %c0_31 = arith.constant 0 : index
    %c0_32 = arith.constant 0 : index
    %39 = vector.load %arg7[%c0_29, %c2, %c0_30, %c0_31, %c0_32] : memref<3x4x4x8x32xf32, #tpu.memory_space<vmem>>, vector<1x1x1x8x32xf32>
    %40 = vector.shape_cast %39 : vector<1x1x1x8x32xf32> to vector<8x32xf32>
    %cst_33 = arith.constant dense<0.000000e+00> : vector<8x8xf32>
    %41 = tpu.matmul %31, %40, %cst_33 {dimension_numbers = #tpu.dot_dimension_numbers<[1], [1], [0], [0], [0, 0, 1, 0], [], []>} : vector<8x32xf32>, vector<8x32xf32>, vector<8x8xf32> -> vector<8x8xf32>
    %cst_34 = arith.constant dense<0.000000e+00> : vector<8x8xf32>
    %42 = tpu.matmul %35, %38, %cst_34 {dimension_numbers = #tpu.dot_dimension_numbers<[1], [1], [0], [0], [0, 0, 1, 0], [], []>} : vector<8x8xf32>, vector<8x8xf32>, vector<8x8xf32> -> vector<8x8xf32>
    %43 = vector.extract_strided_slice %17 {offsets = [0, 0, 0], sizes = [1, 8, 8], strides = [1, 1, 1]} : vector<4x8x8xf32> to vector<1x8x8xf32>
    %44 = vector.shape_cast %43 : vector<1x8x8xf32> to vector<8x8xf32>
    %45 = arith.addf %42, %44 : vector<8x8xf32>
    %cst_35 = arith.constant dense<0xFF800000> : vector<8xf32>
    %46 = vector.multi_reduction <maximumf>, %45, %cst_35 [1] : vector<8x8xf32> to vector<8xf32>
    %47 = vector.shape_cast %46 : vector<8xf32> to vector<8x1xf32>
    %48 = vector.broadcast %47 : vector<8x1xf32> to vector<8x8xf32>
    %49 = arith.subf %45, %48 : vector<8x8xf32>
    %50 = math.exp %49 : vector<8x8xf32>
    %cst_36 = arith.constant dense<0.000000e+00> : vector<8xf32>
    %51 = vector.multi_reduction <add>, %50, %cst_36 [1] : vector<8x8xf32> to vector<8xf32>
    %52 = vector.shape_cast %51 : vector<8xf32> to vector<8x1xf32>
    %53 = vector.broadcast %52 : vector<8x1xf32> to vector<8x8xf32>
    %54 = arith.divf %50, %53 : vector<8x8xf32>
    %cst_37 = arith.constant dense<0.000000e+00> : vector<8x8xf32>
    %55 = tpu.matmul %54, %41, %cst_37 {dimension_numbers = #tpu.dot_dimension_numbers<[1], [0], [0], [1], [0, 0, 1, 1], [], []>} : vector<8x8xf32>, vector<8x8xf32>, vector<8x8xf32> -> vector<8x8xf32>
    %c0_38 = arith.constant 0 : index
    %c3 = arith.constant 3 : index
    %c0_39 = arith.constant 0 : index
    %c0_40 = arith.constant 0 : index
    %c0_41 = arith.constant 0 : index
    %56 = vector.load %arg7[%c0_38, %c3, %c0_39, %c0_40, %c0_41] : memref<3x4x4x8x32xf32, #tpu.memory_space<vmem>>, vector<1x1x1x8x32xf32>
    %57 = vector.shape_cast %56 : vector<1x1x1x8x32xf32> to vector<8x32xf32>
    %cst_42 = arith.constant dense<0.000000e+00> : vector<8x32xf32>
    %58 = tpu.matmul %55, %57, %cst_42 {dimension_numbers = #tpu.dot_dimension_numbers<[1], [0], [0], [1], [0, 0, 1, 1], [], []>} : vector<8x8xf32>, vector<8x32xf32>, vector<8x32xf32> -> vector<8x32xf32>
    %59 = arith.addf %32, %58 : vector<8x32xf32>
    %c0_43 = arith.constant 0 : index
    %c0_44 = arith.constant 0 : index
    %c1_45 = arith.constant 1 : index
    %c0_46 = arith.constant 0 : index
    %c0_47 = arith.constant 0 : index
    %60 = vector.load %arg7[%c0_43, %c0_44, %c1_45, %c0_46, %c0_47] : memref<3x4x4x8x32xf32, #tpu.memory_space<vmem>>, vector<1x1x1x8x32xf32>
    %61 = vector.shape_cast %60 : vector<1x1x1x8x32xf32> to vector<8x32xf32>
    %cst_48 = arith.constant dense<0.000000e+00> : vector<8x8xf32>
    %62 = tpu.matmul %31, %61, %cst_48 {dimension_numbers = #tpu.dot_dimension_numbers<[1], [1], [0], [0], [0, 0, 1, 0], [], []>} : vector<8x32xf32>, vector<8x32xf32>, vector<8x8xf32> -> vector<8x8xf32>
    %c0_49 = arith.constant 0 : index
    %c1_50 = arith.constant 1 : index
    %c1_51 = arith.constant 1 : index
    %c0_52 = arith.constant 0 : index
    %c0_53 = arith.constant 0 : index
    %63 = vector.load %arg7[%c0_49, %c1_50, %c1_51, %c0_52, %c0_53] : memref<3x4x4x8x32xf32, #tpu.memory_space<vmem>>, vector<1x1x1x8x32xf32>
    %64 = vector.shape_cast %63 : vector<1x1x1x8x32xf32> to vector<8x32xf32>
    %cst_54 = arith.constant dense<0.000000e+00> : vector<8x8xf32>
    %65 = tpu.matmul %31, %64, %cst_54 {dimension_numbers = #tpu.dot_dimension_numbers<[1], [1], [0], [0], [0, 0, 1, 0], [], []>} : vector<8x32xf32>, vector<8x32xf32>, vector<8x8xf32> -> vector<8x8xf32>
    %c0_55 = arith.constant 0 : index
    %c2_56 = arith.constant 2 : index
    %c1_57 = arith.constant 1 : index
    %c0_58 = arith.constant 0 : index
    %c0_59 = arith.constant 0 : index
    %66 = vector.load %arg7[%c0_55, %c2_56, %c1_57, %c0_58, %c0_59] : memref<3x4x4x8x32xf32, #tpu.memory_space<vmem>>, vector<1x1x1x8x32xf32>
    %67 = vector.shape_cast %66 : vector<1x1x1x8x32xf32> to vector<8x32xf32>
    %cst_60 = arith.constant dense<0.000000e+00> : vector<8x8xf32>
    %68 = tpu.matmul %31, %67, %cst_60 {dimension_numbers = #tpu.dot_dimension_numbers<[1], [1], [0], [0], [0, 0, 1, 0], [], []>} : vector<8x32xf32>, vector<8x32xf32>, vector<8x8xf32> -> vector<8x8xf32>
    %cst_61 = arith.constant dense<0.000000e+00> : vector<8x8xf32>
    %69 = tpu.matmul %62, %65, %cst_61 {dimension_numbers = #tpu.dot_dimension_numbers<[1], [1], [0], [0], [0, 0, 1, 0], [], []>} : vector<8x8xf32>, vector<8x8xf32>, vector<8x8xf32> -> vector<8x8xf32>
    %70 = vector.extract_strided_slice %17 {offsets = [1, 0, 0], sizes = [1, 8, 8], strides = [1, 1, 1]} : vector<4x8x8xf32> to vector<1x8x8xf32>
    %71 = vector.shape_cast %70 : vector<1x8x8xf32> to vector<8x8xf32>
    %72 = arith.addf %69, %71 : vector<8x8xf32>
    %cst_62 = arith.constant dense<0xFF800000> : vector<8xf32>
    %73 = vector.multi_reduction <maximumf>, %72, %cst_62 [1] : vector<8x8xf32> to vector<8xf32>
    %74 = vector.shape_cast %73 : vector<8xf32> to vector<8x1xf32>
    %75 = vector.broadcast %74 : vector<8x1xf32> to vector<8x8xf32>
    %76 = arith.subf %72, %75 : vector<8x8xf32>
    %77 = math.exp %76 : vector<8x8xf32>
    %cst_63 = arith.constant dense<0.000000e+00> : vector<8xf32>
    %78 = vector.multi_reduction <add>, %77, %cst_63 [1] : vector<8x8xf32> to vector<8xf32>
    %79 = vector.shape_cast %78 : vector<8xf32> to vector<8x1xf32>
    %80 = vector.broadcast %79 : vector<8x1xf32> to vector<8x8xf32>
    %81 = arith.divf %77, %80 : vector<8x8xf32>
    %cst_64 = arith.constant dense<0.000000e+00> : vector<8x8xf32>
    %82 = tpu.matmul %81, %68, %cst_64 {dimension_numbers = #tpu.dot_dimension_numbers<[1], [0], [0], [1], [0, 0, 1, 1], [], []>} : vector<8x8xf32>, vector<8x8xf32>, vector<8x8xf32> -> vector<8x8xf32>
    %c0_65 = arith.constant 0 : index
    %c3_66 = arith.constant 3 : index
    %c1_67 = arith.constant 1 : index
    %c0_68 = arith.constant 0 : index
    %c0_69 = arith.constant 0 : index
    %83 = vector.load %arg7[%c0_65, %c3_66, %c1_67, %c0_68, %c0_69] : memref<3x4x4x8x32xf32, #tpu.memory_space<vmem>>, vector<1x1x1x8x32xf32>
    %84 = vector.shape_cast %83 : vector<1x1x1x8x32xf32> to vector<8x32xf32>
    %cst_70 = arith.constant dense<0.000000e+00> : vector<8x32xf32>
    %85 = tpu.matmul %82, %84, %cst_70 {dimension_numbers = #tpu.dot_dimension_numbers<[1], [0], [0], [1], [0, 0, 1, 1], [], []>} : vector<8x8xf32>, vector<8x32xf32>, vector<8x32xf32> -> vector<8x32xf32>
    %86 = arith.addf %59, %85 : vector<8x32xf32>
    %c0_71 = arith.constant 0 : index
    %c0_72 = arith.constant 0 : index
    %c2_73 = arith.constant 2 : index
    %c0_74 = arith.constant 0 : index
    %c0_75 = arith.constant 0 : index
    %87 = vector.load %arg7[%c0_71, %c0_72, %c2_73, %c0_74, %c0_75] : memref<3x4x4x8x32xf32, #tpu.memory_space<vmem>>, vector<1x1x1x8x32xf32>
    %88 = vector.shape_cast %87 : vector<1x1x1x8x32xf32> to vector<8x32xf32>
    %cst_76 = arith.constant dense<0.000000e+00> : vector<8x8xf32>
    %89 = tpu.matmul %31, %88, %cst_76 {dimension_numbers = #tpu.dot_dimension_numbers<[1], [1], [0], [0], [0, 0, 1, 0], [], []>} : vector<8x32xf32>, vector<8x32xf32>, vector<8x8xf32> -> vector<8x8xf32>
    %c0_77 = arith.constant 0 : index
    %c1_78 = arith.constant 1 : index
    %c2_79 = arith.constant 2 : index
    %c0_80 = arith.constant 0 : index
    %c0_81 = arith.constant 0 : index
    %90 = vector.load %arg7[%c0_77, %c1_78, %c2_79, %c0_80, %c0_81] : memref<3x4x4x8x32xf32, #tpu.memory_space<vmem>>, vector<1x1x1x8x32xf32>
    %91 = vector.shape_cast %90 : vector<1x1x1x8x32xf32> to vector<8x32xf32>
    %cst_82 = arith.constant dense<0.000000e+00> : vector<8x8xf32>
    %92 = tpu.matmul %31, %91, %cst_82 {dimension_numbers = #tpu.dot_dimension_numbers<[1], [1], [0], [0], [0, 0, 1, 0], [], []>} : vector<8x32xf32>, vector<8x32xf32>, vector<8x8xf32> -> vector<8x8xf32>
    %c0_83 = arith.constant 0 : index
    %c2_84 = arith.constant 2 : index
    %c2_85 = arith.constant 2 : index
    %c0_86 = arith.constant 0 : index
    %c0_87 = arith.constant 0 : index
    %93 = vector.load %arg7[%c0_83, %c2_84, %c2_85, %c0_86, %c0_87] : memref<3x4x4x8x32xf32, #tpu.memory_space<vmem>>, vector<1x1x1x8x32xf32>
    %94 = vector.shape_cast %93 : vector<1x1x1x8x32xf32> to vector<8x32xf32>
    %cst_88 = arith.constant dense<0.000000e+00> : vector<8x8xf32>
    %95 = tpu.matmul %31, %94, %cst_88 {dimension_numbers = #tpu.dot_dimension_numbers<[1], [1], [0], [0], [0, 0, 1, 0], [], []>} : vector<8x32xf32>, vector<8x32xf32>, vector<8x8xf32> -> vector<8x8xf32>
    %cst_89 = arith.constant dense<0.000000e+00> : vector<8x8xf32>
    %96 = tpu.matmul %89, %92, %cst_89 {dimension_numbers = #tpu.dot_dimension_numbers<[1], [1], [0], [0], [0, 0, 1, 0], [], []>} : vector<8x8xf32>, vector<8x8xf32>, vector<8x8xf32> -> vector<8x8xf32>
    %97 = vector.extract_strided_slice %17 {offsets = [2, 0, 0], sizes = [1, 8, 8], strides = [1, 1, 1]} : vector<4x8x8xf32> to vector<1x8x8xf32>
    %98 = vector.shape_cast %97 : vector<1x8x8xf32> to vector<8x8xf32>
    %99 = arith.addf %96, %98 : vector<8x8xf32>
    %cst_90 = arith.constant dense<0xFF800000> : vector<8xf32>
    %100 = vector.multi_reduction <maximumf>, %99, %cst_90 [1] : vector<8x8xf32> to vector<8xf32>
    %101 = vector.shape_cast %100 : vector<8xf32> to vector<8x1xf32>
    %102 = vector.broadcast %101 : vector<8x1xf32> to vector<8x8xf32>
    %103 = arith.subf %99, %102 : vector<8x8xf32>
    %104 = math.exp %103 : vector<8x8xf32>
    %cst_91 = arith.constant dense<0.000000e+00> : vector<8xf32>
    %105 = vector.multi_reduction <add>, %104, %cst_91 [1] : vector<8x8xf32> to vector<8xf32>
    %106 = vector.shape_cast %105 : vector<8xf32> to vector<8x1xf32>
    %107 = vector.broadcast %106 : vector<8x1xf32> to vector<8x8xf32>
    %108 = arith.divf %104, %107 : vector<8x8xf32>
    %cst_92 = arith.constant dense<0.000000e+00> : vector<8x8xf32>
    %109 = tpu.matmul %108, %95, %cst_92 {dimension_numbers = #tpu.dot_dimension_numbers<[1], [0], [0], [1], [0, 0, 1, 1], [], []>} : vector<8x8xf32>, vector<8x8xf32>, vector<8x8xf32> -> vector<8x8xf32>
    %c0_93 = arith.constant 0 : index
    %c3_94 = arith.constant 3 : index
    %c2_95 = arith.constant 2 : index
    %c0_96 = arith.constant 0 : index
    %c0_97 = arith.constant 0 : index
    %110 = vector.load %arg7[%c0_93, %c3_94, %c2_95, %c0_96, %c0_97] : memref<3x4x4x8x32xf32, #tpu.memory_space<vmem>>, vector<1x1x1x8x32xf32>
    %111 = vector.shape_cast %110 : vector<1x1x1x8x32xf32> to vector<8x32xf32>
    %cst_98 = arith.constant dense<0.000000e+00> : vector<8x32xf32>
    %112 = tpu.matmul %109, %111, %cst_98 {dimension_numbers = #tpu.dot_dimension_numbers<[1], [0], [0], [1], [0, 0, 1, 1], [], []>} : vector<8x8xf32>, vector<8x32xf32>, vector<8x32xf32> -> vector<8x32xf32>
    %113 = arith.addf %86, %112 : vector<8x32xf32>
    %c0_99 = arith.constant 0 : index
    %c0_100 = arith.constant 0 : index
    %c3_101 = arith.constant 3 : index
    %c0_102 = arith.constant 0 : index
    %c0_103 = arith.constant 0 : index
    %114 = vector.load %arg7[%c0_99, %c0_100, %c3_101, %c0_102, %c0_103] : memref<3x4x4x8x32xf32, #tpu.memory_space<vmem>>, vector<1x1x1x8x32xf32>
    %115 = vector.shape_cast %114 : vector<1x1x1x8x32xf32> to vector<8x32xf32>
    %cst_104 = arith.constant dense<0.000000e+00> : vector<8x8xf32>
    %116 = tpu.matmul %31, %115, %cst_104 {dimension_numbers = #tpu.dot_dimension_numbers<[1], [1], [0], [0], [0, 0, 1, 0], [], []>} : vector<8x32xf32>, vector<8x32xf32>, vector<8x8xf32> -> vector<8x8xf32>
    %c0_105 = arith.constant 0 : index
    %c1_106 = arith.constant 1 : index
    %c3_107 = arith.constant 3 : index
    %c0_108 = arith.constant 0 : index
    %c0_109 = arith.constant 0 : index
    %117 = vector.load %arg7[%c0_105, %c1_106, %c3_107, %c0_108, %c0_109] : memref<3x4x4x8x32xf32, #tpu.memory_space<vmem>>, vector<1x1x1x8x32xf32>
    %118 = vector.shape_cast %117 : vector<1x1x1x8x32xf32> to vector<8x32xf32>
    %cst_110 = arith.constant dense<0.000000e+00> : vector<8x8xf32>
    %119 = tpu.matmul %31, %118, %cst_110 {dimension_numbers = #tpu.dot_dimension_numbers<[1], [1], [0], [0], [0, 0, 1, 0], [], []>} : vector<8x32xf32>, vector<8x32xf32>, vector<8x8xf32> -> vector<8x8xf32>
    %c0_111 = arith.constant 0 : index
    %c2_112 = arith.constant 2 : index
    %c3_113 = arith.constant 3 : index
    %c0_114 = arith.constant 0 : index
    %c0_115 = arith.constant 0 : index
    %120 = vector.load %arg7[%c0_111, %c2_112, %c3_113, %c0_114, %c0_115] : memref<3x4x4x8x32xf32, #tpu.memory_space<vmem>>, vector<1x1x1x8x32xf32>
    %121 = vector.shape_cast %120 : vector<1x1x1x8x32xf32> to vector<8x32xf32>
    %cst_116 = arith.constant dense<0.000000e+00> : vector<8x8xf32>
    %122 = tpu.matmul %31, %121, %cst_116 {dimension_numbers = #tpu.dot_dimension_numbers<[1], [1], [0], [0], [0, 0, 1, 0], [], []>} : vector<8x32xf32>, vector<8x32xf32>, vector<8x8xf32> -> vector<8x8xf32>
    %cst_117 = arith.constant dense<0.000000e+00> : vector<8x8xf32>
    %123 = tpu.matmul %116, %119, %cst_117 {dimension_numbers = #tpu.dot_dimension_numbers<[1], [1], [0], [0], [0, 0, 1, 0], [], []>} : vector<8x8xf32>, vector<8x8xf32>, vector<8x8xf32> -> vector<8x8xf32>
    %124 = vector.extract_strided_slice %17 {offsets = [3, 0, 0], sizes = [1, 8, 8], strides = [1, 1, 1]} : vector<4x8x8xf32> to vector<1x8x8xf32>
    %125 = vector.shape_cast %124 : vector<1x8x8xf32> to vector<8x8xf32>
    %126 = arith.addf %123, %125 : vector<8x8xf32>
    %cst_118 = arith.constant dense<0xFF800000> : vector<8xf32>
    %127 = vector.multi_reduction <maximumf>, %126, %cst_118 [1] : vector<8x8xf32> to vector<8xf32>
    %128 = vector.shape_cast %127 : vector<8xf32> to vector<8x1xf32>
    %129 = vector.broadcast %128 : vector<8x1xf32> to vector<8x8xf32>
    %130 = arith.subf %126, %129 : vector<8x8xf32>
    %131 = math.exp %130 : vector<8x8xf32>
    %cst_119 = arith.constant dense<0.000000e+00> : vector<8xf32>
    %132 = vector.multi_reduction <add>, %131, %cst_119 [1] : vector<8x8xf32> to vector<8xf32>
    %133 = vector.shape_cast %132 : vector<8xf32> to vector<8x1xf32>
    %134 = vector.broadcast %133 : vector<8x1xf32> to vector<8x8xf32>
    %135 = arith.divf %131, %134 : vector<8x8xf32>
    %cst_120 = arith.constant dense<0.000000e+00> : vector<8x8xf32>
    %136 = tpu.matmul %135, %122, %cst_120 {dimension_numbers = #tpu.dot_dimension_numbers<[1], [0], [0], [1], [0, 0, 1, 1], [], []>} : vector<8x8xf32>, vector<8x8xf32>, vector<8x8xf32> -> vector<8x8xf32>
    %c0_121 = arith.constant 0 : index
    %c3_122 = arith.constant 3 : index
    %c3_123 = arith.constant 3 : index
    %c0_124 = arith.constant 0 : index
    %c0_125 = arith.constant 0 : index
    %137 = vector.load %arg7[%c0_121, %c3_122, %c3_123, %c0_124, %c0_125] : memref<3x4x4x8x32xf32, #tpu.memory_space<vmem>>, vector<1x1x1x8x32xf32>
    %138 = vector.shape_cast %137 : vector<1x1x1x8x32xf32> to vector<8x32xf32>
    %cst_126 = arith.constant dense<0.000000e+00> : vector<8x32xf32>
    %139 = tpu.matmul %136, %138, %cst_126 {dimension_numbers = #tpu.dot_dimension_numbers<[1], [0], [0], [1], [0, 0, 1, 1], [], []>} : vector<8x8xf32>, vector<8x32xf32>, vector<8x32xf32> -> vector<8x32xf32>
    %140 = arith.addf %113, %139 : vector<8x32xf32>
    %141 = arith.addf %10, %140 : vector<8x32xf32>
    %142 = arith.mulf %141, %141 : vector<8x32xf32>
    %cst_127 = arith.constant dense<0.000000e+00> : vector<8xf32>
    %143 = vector.multi_reduction <add>, %142, %cst_127 [1] : vector<8x32xf32> to vector<8xf32>
    %144 = vector.shape_cast %143 : vector<8xf32> to vector<8x1xf32>
    %cst_128 = arith.constant 3.200000e+01 : f32
    %145 = vector.broadcast %cst_128 : f32 to vector<8x1xf32>
    %146 = arith.divf %144, %145 : vector<8x1xf32>
    %cst_129 = arith.constant 9.99999997E-7 : f32
    %147 = vector.broadcast %cst_129 : f32 to vector<8x1xf32>
    %148 = arith.addf %146, %147 : vector<8x1xf32>
    %149 = math.rsqrt %148 : vector<8x1xf32>
    %150 = vector.broadcast %149 : vector<8x1xf32> to vector<8x32xf32>
    %151 = arith.mulf %141, %150 : vector<8x32xf32>
    %c1_130 = arith.constant 1 : index
    %c0_131 = arith.constant 0 : index
    %152 = vector.load %arg6[%c1_130, %c0_131] : memref<8x32xf32, #tpu.memory_space<vmem>>, vector<1x32xf32>
    %153 = vector.broadcast %152 : vector<1x32xf32> to vector<8x32xf32>
    %154 = arith.mulf %151, %153 : vector<8x32xf32>
    %c0_132 = arith.constant 0 : index
    %c0_133 = arith.constant 0 : index
    %c0_134 = arith.constant 0 : index
    %c0_135 = arith.constant 0 : index
    %155 = vector.load %arg8[%c0_132, %c0_133, %c0_134, %c0_135] : memref<2x2x32x64xf32, #tpu.memory_space<vmem>>, vector<1x1x32x64xf32>
    %156 = vector.shape_cast %155 : vector<1x1x32x64xf32> to vector<32x64xf32>
    %cst_136 = arith.constant dense<0.000000e+00> : vector<8x64xf32>
    %157 = tpu.matmul %154, %156, %cst_136 {dimension_numbers = #tpu.dot_dimension_numbers<[1], [0], [0], [1], [0, 0, 1, 1], [], []>} : vector<8x32xf32>, vector<32x64xf32>, vector<8x64xf32> -> vector<8x64xf32>
    %cst_137 = arith.constant 0.000000e+00 : f32
    %158 = vector.broadcast %cst_137 : f32 to vector<8x64xf32>
    %159 = arith.maximumf %157, %158 : vector<8x64xf32>
    %c0_138 = arith.constant 0 : index
    %c1_139 = arith.constant 1 : index
    %c0_140 = arith.constant 0 : index
    %c0_141 = arith.constant 0 : index
    %160 = vector.load %arg8[%c0_138, %c1_139, %c0_140, %c0_141] : memref<2x2x32x64xf32, #tpu.memory_space<vmem>>, vector<1x1x32x64xf32>
    %161 = vector.shape_cast %160 : vector<1x1x32x64xf32> to vector<32x64xf32>
    %cst_142 = arith.constant dense<0.000000e+00> : vector<8x32xf32>
    %162 = tpu.matmul %159, %161, %cst_142 {dimension_numbers = #tpu.dot_dimension_numbers<[1], [1], [0], [0], [0, 0, 1, 0], [], []>} : vector<8x64xf32>, vector<32x64xf32>, vector<8x32xf32> -> vector<8x32xf32>
    %163 = arith.addf %141, %162 : vector<8x32xf32>
    %164 = arith.mulf %163, %163 : vector<8x32xf32>
    %cst_143 = arith.constant dense<0.000000e+00> : vector<8xf32>
    %165 = vector.multi_reduction <add>, %164, %cst_143 [1] : vector<8x32xf32> to vector<8xf32>
    %166 = vector.shape_cast %165 : vector<8xf32> to vector<8x1xf32>
    %cst_144 = arith.constant 3.200000e+01 : f32
    %167 = vector.broadcast %cst_144 : f32 to vector<8x1xf32>
    %168 = arith.divf %166, %167 : vector<8x1xf32>
    %cst_145 = arith.constant 9.99999997E-7 : f32
    %169 = vector.broadcast %cst_145 : f32 to vector<8x1xf32>
    %170 = arith.addf %168, %169 : vector<8x1xf32>
    %171 = math.rsqrt %170 : vector<8x1xf32>
    %172 = vector.broadcast %171 : vector<8x1xf32> to vector<8x32xf32>
    %173 = arith.mulf %163, %172 : vector<8x32xf32>
    %c2_146 = arith.constant 2 : index
    %c0_147 = arith.constant 0 : index
    %174 = vector.load %arg6[%c2_146, %c0_147] : memref<8x32xf32, #tpu.memory_space<vmem>>, vector<1x32xf32>
    %175 = vector.broadcast %174 : vector<1x32xf32> to vector<8x32xf32>
    %176 = arith.mulf %173, %175 : vector<8x32xf32>
    %177 = arith.mulf %11, %11 : vector<8x32xf32>
    %cst_148 = arith.constant dense<0.000000e+00> : vector<8xf32>
    %178 = vector.multi_reduction <add>, %177, %cst_148 [1] : vector<8x32xf32> to vector<8xf32>
    %179 = vector.shape_cast %178 : vector<8xf32> to vector<8x1xf32>
    %cst_149 = arith.constant 3.200000e+01 : f32
    %180 = vector.broadcast %cst_149 : f32 to vector<8x1xf32>
    %181 = arith.divf %179, %180 : vector<8x1xf32>
    %cst_150 = arith.constant 9.99999997E-7 : f32
    %182 = vector.broadcast %cst_150 : f32 to vector<8x1xf32>
    %183 = arith.addf %181, %182 : vector<8x1xf32>
    %184 = math.rsqrt %183 : vector<8x1xf32>
    %185 = vector.broadcast %184 : vector<8x1xf32> to vector<8x32xf32>
    %186 = arith.mulf %11, %185 : vector<8x32xf32>
    %c3_151 = arith.constant 3 : index
    %c0_152 = arith.constant 0 : index
    %187 = vector.load %arg6[%c3_151, %c0_152] : memref<8x32xf32, #tpu.memory_space<vmem>>, vector<1x32xf32>
    %188 = vector.broadcast %187 : vector<1x32xf32> to vector<8x32xf32>
    %189 = arith.mulf %186, %188 : vector<8x32xf32>
    %cst_153 = arith.constant 0.000000e+00 : f32
    %190 = vector.broadcast %cst_153 : f32 to vector<8x32xf32>
    %c1_154 = arith.constant 1 : index
    %c0_155 = arith.constant 0 : index
    %c0_156 = arith.constant 0 : index
    %c0_157 = arith.constant 0 : index
    %c0_158 = arith.constant 0 : index
    %191 = vector.load %arg7[%c1_154, %c0_155, %c0_156, %c0_157, %c0_158] : memref<3x4x4x8x32xf32, #tpu.memory_space<vmem>>, vector<1x1x1x8x32xf32>
    %192 = vector.shape_cast %191 : vector<1x1x1x8x32xf32> to vector<8x32xf32>
    %cst_159 = arith.constant dense<0.000000e+00> : vector<8x8xf32>
    %193 = tpu.matmul %189, %192, %cst_159 {dimension_numbers = #tpu.dot_dimension_numbers<[1], [1], [0], [0], [0, 0, 1, 0], [], []>} : vector<8x32xf32>, vector<8x32xf32>, vector<8x8xf32> -> vector<8x8xf32>
    %c1_160 = arith.constant 1 : index
    %c1_161 = arith.constant 1 : index
    %c0_162 = arith.constant 0 : index
    %c0_163 = arith.constant 0 : index
    %c0_164 = arith.constant 0 : index
    %194 = vector.load %arg7[%c1_160, %c1_161, %c0_162, %c0_163, %c0_164] : memref<3x4x4x8x32xf32, #tpu.memory_space<vmem>>, vector<1x1x1x8x32xf32>
    %195 = vector.shape_cast %194 : vector<1x1x1x8x32xf32> to vector<8x32xf32>
    %cst_165 = arith.constant dense<0.000000e+00> : vector<8x8xf32>
    %196 = tpu.matmul %189, %195, %cst_165 {dimension_numbers = #tpu.dot_dimension_numbers<[1], [1], [0], [0], [0, 0, 1, 0], [], []>} : vector<8x32xf32>, vector<8x32xf32>, vector<8x8xf32> -> vector<8x8xf32>
    %c1_166 = arith.constant 1 : index
    %c2_167 = arith.constant 2 : index
    %c0_168 = arith.constant 0 : index
    %c0_169 = arith.constant 0 : index
    %c0_170 = arith.constant 0 : index
    %197 = vector.load %arg7[%c1_166, %c2_167, %c0_168, %c0_169, %c0_170] : memref<3x4x4x8x32xf32, #tpu.memory_space<vmem>>, vector<1x1x1x8x32xf32>
    %198 = vector.shape_cast %197 : vector<1x1x1x8x32xf32> to vector<8x32xf32>
    %cst_171 = arith.constant dense<0.000000e+00> : vector<8x8xf32>
    %199 = tpu.matmul %189, %198, %cst_171 {dimension_numbers = #tpu.dot_dimension_numbers<[1], [1], [0], [0], [0, 0, 1, 0], [], []>} : vector<8x32xf32>, vector<8x32xf32>, vector<8x8xf32> -> vector<8x8xf32>
    %cst_172 = arith.constant dense<0.000000e+00> : vector<8x8xf32>
    %200 = tpu.matmul %193, %196, %cst_172 {dimension_numbers = #tpu.dot_dimension_numbers<[1], [1], [0], [0], [0, 0, 1, 0], [], []>} : vector<8x8xf32>, vector<8x8xf32>, vector<8x8xf32> -> vector<8x8xf32>
    %201 = vector.extract_strided_slice %18 {offsets = [0, 0, 0], sizes = [1, 8, 8], strides = [1, 1, 1]} : vector<4x8x8xf32> to vector<1x8x8xf32>
    %202 = vector.shape_cast %201 : vector<1x8x8xf32> to vector<8x8xf32>
    %203 = arith.addf %200, %202 : vector<8x8xf32>
    %cst_173 = arith.constant dense<0xFF800000> : vector<8xf32>
    %204 = vector.multi_reduction <maximumf>, %203, %cst_173 [1] : vector<8x8xf32> to vector<8xf32>
    %205 = vector.shape_cast %204 : vector<8xf32> to vector<8x1xf32>
    %206 = vector.broadcast %205 : vector<8x1xf32> to vector<8x8xf32>
    %207 = arith.subf %203, %206 : vector<8x8xf32>
    %208 = math.exp %207 : vector<8x8xf32>
    %cst_174 = arith.constant dense<0.000000e+00> : vector<8xf32>
    %209 = vector.multi_reduction <add>, %208, %cst_174 [1] : vector<8x8xf32> to vector<8xf32>
    %210 = vector.shape_cast %209 : vector<8xf32> to vector<8x1xf32>
    %211 = vector.broadcast %210 : vector<8x1xf32> to vector<8x8xf32>
    %212 = arith.divf %208, %211 : vector<8x8xf32>
    %cst_175 = arith.constant dense<0.000000e+00> : vector<8x8xf32>
    %213 = tpu.matmul %212, %199, %cst_175 {dimension_numbers = #tpu.dot_dimension_numbers<[1], [0], [0], [1], [0, 0, 1, 1], [], []>} : vector<8x8xf32>, vector<8x8xf32>, vector<8x8xf32> -> vector<8x8xf32>
    %c1_176 = arith.constant 1 : index
    %c3_177 = arith.constant 3 : index
    %c0_178 = arith.constant 0 : index
    %c0_179 = arith.constant 0 : index
    %c0_180 = arith.constant 0 : index
    %214 = vector.load %arg7[%c1_176, %c3_177, %c0_178, %c0_179, %c0_180] : memref<3x4x4x8x32xf32, #tpu.memory_space<vmem>>, vector<1x1x1x8x32xf32>
    %215 = vector.shape_cast %214 : vector<1x1x1x8x32xf32> to vector<8x32xf32>
    %cst_181 = arith.constant dense<0.000000e+00> : vector<8x32xf32>
    %216 = tpu.matmul %213, %215, %cst_181 {dimension_numbers = #tpu.dot_dimension_numbers<[1], [0], [0], [1], [0, 0, 1, 1], [], []>} : vector<8x8xf32>, vector<8x32xf32>, vector<8x32xf32> -> vector<8x32xf32>
    %217 = arith.addf %190, %216 : vector<8x32xf32>
    %c1_182 = arith.constant 1 : index
    %c0_183 = arith.constant 0 : index
    %c1_184 = arith.constant 1 : index
    %c0_185 = arith.constant 0 : index
    %c0_186 = arith.constant 0 : index
    %218 = vector.load %arg7[%c1_182, %c0_183, %c1_184, %c0_185, %c0_186] : memref<3x4x4x8x32xf32, #tpu.memory_space<vmem>>, vector<1x1x1x8x32xf32>
    %219 = vector.shape_cast %218 : vector<1x1x1x8x32xf32> to vector<8x32xf32>
    %cst_187 = arith.constant dense<0.000000e+00> : vector<8x8xf32>
    %220 = tpu.matmul %189, %219, %cst_187 {dimension_numbers = #tpu.dot_dimension_numbers<[1], [1], [0], [0], [0, 0, 1, 0], [], []>} : vector<8x32xf32>, vector<8x32xf32>, vector<8x8xf32> -> vector<8x8xf32>
    %c1_188 = arith.constant 1 : index
    %c1_189 = arith.constant 1 : index
    %c1_190 = arith.constant 1 : index
    %c0_191 = arith.constant 0 : index
    %c0_192 = arith.constant 0 : index
    %221 = vector.load %arg7[%c1_188, %c1_189, %c1_190, %c0_191, %c0_192] : memref<3x4x4x8x32xf32, #tpu.memory_space<vmem>>, vector<1x1x1x8x32xf32>
    %222 = vector.shape_cast %221 : vector<1x1x1x8x32xf32> to vector<8x32xf32>
    %cst_193 = arith.constant dense<0.000000e+00> : vector<8x8xf32>
    %223 = tpu.matmul %189, %222, %cst_193 {dimension_numbers = #tpu.dot_dimension_numbers<[1], [1], [0], [0], [0, 0, 1, 0], [], []>} : vector<8x32xf32>, vector<8x32xf32>, vector<8x8xf32> -> vector<8x8xf32>
    %c1_194 = arith.constant 1 : index
    %c2_195 = arith.constant 2 : index
    %c1_196 = arith.constant 1 : index
    %c0_197 = arith.constant 0 : index
    %c0_198 = arith.constant 0 : index
    %224 = vector.load %arg7[%c1_194, %c2_195, %c1_196, %c0_197, %c0_198] : memref<3x4x4x8x32xf32, #tpu.memory_space<vmem>>, vector<1x1x1x8x32xf32>
    %225 = vector.shape_cast %224 : vector<1x1x1x8x32xf32> to vector<8x32xf32>
    %cst_199 = arith.constant dense<0.000000e+00> : vector<8x8xf32>
    %226 = tpu.matmul %189, %225, %cst_199 {dimension_numbers = #tpu.dot_dimension_numbers<[1], [1], [0], [0], [0, 0, 1, 0], [], []>} : vector<8x32xf32>, vector<8x32xf32>, vector<8x8xf32> -> vector<8x8xf32>
    %cst_200 = arith.constant dense<0.000000e+00> : vector<8x8xf32>
    %227 = tpu.matmul %220, %223, %cst_200 {dimension_numbers = #tpu.dot_dimension_numbers<[1], [1], [0], [0], [0, 0, 1, 0], [], []>} : vector<8x8xf32>, vector<8x8xf32>, vector<8x8xf32> -> vector<8x8xf32>
    %228 = vector.extract_strided_slice %18 {offsets = [1, 0, 0], sizes = [1, 8, 8], strides = [1, 1, 1]} : vector<4x8x8xf32> to vector<1x8x8xf32>
    %229 = vector.shape_cast %228 : vector<1x8x8xf32> to vector<8x8xf32>
    %230 = arith.addf %227, %229 : vector<8x8xf32>
    %cst_201 = arith.constant dense<0xFF800000> : vector<8xf32>
    %231 = vector.multi_reduction <maximumf>, %230, %cst_201 [1] : vector<8x8xf32> to vector<8xf32>
    %232 = vector.shape_cast %231 : vector<8xf32> to vector<8x1xf32>
    %233 = vector.broadcast %232 : vector<8x1xf32> to vector<8x8xf32>
    %234 = arith.subf %230, %233 : vector<8x8xf32>
    %235 = math.exp %234 : vector<8x8xf32>
    %cst_202 = arith.constant dense<0.000000e+00> : vector<8xf32>
    %236 = vector.multi_reduction <add>, %235, %cst_202 [1] : vector<8x8xf32> to vector<8xf32>
    %237 = vector.shape_cast %236 : vector<8xf32> to vector<8x1xf32>
    %238 = vector.broadcast %237 : vector<8x1xf32> to vector<8x8xf32>
    %239 = arith.divf %235, %238 : vector<8x8xf32>
    %cst_203 = arith.constant dense<0.000000e+00> : vector<8x8xf32>
    %240 = tpu.matmul %239, %226, %cst_203 {dimension_numbers = #tpu.dot_dimension_numbers<[1], [0], [0], [1], [0, 0, 1, 1], [], []>} : vector<8x8xf32>, vector<8x8xf32>, vector<8x8xf32> -> vector<8x8xf32>
    %c1_204 = arith.constant 1 : index
    %c3_205 = arith.constant 3 : index
    %c1_206 = arith.constant 1 : index
    %c0_207 = arith.constant 0 : index
    %c0_208 = arith.constant 0 : index
    %241 = vector.load %arg7[%c1_204, %c3_205, %c1_206, %c0_207, %c0_208] : memref<3x4x4x8x32xf32, #tpu.memory_space<vmem>>, vector<1x1x1x8x32xf32>
    %242 = vector.shape_cast %241 : vector<1x1x1x8x32xf32> to vector<8x32xf32>
    %cst_209 = arith.constant dense<0.000000e+00> : vector<8x32xf32>
    %243 = tpu.matmul %240, %242, %cst_209 {dimension_numbers = #tpu.dot_dimension_numbers<[1], [0], [0], [1], [0, 0, 1, 1], [], []>} : vector<8x8xf32>, vector<8x32xf32>, vector<8x32xf32> -> vector<8x32xf32>
    %244 = arith.addf %217, %243 : vector<8x32xf32>
    %c1_210 = arith.constant 1 : index
    %c0_211 = arith.constant 0 : index
    %c2_212 = arith.constant 2 : index
    %c0_213 = arith.constant 0 : index
    %c0_214 = arith.constant 0 : index
    %245 = vector.load %arg7[%c1_210, %c0_211, %c2_212, %c0_213, %c0_214] : memref<3x4x4x8x32xf32, #tpu.memory_space<vmem>>, vector<1x1x1x8x32xf32>
    %246 = vector.shape_cast %245 : vector<1x1x1x8x32xf32> to vector<8x32xf32>
    %cst_215 = arith.constant dense<0.000000e+00> : vector<8x8xf32>
    %247 = tpu.matmul %189, %246, %cst_215 {dimension_numbers = #tpu.dot_dimension_numbers<[1], [1], [0], [0], [0, 0, 1, 0], [], []>} : vector<8x32xf32>, vector<8x32xf32>, vector<8x8xf32> -> vector<8x8xf32>
    %c1_216 = arith.constant 1 : index
    %c1_217 = arith.constant 1 : index
    %c2_218 = arith.constant 2 : index
    %c0_219 = arith.constant 0 : index
    %c0_220 = arith.constant 0 : index
    %248 = vector.load %arg7[%c1_216, %c1_217, %c2_218, %c0_219, %c0_220] : memref<3x4x4x8x32xf32, #tpu.memory_space<vmem>>, vector<1x1x1x8x32xf32>
    %249 = vector.shape_cast %248 : vector<1x1x1x8x32xf32> to vector<8x32xf32>
    %cst_221 = arith.constant dense<0.000000e+00> : vector<8x8xf32>
    %250 = tpu.matmul %189, %249, %cst_221 {dimension_numbers = #tpu.dot_dimension_numbers<[1], [1], [0], [0], [0, 0, 1, 0], [], []>} : vector<8x32xf32>, vector<8x32xf32>, vector<8x8xf32> -> vector<8x8xf32>
    %c1_222 = arith.constant 1 : index
    %c2_223 = arith.constant 2 : index
    %c2_224 = arith.constant 2 : index
    %c0_225 = arith.constant 0 : index
    %c0_226 = arith.constant 0 : index
    %251 = vector.load %arg7[%c1_222, %c2_223, %c2_224, %c0_225, %c0_226] : memref<3x4x4x8x32xf32, #tpu.memory_space<vmem>>, vector<1x1x1x8x32xf32>
    %252 = vector.shape_cast %251 : vector<1x1x1x8x32xf32> to vector<8x32xf32>
    %cst_227 = arith.constant dense<0.000000e+00> : vector<8x8xf32>
    %253 = tpu.matmul %189, %252, %cst_227 {dimension_numbers = #tpu.dot_dimension_numbers<[1], [1], [0], [0], [0, 0, 1, 0], [], []>} : vector<8x32xf32>, vector<8x32xf32>, vector<8x8xf32> -> vector<8x8xf32>
    %cst_228 = arith.constant dense<0.000000e+00> : vector<8x8xf32>
    %254 = tpu.matmul %247, %250, %cst_228 {dimension_numbers = #tpu.dot_dimension_numbers<[1], [1], [0], [0], [0, 0, 1, 0], [], []>} : vector<8x8xf32>, vector<8x8xf32>, vector<8x8xf32> -> vector<8x8xf32>
    %255 = vector.extract_strided_slice %18 {offsets = [2, 0, 0], sizes = [1, 8, 8], strides = [1, 1, 1]} : vector<4x8x8xf32> to vector<1x8x8xf32>
    %256 = vector.shape_cast %255 : vector<1x8x8xf32> to vector<8x8xf32>
    %257 = arith.addf %254, %256 : vector<8x8xf32>
    %cst_229 = arith.constant dense<0xFF800000> : vector<8xf32>
    %258 = vector.multi_reduction <maximumf>, %257, %cst_229 [1] : vector<8x8xf32> to vector<8xf32>
    %259 = vector.shape_cast %258 : vector<8xf32> to vector<8x1xf32>
    %260 = vector.broadcast %259 : vector<8x1xf32> to vector<8x8xf32>
    %261 = arith.subf %257, %260 : vector<8x8xf32>
    %262 = math.exp %261 : vector<8x8xf32>
    %cst_230 = arith.constant dense<0.000000e+00> : vector<8xf32>
    %263 = vector.multi_reduction <add>, %262, %cst_230 [1] : vector<8x8xf32> to vector<8xf32>
    %264 = vector.shape_cast %263 : vector<8xf32> to vector<8x1xf32>
    %265 = vector.broadcast %264 : vector<8x1xf32> to vector<8x8xf32>
    %266 = arith.divf %262, %265 : vector<8x8xf32>
    %cst_231 = arith.constant dense<0.000000e+00> : vector<8x8xf32>
    %267 = tpu.matmul %266, %253, %cst_231 {dimension_numbers = #tpu.dot_dimension_numbers<[1], [0], [0], [1], [0, 0, 1, 1], [], []>} : vector<8x8xf32>, vector<8x8xf32>, vector<8x8xf32> -> vector<8x8xf32>
    %c1_232 = arith.constant 1 : index
    %c3_233 = arith.constant 3 : index
    %c2_234 = arith.constant 2 : index
    %c0_235 = arith.constant 0 : index
    %c0_236 = arith.constant 0 : index
    %268 = vector.load %arg7[%c1_232, %c3_233, %c2_234, %c0_235, %c0_236] : memref<3x4x4x8x32xf32, #tpu.memory_space<vmem>>, vector<1x1x1x8x32xf32>
    %269 = vector.shape_cast %268 : vector<1x1x1x8x32xf32> to vector<8x32xf32>
    %cst_237 = arith.constant dense<0.000000e+00> : vector<8x32xf32>
    %270 = tpu.matmul %267, %269, %cst_237 {dimension_numbers = #tpu.dot_dimension_numbers<[1], [0], [0], [1], [0, 0, 1, 1], [], []>} : vector<8x8xf32>, vector<8x32xf32>, vector<8x32xf32> -> vector<8x32xf32>
    %271 = arith.addf %244, %270 : vector<8x32xf32>
    %c1_238 = arith.constant 1 : index
    %c0_239 = arith.constant 0 : index
    %c3_240 = arith.constant 3 : index
    %c0_241 = arith.constant 0 : index
    %c0_242 = arith.constant 0 : index
    %272 = vector.load %arg7[%c1_238, %c0_239, %c3_240, %c0_241, %c0_242] : memref<3x4x4x8x32xf32, #tpu.memory_space<vmem>>, vector<1x1x1x8x32xf32>
    %273 = vector.shape_cast %272 : vector<1x1x1x8x32xf32> to vector<8x32xf32>
    %cst_243 = arith.constant dense<0.000000e+00> : vector<8x8xf32>
    %274 = tpu.matmul %189, %273, %cst_243 {dimension_numbers = #tpu.dot_dimension_numbers<[1], [1], [0], [0], [0, 0, 1, 0], [], []>} : vector<8x32xf32>, vector<8x32xf32>, vector<8x8xf32> -> vector<8x8xf32>
    %c1_244 = arith.constant 1 : index
    %c1_245 = arith.constant 1 : index
    %c3_246 = arith.constant 3 : index
    %c0_247 = arith.constant 0 : index
    %c0_248 = arith.constant 0 : index
    %275 = vector.load %arg7[%c1_244, %c1_245, %c3_246, %c0_247, %c0_248] : memref<3x4x4x8x32xf32, #tpu.memory_space<vmem>>, vector<1x1x1x8x32xf32>
    %276 = vector.shape_cast %275 : vector<1x1x1x8x32xf32> to vector<8x32xf32>
    %cst_249 = arith.constant dense<0.000000e+00> : vector<8x8xf32>
    %277 = tpu.matmul %189, %276, %cst_249 {dimension_numbers = #tpu.dot_dimension_numbers<[1], [1], [0], [0], [0, 0, 1, 0], [], []>} : vector<8x32xf32>, vector<8x32xf32>, vector<8x8xf32> -> vector<8x8xf32>
    %c1_250 = arith.constant 1 : index
    %c2_251 = arith.constant 2 : index
    %c3_252 = arith.constant 3 : index
    %c0_253 = arith.constant 0 : index
    %c0_254 = arith.constant 0 : index
    %278 = vector.load %arg7[%c1_250, %c2_251, %c3_252, %c0_253, %c0_254] : memref<3x4x4x8x32xf32, #tpu.memory_space<vmem>>, vector<1x1x1x8x32xf32>
    %279 = vector.shape_cast %278 : vector<1x1x1x8x32xf32> to vector<8x32xf32>
    %cst_255 = arith.constant dense<0.000000e+00> : vector<8x8xf32>
    %280 = tpu.matmul %189, %279, %cst_255 {dimension_numbers = #tpu.dot_dimension_numbers<[1], [1], [0], [0], [0, 0, 1, 0], [], []>} : vector<8x32xf32>, vector<8x32xf32>, vector<8x8xf32> -> vector<8x8xf32>
    %cst_256 = arith.constant dense<0.000000e+00> : vector<8x8xf32>
    %281 = tpu.matmul %274, %277, %cst_256 {dimension_numbers = #tpu.dot_dimension_numbers<[1], [1], [0], [0], [0, 0, 1, 0], [], []>} : vector<8x8xf32>, vector<8x8xf32>, vector<8x8xf32> -> vector<8x8xf32>
    %282 = vector.extract_strided_slice %18 {offsets = [3, 0, 0], sizes = [1, 8, 8], strides = [1, 1, 1]} : vector<4x8x8xf32> to vector<1x8x8xf32>
    %283 = vector.shape_cast %282 : vector<1x8x8xf32> to vector<8x8xf32>
    %284 = arith.addf %281, %283 : vector<8x8xf32>
    %cst_257 = arith.constant dense<0xFF800000> : vector<8xf32>
    %285 = vector.multi_reduction <maximumf>, %284, %cst_257 [1] : vector<8x8xf32> to vector<8xf32>
    %286 = vector.shape_cast %285 : vector<8xf32> to vector<8x1xf32>
    %287 = vector.broadcast %286 : vector<8x1xf32> to vector<8x8xf32>
    %288 = arith.subf %284, %287 : vector<8x8xf32>
    %289 = math.exp %288 : vector<8x8xf32>
    %cst_258 = arith.constant dense<0.000000e+00> : vector<8xf32>
    %290 = vector.multi_reduction <add>, %289, %cst_258 [1] : vector<8x8xf32> to vector<8xf32>
    %291 = vector.shape_cast %290 : vector<8xf32> to vector<8x1xf32>
    %292 = vector.broadcast %291 : vector<8x1xf32> to vector<8x8xf32>
    %293 = arith.divf %289, %292 : vector<8x8xf32>
    %cst_259 = arith.constant dense<0.000000e+00> : vector<8x8xf32>
    %294 = tpu.matmul %293, %280, %cst_259 {dimension_numbers = #tpu.dot_dimension_numbers<[1], [0], [0], [1], [0, 0, 1, 1], [], []>} : vector<8x8xf32>, vector<8x8xf32>, vector<8x8xf32> -> vector<8x8xf32>
    %c1_260 = arith.constant 1 : index
    %c3_261 = arith.constant 3 : index
    %c3_262 = arith.constant 3 : index
    %c0_263 = arith.constant 0 : index
    %c0_264 = arith.constant 0 : index
    %295 = vector.load %arg7[%c1_260, %c3_261, %c3_262, %c0_263, %c0_264] : memref<3x4x4x8x32xf32, #tpu.memory_space<vmem>>, vector<1x1x1x8x32xf32>
    %296 = vector.shape_cast %295 : vector<1x1x1x8x32xf32> to vector<8x32xf32>
    %cst_265 = arith.constant dense<0.000000e+00> : vector<8x32xf32>
    %297 = tpu.matmul %294, %296, %cst_265 {dimension_numbers = #tpu.dot_dimension_numbers<[1], [0], [0], [1], [0, 0, 1, 1], [], []>} : vector<8x8xf32>, vector<8x32xf32>, vector<8x32xf32> -> vector<8x32xf32>
    %298 = arith.addf %271, %297 : vector<8x32xf32>
    %299 = arith.addf %11, %298 : vector<8x32xf32>
    %300 = arith.mulf %299, %299 : vector<8x32xf32>
    %cst_266 = arith.constant dense<0.000000e+00> : vector<8xf32>
    %301 = vector.multi_reduction <add>, %300, %cst_266 [1] : vector<8x32xf32> to vector<8xf32>
    %302 = vector.shape_cast %301 : vector<8xf32> to vector<8x1xf32>
    %cst_267 = arith.constant 3.200000e+01 : f32
    %303 = vector.broadcast %cst_267 : f32 to vector<8x1xf32>
    %304 = arith.divf %302, %303 : vector<8x1xf32>
    %cst_268 = arith.constant 9.99999997E-7 : f32
    %305 = vector.broadcast %cst_268 : f32 to vector<8x1xf32>
    %306 = arith.addf %304, %305 : vector<8x1xf32>
    %307 = math.rsqrt %306 : vector<8x1xf32>
    %308 = vector.broadcast %307 : vector<8x1xf32> to vector<8x32xf32>
    %309 = arith.mulf %299, %308 : vector<8x32xf32>
    %c4 = arith.constant 4 : index
    %c0_269 = arith.constant 0 : index
    %310 = vector.load %arg6[%c4, %c0_269] : memref<8x32xf32, #tpu.memory_space<vmem>>, vector<1x32xf32>
    %311 = vector.broadcast %310 : vector<1x32xf32> to vector<8x32xf32>
    %312 = arith.mulf %309, %311 : vector<8x32xf32>
    %cst_270 = arith.constant 0.000000e+00 : f32
    %313 = vector.broadcast %cst_270 : f32 to vector<8x32xf32>
    %c2_271 = arith.constant 2 : index
    %c0_272 = arith.constant 0 : index
    %c0_273 = arith.constant 0 : index
    %c0_274 = arith.constant 0 : index
    %c0_275 = arith.constant 0 : index
    %314 = vector.load %arg7[%c2_271, %c0_272, %c0_273, %c0_274, %c0_275] : memref<3x4x4x8x32xf32, #tpu.memory_space<vmem>>, vector<1x1x1x8x32xf32>
    %315 = vector.shape_cast %314 : vector<1x1x1x8x32xf32> to vector<8x32xf32>
    %cst_276 = arith.constant dense<0.000000e+00> : vector<8x8xf32>
    %316 = tpu.matmul %312, %315, %cst_276 {dimension_numbers = #tpu.dot_dimension_numbers<[1], [1], [0], [0], [0, 0, 1, 0], [], []>} : vector<8x32xf32>, vector<8x32xf32>, vector<8x8xf32> -> vector<8x8xf32>
    %c2_277 = arith.constant 2 : index
    %c1_278 = arith.constant 1 : index
    %c0_279 = arith.constant 0 : index
    %c0_280 = arith.constant 0 : index
    %c0_281 = arith.constant 0 : index
    %317 = vector.load %arg7[%c2_277, %c1_278, %c0_279, %c0_280, %c0_281] : memref<3x4x4x8x32xf32, #tpu.memory_space<vmem>>, vector<1x1x1x8x32xf32>
    %318 = vector.shape_cast %317 : vector<1x1x1x8x32xf32> to vector<8x32xf32>
    %cst_282 = arith.constant dense<0.000000e+00> : vector<8x8xf32>
    %319 = tpu.matmul %176, %318, %cst_282 {dimension_numbers = #tpu.dot_dimension_numbers<[1], [1], [0], [0], [0, 0, 1, 0], [], []>} : vector<8x32xf32>, vector<8x32xf32>, vector<8x8xf32> -> vector<8x8xf32>
    %c2_283 = arith.constant 2 : index
    %c2_284 = arith.constant 2 : index
    %c0_285 = arith.constant 0 : index
    %c0_286 = arith.constant 0 : index
    %c0_287 = arith.constant 0 : index
    %320 = vector.load %arg7[%c2_283, %c2_284, %c0_285, %c0_286, %c0_287] : memref<3x4x4x8x32xf32, #tpu.memory_space<vmem>>, vector<1x1x1x8x32xf32>
    %321 = vector.shape_cast %320 : vector<1x1x1x8x32xf32> to vector<8x32xf32>
    %cst_288 = arith.constant dense<0.000000e+00> : vector<8x8xf32>
    %322 = tpu.matmul %176, %321, %cst_288 {dimension_numbers = #tpu.dot_dimension_numbers<[1], [1], [0], [0], [0, 0, 1, 0], [], []>} : vector<8x32xf32>, vector<8x32xf32>, vector<8x8xf32> -> vector<8x8xf32>
    %cst_289 = arith.constant dense<0.000000e+00> : vector<8x8xf32>
    %323 = tpu.matmul %316, %319, %cst_289 {dimension_numbers = #tpu.dot_dimension_numbers<[1], [1], [0], [0], [0, 0, 1, 0], [], []>} : vector<8x8xf32>, vector<8x8xf32>, vector<8x8xf32> -> vector<8x8xf32>
    %324 = vector.broadcast %13 : vector<1x8xf32> to vector<8x8xf32>
    %325 = arith.addf %323, %324 : vector<8x8xf32>
    %cst_290 = arith.constant dense<0xFF800000> : vector<8xf32>
    %326 = vector.multi_reduction <maximumf>, %325, %cst_290 [1] : vector<8x8xf32> to vector<8xf32>
    %327 = vector.shape_cast %326 : vector<8xf32> to vector<8x1xf32>
    %328 = vector.broadcast %327 : vector<8x1xf32> to vector<8x8xf32>
    %329 = arith.subf %325, %328 : vector<8x8xf32>
    %330 = math.exp %329 : vector<8x8xf32>
    %cst_291 = arith.constant dense<0.000000e+00> : vector<8xf32>
    %331 = vector.multi_reduction <add>, %330, %cst_291 [1] : vector<8x8xf32> to vector<8xf32>
    %332 = vector.shape_cast %331 : vector<8xf32> to vector<8x1xf32>
    %333 = vector.broadcast %332 : vector<8x1xf32> to vector<8x8xf32>
    %334 = arith.divf %330, %333 : vector<8x8xf32>
    %cst_292 = arith.constant dense<0.000000e+00> : vector<8x8xf32>
    %335 = tpu.matmul %334, %322, %cst_292 {dimension_numbers = #tpu.dot_dimension_numbers<[1], [0], [0], [1], [0, 0, 1, 1], [], []>} : vector<8x8xf32>, vector<8x8xf32>, vector<8x8xf32> -> vector<8x8xf32>
    %c2_293 = arith.constant 2 : index
    %c3_294 = arith.constant 3 : index
    %c0_295 = arith.constant 0 : index
    %c0_296 = arith.constant 0 : index
    %c0_297 = arith.constant 0 : index
    %336 = vector.load %arg7[%c2_293, %c3_294, %c0_295, %c0_296, %c0_297] : memref<3x4x4x8x32xf32, #tpu.memory_space<vmem>>, vector<1x1x1x8x32xf32>
    %337 = vector.shape_cast %336 : vector<1x1x1x8x32xf32> to vector<8x32xf32>
    %cst_298 = arith.constant dense<0.000000e+00> : vector<8x32xf32>
    %338 = tpu.matmul %335, %337, %cst_298 {dimension_numbers = #tpu.dot_dimension_numbers<[1], [0], [0], [1], [0, 0, 1, 1], [], []>} : vector<8x8xf32>, vector<8x32xf32>, vector<8x32xf32> -> vector<8x32xf32>
    %339 = arith.addf %313, %338 : vector<8x32xf32>
    %c2_299 = arith.constant 2 : index
    %c0_300 = arith.constant 0 : index
    %c1_301 = arith.constant 1 : index
    %c0_302 = arith.constant 0 : index
    %c0_303 = arith.constant 0 : index
    %340 = vector.load %arg7[%c2_299, %c0_300, %c1_301, %c0_302, %c0_303] : memref<3x4x4x8x32xf32, #tpu.memory_space<vmem>>, vector<1x1x1x8x32xf32>
    %341 = vector.shape_cast %340 : vector<1x1x1x8x32xf32> to vector<8x32xf32>
    %cst_304 = arith.constant dense<0.000000e+00> : vector<8x8xf32>
    %342 = tpu.matmul %312, %341, %cst_304 {dimension_numbers = #tpu.dot_dimension_numbers<[1], [1], [0], [0], [0, 0, 1, 0], [], []>} : vector<8x32xf32>, vector<8x32xf32>, vector<8x8xf32> -> vector<8x8xf32>
    %c2_305 = arith.constant 2 : index
    %c1_306 = arith.constant 1 : index
    %c1_307 = arith.constant 1 : index
    %c0_308 = arith.constant 0 : index
    %c0_309 = arith.constant 0 : index
    %343 = vector.load %arg7[%c2_305, %c1_306, %c1_307, %c0_308, %c0_309] : memref<3x4x4x8x32xf32, #tpu.memory_space<vmem>>, vector<1x1x1x8x32xf32>
    %344 = vector.shape_cast %343 : vector<1x1x1x8x32xf32> to vector<8x32xf32>
    %cst_310 = arith.constant dense<0.000000e+00> : vector<8x8xf32>
    %345 = tpu.matmul %176, %344, %cst_310 {dimension_numbers = #tpu.dot_dimension_numbers<[1], [1], [0], [0], [0, 0, 1, 0], [], []>} : vector<8x32xf32>, vector<8x32xf32>, vector<8x8xf32> -> vector<8x8xf32>
    %c2_311 = arith.constant 2 : index
    %c2_312 = arith.constant 2 : index
    %c1_313 = arith.constant 1 : index
    %c0_314 = arith.constant 0 : index
    %c0_315 = arith.constant 0 : index
    %346 = vector.load %arg7[%c2_311, %c2_312, %c1_313, %c0_314, %c0_315] : memref<3x4x4x8x32xf32, #tpu.memory_space<vmem>>, vector<1x1x1x8x32xf32>
    %347 = vector.shape_cast %346 : vector<1x1x1x8x32xf32> to vector<8x32xf32>
    %cst_316 = arith.constant dense<0.000000e+00> : vector<8x8xf32>
    %348 = tpu.matmul %176, %347, %cst_316 {dimension_numbers = #tpu.dot_dimension_numbers<[1], [1], [0], [0], [0, 0, 1, 0], [], []>} : vector<8x32xf32>, vector<8x32xf32>, vector<8x8xf32> -> vector<8x8xf32>
    %cst_317 = arith.constant dense<0.000000e+00> : vector<8x8xf32>
    %349 = tpu.matmul %342, %345, %cst_317 {dimension_numbers = #tpu.dot_dimension_numbers<[1], [1], [0], [0], [0, 0, 1, 0], [], []>} : vector<8x8xf32>, vector<8x8xf32>, vector<8x8xf32> -> vector<8x8xf32>
    %350 = vector.broadcast %13 : vector<1x8xf32> to vector<8x8xf32>
    %351 = arith.addf %349, %350 : vector<8x8xf32>
    %cst_318 = arith.constant dense<0xFF800000> : vector<8xf32>
    %352 = vector.multi_reduction <maximumf>, %351, %cst_318 [1] : vector<8x8xf32> to vector<8xf32>
    %353 = vector.shape_cast %352 : vector<8xf32> to vector<8x1xf32>
    %354 = vector.broadcast %353 : vector<8x1xf32> to vector<8x8xf32>
    %355 = arith.subf %351, %354 : vector<8x8xf32>
    %356 = math.exp %355 : vector<8x8xf32>
    %cst_319 = arith.constant dense<0.000000e+00> : vector<8xf32>
    %357 = vector.multi_reduction <add>, %356, %cst_319 [1] : vector<8x8xf32> to vector<8xf32>
    %358 = vector.shape_cast %357 : vector<8xf32> to vector<8x1xf32>
    %359 = vector.broadcast %358 : vector<8x1xf32> to vector<8x8xf32>
    %360 = arith.divf %356, %359 : vector<8x8xf32>
    %cst_320 = arith.constant dense<0.000000e+00> : vector<8x8xf32>
    %361 = tpu.matmul %360, %348, %cst_320 {dimension_numbers = #tpu.dot_dimension_numbers<[1], [0], [0], [1], [0, 0, 1, 1], [], []>} : vector<8x8xf32>, vector<8x8xf32>, vector<8x8xf32> -> vector<8x8xf32>
    %c2_321 = arith.constant 2 : index
    %c3_322 = arith.constant 3 : index
    %c1_323 = arith.constant 1 : index
    %c0_324 = arith.constant 0 : index
    %c0_325 = arith.constant 0 : index
    %362 = vector.load %arg7[%c2_321, %c3_322, %c1_323, %c0_324, %c0_325] : memref<3x4x4x8x32xf32, #tpu.memory_space<vmem>>, vector<1x1x1x8x32xf32>
    %363 = vector.shape_cast %362 : vector<1x1x1x8x32xf32> to vector<8x32xf32>
    %cst_326 = arith.constant dense<0.000000e+00> : vector<8x32xf32>
    %364 = tpu.matmul %361, %363, %cst_326 {dimension_numbers = #tpu.dot_dimension_numbers<[1], [0], [0], [1], [0, 0, 1, 1], [], []>} : vector<8x8xf32>, vector<8x32xf32>, vector<8x32xf32> -> vector<8x32xf32>
    %365 = arith.addf %339, %364 : vector<8x32xf32>
    %c2_327 = arith.constant 2 : index
    %c0_328 = arith.constant 0 : index
    %c2_329 = arith.constant 2 : index
    %c0_330 = arith.constant 0 : index
    %c0_331 = arith.constant 0 : index
    %366 = vector.load %arg7[%c2_327, %c0_328, %c2_329, %c0_330, %c0_331] : memref<3x4x4x8x32xf32, #tpu.memory_space<vmem>>, vector<1x1x1x8x32xf32>
    %367 = vector.shape_cast %366 : vector<1x1x1x8x32xf32> to vector<8x32xf32>
    %cst_332 = arith.constant dense<0.000000e+00> : vector<8x8xf32>
    %368 = tpu.matmul %312, %367, %cst_332 {dimension_numbers = #tpu.dot_dimension_numbers<[1], [1], [0], [0], [0, 0, 1, 0], [], []>} : vector<8x32xf32>, vector<8x32xf32>, vector<8x8xf32> -> vector<8x8xf32>
    %c2_333 = arith.constant 2 : index
    %c1_334 = arith.constant 1 : index
    %c2_335 = arith.constant 2 : index
    %c0_336 = arith.constant 0 : index
    %c0_337 = arith.constant 0 : index
    %369 = vector.load %arg7[%c2_333, %c1_334, %c2_335, %c0_336, %c0_337] : memref<3x4x4x8x32xf32, #tpu.memory_space<vmem>>, vector<1x1x1x8x32xf32>
    %370 = vector.shape_cast %369 : vector<1x1x1x8x32xf32> to vector<8x32xf32>
    %cst_338 = arith.constant dense<0.000000e+00> : vector<8x8xf32>
    %371 = tpu.matmul %176, %370, %cst_338 {dimension_numbers = #tpu.dot_dimension_numbers<[1], [1], [0], [0], [0, 0, 1, 0], [], []>} : vector<8x32xf32>, vector<8x32xf32>, vector<8x8xf32> -> vector<8x8xf32>
    %c2_339 = arith.constant 2 : index
    %c2_340 = arith.constant 2 : index
    %c2_341 = arith.constant 2 : index
    %c0_342 = arith.constant 0 : index
    %c0_343 = arith.constant 0 : index
    %372 = vector.load %arg7[%c2_339, %c2_340, %c2_341, %c0_342, %c0_343] : memref<3x4x4x8x32xf32, #tpu.memory_space<vmem>>, vector<1x1x1x8x32xf32>
    %373 = vector.shape_cast %372 : vector<1x1x1x8x32xf32> to vector<8x32xf32>
    %cst_344 = arith.constant dense<0.000000e+00> : vector<8x8xf32>
    %374 = tpu.matmul %176, %373, %cst_344 {dimension_numbers = #tpu.dot_dimension_numbers<[1], [1], [0], [0], [0, 0, 1, 0], [], []>} : vector<8x32xf32>, vector<8x32xf32>, vector<8x8xf32> -> vector<8x8xf32>
    %cst_345 = arith.constant dense<0.000000e+00> : vector<8x8xf32>
    %375 = tpu.matmul %368, %371, %cst_345 {dimension_numbers = #tpu.dot_dimension_numbers<[1], [1], [0], [0], [0, 0, 1, 0], [], []>} : vector<8x8xf32>, vector<8x8xf32>, vector<8x8xf32> -> vector<8x8xf32>
    %376 = vector.broadcast %13 : vector<1x8xf32> to vector<8x8xf32>
    %377 = arith.addf %375, %376 : vector<8x8xf32>
    %cst_346 = arith.constant dense<0xFF800000> : vector<8xf32>
    %378 = vector.multi_reduction <maximumf>, %377, %cst_346 [1] : vector<8x8xf32> to vector<8xf32>
    %379 = vector.shape_cast %378 : vector<8xf32> to vector<8x1xf32>
    %380 = vector.broadcast %379 : vector<8x1xf32> to vector<8x8xf32>
    %381 = arith.subf %377, %380 : vector<8x8xf32>
    %382 = math.exp %381 : vector<8x8xf32>
    %cst_347 = arith.constant dense<0.000000e+00> : vector<8xf32>
    %383 = vector.multi_reduction <add>, %382, %cst_347 [1] : vector<8x8xf32> to vector<8xf32>
    %384 = vector.shape_cast %383 : vector<8xf32> to vector<8x1xf32>
    %385 = vector.broadcast %384 : vector<8x1xf32> to vector<8x8xf32>
    %386 = arith.divf %382, %385 : vector<8x8xf32>
    %cst_348 = arith.constant dense<0.000000e+00> : vector<8x8xf32>
    %387 = tpu.matmul %386, %374, %cst_348 {dimension_numbers = #tpu.dot_dimension_numbers<[1], [0], [0], [1], [0, 0, 1, 1], [], []>} : vector<8x8xf32>, vector<8x8xf32>, vector<8x8xf32> -> vector<8x8xf32>
    %c2_349 = arith.constant 2 : index
    %c3_350 = arith.constant 3 : index
    %c2_351 = arith.constant 2 : index
    %c0_352 = arith.constant 0 : index
    %c0_353 = arith.constant 0 : index
    %388 = vector.load %arg7[%c2_349, %c3_350, %c2_351, %c0_352, %c0_353] : memref<3x4x4x8x32xf32, #tpu.memory_space<vmem>>, vector<1x1x1x8x32xf32>
    %389 = vector.shape_cast %388 : vector<1x1x1x8x32xf32> to vector<8x32xf32>
    %cst_354 = arith.constant dense<0.000000e+00> : vector<8x32xf32>
    %390 = tpu.matmul %387, %389, %cst_354 {dimension_numbers = #tpu.dot_dimension_numbers<[1], [0], [0], [1], [0, 0, 1, 1], [], []>} : vector<8x8xf32>, vector<8x32xf32>, vector<8x32xf32> -> vector<8x32xf32>
    %391 = arith.addf %365, %390 : vector<8x32xf32>
    %c2_355 = arith.constant 2 : index
    %c0_356 = arith.constant 0 : index
    %c3_357 = arith.constant 3 : index
    %c0_358 = arith.constant 0 : index
    %c0_359 = arith.constant 0 : index
    %392 = vector.load %arg7[%c2_355, %c0_356, %c3_357, %c0_358, %c0_359] : memref<3x4x4x8x32xf32, #tpu.memory_space<vmem>>, vector<1x1x1x8x32xf32>
    %393 = vector.shape_cast %392 : vector<1x1x1x8x32xf32> to vector<8x32xf32>
    %cst_360 = arith.constant dense<0.000000e+00> : vector<8x8xf32>
    %394 = tpu.matmul %312, %393, %cst_360 {dimension_numbers = #tpu.dot_dimension_numbers<[1], [1], [0], [0], [0, 0, 1, 0], [], []>} : vector<8x32xf32>, vector<8x32xf32>, vector<8x8xf32> -> vector<8x8xf32>
    %c2_361 = arith.constant 2 : index
    %c1_362 = arith.constant 1 : index
    %c3_363 = arith.constant 3 : index
    %c0_364 = arith.constant 0 : index
    %c0_365 = arith.constant 0 : index
    %395 = vector.load %arg7[%c2_361, %c1_362, %c3_363, %c0_364, %c0_365] : memref<3x4x4x8x32xf32, #tpu.memory_space<vmem>>, vector<1x1x1x8x32xf32>
    %396 = vector.shape_cast %395 : vector<1x1x1x8x32xf32> to vector<8x32xf32>
    %cst_366 = arith.constant dense<0.000000e+00> : vector<8x8xf32>
    %397 = tpu.matmul %176, %396, %cst_366 {dimension_numbers = #tpu.dot_dimension_numbers<[1], [1], [0], [0], [0, 0, 1, 0], [], []>} : vector<8x32xf32>, vector<8x32xf32>, vector<8x8xf32> -> vector<8x8xf32>
    %c2_367 = arith.constant 2 : index
    %c2_368 = arith.constant 2 : index
    %c3_369 = arith.constant 3 : index
    %c0_370 = arith.constant 0 : index
    %c0_371 = arith.constant 0 : index
    %398 = vector.load %arg7[%c2_367, %c2_368, %c3_369, %c0_370, %c0_371] : memref<3x4x4x8x32xf32, #tpu.memory_space<vmem>>, vector<1x1x1x8x32xf32>
    %399 = vector.shape_cast %398 : vector<1x1x1x8x32xf32> to vector<8x32xf32>
    %cst_372 = arith.constant dense<0.000000e+00> : vector<8x8xf32>
    %400 = tpu.matmul %176, %399, %cst_372 {dimension_numbers = #tpu.dot_dimension_numbers<[1], [1], [0], [0], [0, 0, 1, 0], [], []>} : vector<8x32xf32>, vector<8x32xf32>, vector<8x8xf32> -> vector<8x8xf32>
    %cst_373 = arith.constant dense<0.000000e+00> : vector<8x8xf32>
    %401 = tpu.matmul %394, %397, %cst_373 {dimension_numbers = #tpu.dot_dimension_numbers<[1], [1], [0], [0], [0, 0, 1, 0], [], []>} : vector<8x8xf32>, vector<8x8xf32>, vector<8x8xf32> -> vector<8x8xf32>
    %402 = vector.broadcast %13 : vector<1x8xf32> to vector<8x8xf32>
    %403 = arith.addf %401, %402 : vector<8x8xf32>
    %cst_374 = arith.constant dense<0xFF800000> : vector<8xf32>
    %404 = vector.multi_reduction <maximumf>, %403, %cst_374 [1] : vector<8x8xf32> to vector<8xf32>
    %405 = vector.shape_cast %404 : vector<8xf32> to vector<8x1xf32>
    %406 = vector.broadcast %405 : vector<8x1xf32> to vector<8x8xf32>
    %407 = arith.subf %403, %406 : vector<8x8xf32>
    %408 = math.exp %407 : vector<8x8xf32>
    %cst_375 = arith.constant dense<0.000000e+00> : vector<8xf32>
    %409 = vector.multi_reduction <add>, %408, %cst_375 [1] : vector<8x8xf32> to vector<8xf32>
    %410 = vector.shape_cast %409 : vector<8xf32> to vector<8x1xf32>
    %411 = vector.broadcast %410 : vector<8x1xf32> to vector<8x8xf32>
    %412 = arith.divf %408, %411 : vector<8x8xf32>
    %cst_376 = arith.constant dense<0.000000e+00> : vector<8x8xf32>
    %413 = tpu.matmul %412, %400, %cst_376 {dimension_numbers = #tpu.dot_dimension_numbers<[1], [0], [0], [1], [0, 0, 1, 1], [], []>} : vector<8x8xf32>, vector<8x8xf32>, vector<8x8xf32> -> vector<8x8xf32>
    %c2_377 = arith.constant 2 : index
    %c3_378 = arith.constant 3 : index
    %c3_379 = arith.constant 3 : index
    %c0_380 = arith.constant 0 : index
    %c0_381 = arith.constant 0 : index
    %414 = vector.load %arg7[%c2_377, %c3_378, %c3_379, %c0_380, %c0_381] : memref<3x4x4x8x32xf32, #tpu.memory_space<vmem>>, vector<1x1x1x8x32xf32>
    %415 = vector.shape_cast %414 : vector<1x1x1x8x32xf32> to vector<8x32xf32>
    %cst_382 = arith.constant dense<0.000000e+00> : vector<8x32xf32>
    %416 = tpu.matmul %413, %415, %cst_382 {dimension_numbers = #tpu.dot_dimension_numbers<[1], [0], [0], [1], [0, 0, 1, 1], [], []>} : vector<8x8xf32>, vector<8x32xf32>, vector<8x32xf32> -> vector<8x32xf32>
    %417 = arith.addf %391, %416 : vector<8x32xf32>
    %418 = arith.addf %299, %417 : vector<8x32xf32>
    %419 = arith.mulf %418, %418 : vector<8x32xf32>
    %cst_383 = arith.constant dense<0.000000e+00> : vector<8xf32>
    %420 = vector.multi_reduction <add>, %419, %cst_383 [1] : vector<8x32xf32> to vector<8xf32>
    %421 = vector.shape_cast %420 : vector<8xf32> to vector<8x1xf32>
    %cst_384 = arith.constant 3.200000e+01 : f32
    %422 = vector.broadcast %cst_384 : f32 to vector<8x1xf32>
    %423 = arith.divf %421, %422 : vector<8x1xf32>
    %cst_385 = arith.constant 9.99999997E-7 : f32
    %424 = vector.broadcast %cst_385 : f32 to vector<8x1xf32>
    %425 = arith.addf %423, %424 : vector<8x1xf32>
    %426 = math.rsqrt %425 : vector<8x1xf32>
    %427 = vector.broadcast %426 : vector<8x1xf32> to vector<8x32xf32>
    %428 = arith.mulf %418, %427 : vector<8x32xf32>
    %c5 = arith.constant 5 : index
    %c0_386 = arith.constant 0 : index
    %429 = vector.load %arg6[%c5, %c0_386] : memref<8x32xf32, #tpu.memory_space<vmem>>, vector<1x32xf32>
    %430 = vector.broadcast %429 : vector<1x32xf32> to vector<8x32xf32>
    %431 = arith.mulf %428, %430 : vector<8x32xf32>
    %c1_387 = arith.constant 1 : index
    %c0_388 = arith.constant 0 : index
    %c0_389 = arith.constant 0 : index
    %c0_390 = arith.constant 0 : index
    %432 = vector.load %arg8[%c1_387, %c0_388, %c0_389, %c0_390] : memref<2x2x32x64xf32, #tpu.memory_space<vmem>>, vector<1x1x32x64xf32>
    %433 = vector.shape_cast %432 : vector<1x1x32x64xf32> to vector<32x64xf32>
    %cst_391 = arith.constant dense<0.000000e+00> : vector<8x64xf32>
    %434 = tpu.matmul %431, %433, %cst_391 {dimension_numbers = #tpu.dot_dimension_numbers<[1], [0], [0], [1], [0, 0, 1, 1], [], []>} : vector<8x32xf32>, vector<32x64xf32>, vector<8x64xf32> -> vector<8x64xf32>
    %cst_392 = arith.constant 0.000000e+00 : f32
    %435 = vector.broadcast %cst_392 : f32 to vector<8x64xf32>
    %436 = arith.maximumf %434, %435 : vector<8x64xf32>
    %c1_393 = arith.constant 1 : index
    %c1_394 = arith.constant 1 : index
    %c0_395 = arith.constant 0 : index
    %c0_396 = arith.constant 0 : index
    %437 = vector.load %arg8[%c1_393, %c1_394, %c0_395, %c0_396] : memref<2x2x32x64xf32, #tpu.memory_space<vmem>>, vector<1x1x32x64xf32>
    %438 = vector.shape_cast %437 : vector<1x1x32x64xf32> to vector<32x64xf32>
    %cst_397 = arith.constant dense<0.000000e+00> : vector<8x32xf32>
    %439 = tpu.matmul %436, %438, %cst_397 {dimension_numbers = #tpu.dot_dimension_numbers<[1], [1], [0], [0], [0, 0, 1, 0], [], []>} : vector<8x64xf32>, vector<32x64xf32>, vector<8x32xf32> -> vector<8x32xf32>
    %440 = arith.addf %418, %439 : vector<8x32xf32>
    %441 = arith.mulf %440, %440 : vector<8x32xf32>
    %cst_398 = arith.constant dense<0.000000e+00> : vector<8xf32>
    %442 = vector.multi_reduction <add>, %441, %cst_398 [1] : vector<8x32xf32> to vector<8xf32>
    %443 = vector.shape_cast %442 : vector<8xf32> to vector<8x1xf32>
    %cst_399 = arith.constant 3.200000e+01 : f32
    %444 = vector.broadcast %cst_399 : f32 to vector<8x1xf32>
    %445 = arith.divf %443, %444 : vector<8x1xf32>
    %cst_400 = arith.constant 9.99999997E-7 : f32
    %446 = vector.broadcast %cst_400 : f32 to vector<8x1xf32>
    %447 = arith.addf %445, %446 : vector<8x1xf32>
    %448 = math.rsqrt %447 : vector<8x1xf32>
    %449 = vector.broadcast %448 : vector<8x1xf32> to vector<8x32xf32>
    %450 = arith.mulf %440, %449 : vector<8x32xf32>
    %c6 = arith.constant 6 : index
    %c0_401 = arith.constant 0 : index
    %451 = vector.load %arg6[%c6, %c0_401] : memref<8x32xf32, #tpu.memory_space<vmem>>, vector<1x32xf32>
    %452 = vector.broadcast %451 : vector<1x32xf32> to vector<8x32xf32>
    %453 = arith.mulf %450, %452 : vector<8x32xf32>
    %cst_402 = arith.constant 0.176776692 : f32
    %454 = vector.broadcast %cst_402 : f32 to vector<8x32xf32>
    %455 = arith.mulf %453, %454 : vector<8x32xf32>
    %cst_403 = arith.constant dense<0.000000e+00> : vector<8x128xf32>
    %456 = tpu.matmul %455, %0, %cst_403 {dimension_numbers = #tpu.dot_dimension_numbers<[1], [1], [0], [0], [0, 0, 1, 0], [], []>} : vector<8x32xf32>, vector<128x32xf32>, vector<8x128xf32> -> vector<8x128xf32>
    %457 = tpu.iota {dimensions = array<i32: 1>} : vector<8x128xi32>
    %c64_i32 = arith.constant 64 : i32
    %458 = vector.broadcast %c64_i32 : i32 to vector<8x128xi32>
    %459 = arith.cmpi slt, %457, %458 : vector<8x128xi32>
    %cst_404 = arith.constant -1.000000e+09 : f32
    %460 = vector.broadcast %cst_404 : f32 to vector<8x128xf32>
    %461 = arith.select %459, %456, %460 : vector<8x128xi1>, vector<8x128xf32>
    %cst_405 = arith.constant dense<0xFF800000> : vector<8xf32>
    %462 = vector.multi_reduction <maximumf>, %461, %cst_405 [1] : vector<8x128xf32> to vector<8xf32>
    %463 = vector.shape_cast %462 : vector<8xf32> to vector<8x1xf32>
    %464 = vector.broadcast %463 : vector<8x1xf32> to vector<8x128xf32>
    %465 = arith.subf %461, %464 : vector<8x128xf32>
    %466 = math.exp %465 : vector<8x128xf32>
    %cst_406 = arith.constant dense<0.000000e+00> : vector<8xf32>
    %467 = vector.multi_reduction <add>, %466, %cst_406 [1] : vector<8x128xf32> to vector<8xf32>
    %468 = vector.shape_cast %467 : vector<8xf32> to vector<8x1xf32>
    %469 = math.log %468 : vector<8x1xf32>
    %470 = vector.broadcast %469 : vector<8x1xf32> to vector<8x128xf32>
    %471 = arith.subf %465, %470 : vector<8x128xf32>
    %472 = vector.broadcast %3 : vector<8x1xi32> to vector<8x128xi32>
    %473 = arith.cmpi eq, %457, %472 : vector<8x128xi32>
    %cst_407 = arith.constant 0.000000e+00 : f32
    %474 = vector.broadcast %cst_407 : f32 to vector<8x128xf32>
    %475 = arith.select %473, %471, %474 : vector<8x128xi1>, vector<8x128xf32>
    %cst_408 = arith.constant dense<0.000000e+00> : vector<8xf32>
    %476 = vector.multi_reduction <add>, %475, %cst_408 [1] : vector<8x128xf32> to vector<8xf32>
    %477 = vector.shape_cast %476 : vector<8xf32> to vector<8x1xf32>
    %c-100_i32 = arith.constant -100 : i32
    %478 = vector.broadcast %c-100_i32 : i32 to vector<8x1xi32>
    %479 = arith.cmpi ne, %3, %478 : vector<8x1xi32>
    %480 = arith.extui %479 : vector<8x1xi1> to vector<8x1xi32>
    %481 = arith.sitofp %480 : vector<8x1xi32> to vector<8x1xf32>
    %cst_409 = arith.constant 0.000000e+00 : f32
    %482 = vector.broadcast %cst_409 : f32 to vector<8x1xf32>
    %483 = arith.subf %482, %477 : vector<8x1xf32>
    %484 = arith.mulf %483, %481 : vector<8x1xf32>
    %cst_410 = arith.constant dense<0.000000e+00> : vector<1xf32>
    %485 = vector.multi_reduction <add>, %484, %cst_410 [0] : vector<8x1xf32> to vector<1xf32>
    %486 = vector.shape_cast %485 : vector<1xf32> to vector<1x1xf32>
    %cst_411 = arith.constant dense<0.000000e+00> : vector<1xf32>
    %487 = vector.multi_reduction <add>, %481, %cst_411 [0] : vector<8x1xf32> to vector<1xf32>
    %488 = vector.shape_cast %487 : vector<1xf32> to vector<1x1xf32>
    %c64_i32_412 = arith.constant 64 : i32
    %489 = vector.broadcast %c64_i32_412 : i32 to vector<8x128xi32>
    %490 = arith.cmpi eq, %457, %489 : vector<8x128xi32>
    %cst_413 = arith.constant 0.000000e+00 : f32
    %491 = vector.shape_cast %486 : vector<1x1xf32> to vector<1x1xf32>
    %492 = vector.broadcast %491 : vector<1x1xf32> to vector<8x128xf32>
    %493 = vector.broadcast %cst_413 : f32 to vector<8x128xf32>
    %494 = arith.select %490, %492, %493 : vector<8x128xi1>, vector<8x128xf32>
    %495 = arith.addf %456, %494 : vector<8x128xf32>
    %c65_i32 = arith.constant 65 : i32
    %496 = vector.broadcast %c65_i32 : i32 to vector<8x128xi32>
    %497 = arith.cmpi eq, %457, %496 : vector<8x128xi32>
    %cst_414 = arith.constant 0.000000e+00 : f32
    %498 = vector.shape_cast %488 : vector<1x1xf32> to vector<1x1xf32>
    %499 = vector.broadcast %498 : vector<1x1xf32> to vector<8x128xf32>
    %500 = vector.broadcast %cst_414 : f32 to vector<8x128xf32>
    %501 = arith.select %497, %499, %500 : vector<8x128xi1>, vector<8x128xf32>
    %502 = arith.addf %495, %501 : vector<8x128xf32>
    %c0_415 = arith.constant 0 : index
    %c0_416 = arith.constant 0 : index
    %503 = vector.load %arg9[%c0_415, %c0_416] : memref<8x128xf32, #tpu.memory_space<vmem>>, vector<8x128xf32>
    tpu.vector_store %arg9[%c0_415, %c0_416], %502 {strides = array<i32>} : memref<8x128xf32, #tpu.memory_space<vmem>>, vector<8x128xf32>,
    return
  }
  func.func @transform_0(%arg0: i32) -> (i32, i32) {
    %c0_i32 = arith.constant 0 : i32
    %c0_i32_0 = arith.constant 0 : i32
    return %arg0, %c0_i32 : i32, i32
  }
  func.func @transform_1(%arg0: i32) -> (i32, i32, i32) {
    %c0_i32 = arith.constant 0 : i32
    %c0_i32_0 = arith.constant 0 : i32
    %c0_i32_1 = arith.constant 0 : i32
    return %arg0, %c0_i32, %c0_i32_0 : i32, i32, i32
  }
  func.func @transform_2(%arg0: i32) -> (i32, i32, i32) {
    %c0_i32 = arith.constant 0 : i32
    %c0_i32_0 = arith.constant 0 : i32
    %c0_i32_1 = arith.constant 0 : i32
    %c0_i32_2 = arith.constant 0 : i32
    return %c0_i32, %c0_i32_0, %c0_i32_1 : i32, i32, i32
  }
  func.func @transform_3(%arg0: i32) -> (i32, i32, i32) {
    %c0_i32 = arith.constant 0 : i32
    %c0_i32_0 = arith.constant 0 : i32
    %c0_i32_1 = arith.constant 0 : i32
    %c0_i32_2 = arith.constant 0 : i32
    return %c0_i32, %c0_i32_0, %c0_i32_1 : i32, i32, i32
  }
  func.func @transform_4(%arg0: i32) -> (i32, i32) {
    %c0_i32 = arith.constant 0 : i32
    %c0_i32_0 = arith.constant 0 : i32
    %c0_i32_1 = arith.constant 0 : i32
    return %c0_i32, %c0_i32_0 : i32, i32
  }
  func.func @transform_5(%arg0: i32) -> (i32, i32) {
    %c0_i32 = arith.constant 0 : i32
    %c0_i32_0 = arith.constant 0 : i32
    %c0_i32_1 = arith.constant 0 : i32
    return %c0_i32, %c0_i32_0 : i32, i32
  }
  func.func @transform_6(%arg0: i32) -> (i32, i32, i32, i32, i32) {
    %c0_i32 = arith.constant 0 : i32
    %c0_i32_0 = arith.constant 0 : i32
    %c0_i32_1 = arith.constant 0 : i32
    %c0_i32_2 = arith.constant 0 : i32
    %c0_i32_3 = arith.constant 0 : i32
    %c0_i32_4 = arith.constant 0 : i32
    return %c0_i32, %c0_i32_0, %c0_i32_1, %c0_i32_2, %c0_i32_3 : i32, i32, i32, i32, i32
  }
  func.func @transform_7(%arg0: i32) -> (i32, i32, i32, i32) {
    %c0_i32 = arith.constant 0 : i32
    %c0_i32_0 = arith.constant 0 : i32
    %c0_i32_1 = arith.constant 0 : i32
    %c0_i32_2 = arith.constant 0 : i32
    %c0_i32_3 = arith.constant 0 : i32
    return %c0_i32, %c0_i32_0, %c0_i32_1, %c0_i32_2 : i32, i32, i32, i32
  }
  func.func @transform_8(%arg0: i32) -> (i32, i32) {
    %c0_i32 = arith.constant 0 : i32
    %c0_i32_0 = arith.constant 0 : i32
    return %arg0, %c0_i32 : i32, i32
  }
}

</mosaic_0001>

<bundles_post_ra>
// kernel: model_wrapper_forward.1
= control target key start
LH: loop header
LB: loop body
LE: loop exit
PB: predicated region body
PF: predicated region fallthrough
CT: control target
= control target key end

     0   :  { %s7803_s27 = smov 0   ;;  %s8674_s0 = inlined_call_operand.vmem [shape: s32[48,1], index: 0, kind: input, shape index: {}]   ;;  %s8675_s1 = inlined_call_operand.vmem [shape: f32[2,1,8], index: 1, kind: input, shape index: {}]   ;;  %s8676_s2 = inlined_call_operand.vmem [shape: f32[4,8,8], index: 2, kind: input, shape index: {}]   ;;  %s8677_s3 = inlined_call_operand.vmem [shape: f32[4,8,8], index: 3, kind: input, shape index: {}]   ;;  %s8678_s4 = inlined_call_operand.vmem [shape: f32[128,32], index: 4, kind: input, shape index: {}]   ;;  %s8679_s5 = inlined_call_operand.vmem [shape: f32[8,32], index: 5, kind: input, shape index: {}]   ;;  %s8680_s6 = inlined_call_operand.vmem [shape: f32[3,4,4,8,32], index: 6, kind: input, shape index: {}]   ;;  %s8681_s7 = inlined_call_operand.vmem [shape: f32[2,2,32,64], index: 7, kind: input, shape index: {}]   ;;  %s8682_s8 = inlined_call_operand.vmem [shape: f32[16,128], index: 8, kind: output, shape index: {}]  }
   0x1 LB: > { %s7809_s28 = sadd.s32 4294967295, %s7751_s27   ;;  %p6672_p0 = scmp.ge.s32.totalorder %s7751_s27, 1  ;;  %s7751_s27 = sphi %s7803_s27, %s18_s27  }
   0x2   : > { %p271_p1 = scmp.lt.s32.totalorder %s7751_s27, 3 }
   0x4   : > { %p272_p2 = pnand %p6672_p0, %p271_p1 }
   0x5   : > { %s307_s29 = smul.u32 (!%p272_p2), 3, %s7809_s28  ;;  %v320_v0 = vld [vmem:[%s8678_s4] sm:$0xff] (!%p272_p2)  ;;  %v321_v1 = vld [vmem:[%s8678_s4 + $0x8] sm:$0xff] (!%p272_p2)  ;;  %v322_v2 = vld [vmem:[%s8678_s4 + $0x10] sm:$0xff] (!%p272_p2)  ;;  %v7753_v3 = vmov (!%p272_p2), 0   ;;  %v339_v27 = vlaneseq (!%p272_p2)  ;;  %v7754_v30 = vmov (!%p272_p2), 1.0  }
   0x6   : > { %275 = sbr.rel (%p272_p2) target bundleno = 13942 (0x3676), region = 52  ;;  %7676 = vset.pattern.permute.xlu0 (!%p272_p2), %v7753_v3  ;;  %v7823_v4 = vpack.c.bf16 (!%p272_p2), %v321_v1, %v320_v0  ;;  %v323_v5 = vld [vmem:[%s8678_s4 + $0x18] sm:$0xff] (!%p272_p2)  ;;  %7677 = vset.pattern.permute.xlu1 (!%p272_p2), %v7753_v3  ;;  %v324_v7 = vld [vmem:[%s8678_s4 + $0x20] sm:$0xff] (!%p272_p2)  ;;  %v325_v8 = vld [vmem:[%s8678_s4 + $0x28] sm:$0xff] (!%p272_p2)  ;;  %vm448_vm2 = vcmask (!%p272_p2), 261120   ;;  %v7755_v36 = vmov (!%p272_p2), 0.0  }
   0x7   : > { %p308_p3 = scmp.lt.s32.totalorder (!%p272_p2), %s307_s29, 5  ;;  %v7828_v6 = vpack.c.bf16 (!%p272_p2), %v323_v5, %v322_v2  ;;  %v7839_v9 = vpack.c.bf16 (!%p272_p2), %v325_v8, %v324_v7  ;;  %v326_v10 = vld [vmem:[%s8678_s4 + $0x30] sm:$0xff] (!%p272_p2)  ;;  %v327_v11 = vld [vmem:[%s8678_s4 + $0x38] sm:$0xff] (!%p272_p2)  ;;  %v328_v15 = vld [vmem:[%s8678_s4 + $0x40] sm:$0xff] (!%p272_p2)  ;;  %v7901_v28 = vand.u32 (!%p272_p2), 127, %v339_v27  ;;  %7132 = vmatprep.subr.mxu0 (!%p272_p2), %v7755_v36  ;;  %vm7756_vm3 = vmmov (!%p272_p2), 0  }
   0x8   : > { %7572 = vmatprep.subr.bf16.mxu1 (!%p272_p2), %v7823_v4  ;;  %v7855_v13 = vpack.c.bf16 (!%p272_p2), %v327_v11, %v326_v10  ;;  %v329_v16 = vld [vmem:[%s8678_s4 + $0x48] sm:$0xff] (!%p272_p2)  ;;  %v330_v18 = vld [vmem:[%s8678_s4 + $0x50] sm:$0xff] (!%p272_p2)  ;;  %v331_v19 = vld [vmem:[%s8678_s4 + $0x58] sm:$0xff] (!%p272_p2)  ;;  %7134 = vmatprep.mubr.msk.f32.mxu0 (!%p272_p2), %vm7756_vm3, %v7755_v36  ;;  %vm690_vm4 = vcmask (!%p272_p2), 64512   ;;  %p313_p4 = scmp.lt.s32.totalorder (!%p272_p2), %s7809_s28, 1  ;;  %vm2406_vm5 = vcmask (!%p272_p2), 523264  }
   0x9   : > { %7574 = vmatpush3.bf16.msra.mxu1 (!%p272_p2), %v7823_v4  ;;  %v7866_v17 = vpack.c.bf16 (!%p272_p2), %v329_v16, %v328_v15  ;;  %v7876_v20 = vpack.c.bf16 (!%p272_p2), %v331_v19, %v330_v18  ;;  %v332_v21 = vld [vmem:[%s8678_s4 + $0x60] sm:$0xff] (!%p272_p2)  ;;  %v333_v22 = vld [vmem:[%s8678_s4 + $0x68] sm:$0xff] (!%p272_p2)  ;;  %v334_v24 = vld [vmem:[%s8678_s4 + $0x70] sm:$0xff] (!%p272_p2)  ;;  %vm6550_vm9 = vcmp.lt.s32.totalorder (!%p272_p2), %v7901_v28, 64  ;;  %vm6574_vm10 = vcmask (!%p272_p2), 7168  }
   0xa   : > { %7576 = vmatprep.subr.bf16.mxu1 (!%p272_p2), %v7828_v6  ;;  %v7886_v23 = vpack.c.bf16 (!%p272_p2), %v333_v22, %v332_v21  ;;  %v335_v25 = vld [vmem:[%s8678_s4 + $0x78] sm:$0xff] (!%p272_p2)  ;;  %v463_v37 = vld [vmem:[%s8680_s6] sm:$0xff] (!%p272_p2)  ;;  %v6693_v5 = vld [vmem:[%s8680_s6 + $0x8] sm:$0xff] (!%p272_p2)  ;;  %vm6589_vm12 = vcmp.eq.s32.totalorder (!%p272_p2), %v7901_v28, 64  ;;  %vm6597_vm13 = vcmp.eq.s32.totalorder (!%p272_p2), %v7901_v28, 65 }
   0xb   : > { %v7896_v26 = vpack.c.bf16 (!%p272_p2), %v335_v25, %v334_v24  ;;  %v6683_v38 = vld [vmem:[%s8680_s6 + $0x20] sm:$0xff] (!%p272_p2)  ;;  %7133 = vmatpush3.xpose.msk.msra.mxu0 (!%p272_p2), %vm448_vm2, %v463_v37  ;;  %v6696_v7 = vld [vmem:[%s8680_s6 + $0x28] sm:$0xff] (!%p272_p2)  ;;  %vm8164_vm6 = vmpackc.low (!%p272_p2), %vm2406_vm5, %vm2406_vm5 }
   0xc   : > { %7172 = vmatprep.subr.mxu0 (!%p272_p2), %v7755_v36  ;;  %v6680_v43 = vld [vmem:[%s8679_s5] ss:$0 sm:$0xff] (!%p272_p2)  ;;  %v6699_v8 = vld [vmem:[%s8680_s6 + $0x48] sm:$0xff] (!%p272_p2)  ;;  %vm7633_vm7 = vmpackc.low (!%p272_p2), %vm448_vm2, %vm448_vm2 }
   0xd   : > { %s8686_s29 = smov (!%p308_p3, %s307_s29), 5  ;;  %7578 = vmatpush3.bf16.msra.mxu1 %v7828_v6  ;;  %v6686_v46 = vld [vmem:[%s8680_s6 + $0x40] sm:$0xff]  ;;  %s8688_s28 = smov (!%p313_p4, %s7809_s28), 1  ;;  %v430_v21 = vld [vmem:[%s8676_s2 + $0x8] sm:$0xff] }
   0xe   : > { %s6673_s20 = sshll.u32 %s8686_s29, 3  ;;  %7580 = vmatprep.subr.bf16.mxu1 %v7839_v9  ;;  %s7965_s15 = scalar_lea.vmem %s8675_s1, %s8688_s28  ;;  %v429_v54 = vld [vmem:[%s8676_s2] sm:$0xff] }
   0xf   : > { %s7850_s30 = scalar_lea.vmem %s8674_s0, %s6673_s20  ;;  %v7968_v53 = vld [vmem:[%s7965_s15] ss:$0 sm:$0xff] }
  0x10   : > { %v336_v12 = vld [vmem:[%s7850_s30] sm:$0xff]  ;;  %v337_v14 = vld [vmem:[%s7850_s30 + $0x8] sm:$0xff]  ;;  %v439_v55 = vadd.f32 %v7968_v53, %v429_v54  ;;  %v440_v22 = vadd.f32 %v7968_v53, %v430_v21 }
  0x11   : > { %342 = vperm.xlu0 %7676, %v336_v12   ;;  %7582 = vmatpush3.bf16.msra.mxu1 %v7839_v9 }
  0x12   : > { %7584 = vmatprep.subr.bf16.mxu1 %v7855_v13 }
  0x15   : > { %345 = vperm.xlu0 %7676, %v337_v14   ;;  %7586 = vmatpush3.bf16.msra.mxu1 %v7855_v13 }
  0x16   : > { %7588 = vmatprep.subr.bf16.mxu1 %v7866_v17 }
  0x19   : > { %7590 = vmatpush3.bf16.msra.mxu1 %v7866_v17 }
  0x1a   : > { %7592 = vmatprep.subr.bf16.mxu1 %v7876_v20 }
  0x1d   : > { %7594 = vmatpush3.bf16.msra.mxu1 %v7876_v20 }
  0x1e   : > { %7596 = vmatprep.subr.bf16.mxu1 %v7886_v23 }
  0x21   : > { %7598 = vmatpush3.bf16.msra.mxu1 %v7886_v23 }
  0x22   : > { %7600 = vmatprep.subr.bf16.mxu1 %v7896_v26 }
  0x25   : > { %7602 = vmatpush3.bf16.msra.mxu1 %v7896_v26 }
  0x26   : > { %7137 = vmatprep.subr.mxu1 %v7755_v36 }
  0x90   : > { %v343_v29 = vpop.permute.xlu0 %342 }
  0x91   : > { %vm347_vm0 = vcmp.eq.s32.totalorder %v7901_v28, %v343_v29 }
  0x92   : > { %7129 = vmatprep.mubr.msk.f32.mxu1 %vm347_vm0, %v7754_v30 }
  0x94   : > { %v346_v31 = vpop.permute.xlu0 %345 }
  0x95   : > { %vm348_vm1 = vcmp.eq.s32.totalorder %v7901_v28, %v346_v31 }
  0x96   : > { %7130 = vmatmul.mubr.msk.f32.vlgmr.msra.gmra.mrb[0].mxu1 %vm348_vm1, %v7754_v30 }
  0x97   : > { %7138 = vmatpush3.xpose.msk.msra.mxu1 %vm448_vm2, %v6683_v38  ;;  %7139 = vmatprep.mubr.msk.f32.mxu1 %vm7756_vm3, %v7755_v36  ;;  %v6705_v38 = vld [vmem:[%s8680_s6 + $0x68] sm:$0xff] }
  0x98   : > { %7142 = vmatprep.subr.mxu1 %v7755_v36 }
 0x169   : > { %v7905_v32 = vpop.f32.mrb[0].mxu1 }
 0x16a   : > { %v7907_v33 = vpop.f32.mrb[1].mxu1 }
 0x16b   : > { %v447_v34 = vmul.f32 %v7907_v33, %v7907_v33 }
 0x16d   : > { %v449_v35 = vsel %vm448_vm2, %v447_v34, 0.0 }
 0x16e   : > { %450 = vadd.xlane.f32.xlu1 %v449_v35 }
 0x1fb   : > { %v451_v39 = vpop.xlane.xlu1 %450 }
 0x1fc   : > { %v453_v40 = vmul.f32 0.03125, %v451_v39 }
 0x1fe   : > { %v454_v41 = vadd.f32 1e-06, %v453_v40 }
 0x200   : > { %7678 = vrsqrt.f32 %v454_v41 }
 0x20a   : > { %v7679_v42 = vpop.eup %7678 }
 0x20b   : > { %v456_v44 = vmul.f32 %v7679_v42, %v7907_v33  ;;  %v6692_v42 = vld [vmem:[%s8680_s6 + $0x60] sm:$0xff] }
 0x20d   : > { %v7932_v45 = vmul.f32 %v6680_v43, %v456_v44  ;;  %v6711_v43 = vld [vmem:[%s8680_s6 + $0x30] sm:$0xff] }
 0x20e   : > { %v6708_v44 = vld [vmem:[%s8680_s6 + $0x10] sm:$0xff] }
 0x20f   : > { %7135 = vmatmul.mubr.msk.f32.vlgmr.msra.gmra.mrb[0].mxu0 %vm448_vm2, %v7932_v45  ;;  %7140 = vmatmul.mubr.msk.f32.vlgmr.msra.gmra.mrb[2].mxu1 %vm448_vm2, %v7932_v45 }
 0x210   : > { %7143 = vmatpush3.xpose.msk.msra.mxu1 %vm448_vm2, %v6686_v46  ;;  %7144 = vmatprep.mubr.msk.f32.mxu1 %vm7756_vm3, %v7755_v36 }
 0x211   : > { %7147 = vmatprep.subr.mxu1 %v7755_v36  ;;  %7174 = vmatprep.mubr.msk.f32.mxu0 %vm7756_vm3, %v7755_v36 }
 0x213   : > { %7145 = vmatmul.mubr.msk.f32.vlgmr.msra.gmra.mrb[4].mxu1 %vm448_vm2, %v7932_v45 }
 0x214   : > { %7149 = vmatprep.mubr.msk.f32.mxu1 %vm7756_vm3, %v7755_v36 }
 0x2e2   : > { %v536_v47 = vpop.f32.mrb[0].mxu0  ;;  %v611_v48 = vpop.f32.mrb[2].mxu1 }
 0x2e3   : > { %v7136_v49 = vpop.f32.mrb[1].mxu0  ;;  %v7141_v50 = vpop.f32.mrb[3].mxu1  ;;  %7148 = vmatpush3.xpose.msk.msra.mxu1 %vm690_vm4, %v611_v48  ;;  %v6714_v48 = vld [vmem:[%s8680_s6 + $0x50] sm:$0xff] }
 0x2e4   : > { %7152 = vmatprep.subr.mxu1 %v7755_v36 }
 0x2e6   : > { %v686_v51 = vpop.f32.mrb[4].mxu1  ;;  %7150 = vmatmul.mubr.msk.f32.vlgmr.msra.gmra.mrb[6].mxu1 %vm690_vm4, %v536_v47 }
 0x2e7   : > { %v7146_v52 = vpop.f32.mrb[5].mxu1  ;;  %7153 = vmatpush3.msra.mxu1 %v686_v51  ;;  %7154 = vmatprep.mubr.msk.f32.mxu1 %vm7756_vm3, %v7755_v36 }
 0x2e8   : > { %7157 = vmatprep.subr.mxu1 %v7755_v36 }
 0x3b9   : > { %v763_v56 = vpop.f32.mrb[6].mxu1 }
 0x3ba   : > { %v764_v57 = vadd.f32 %v763_v56, %v439_v55  ;;  %v7151_v58 = vpop.f32.mrb[7].mxu1 }
 0x3bc   : > { %v767_v59 = vsel %vm690_vm4, %v764_v57, -inf }
 0x3bd   : > { %768 = vmax.xlane.f32.xlu1 %v767_v59 }
 0x44a   : > { %v769_v60 = vpop.xlane.xlu1 %768 }
 0x44b   : > { %v770_v61 = vsub.f32 %v764_v57, %v769_v60 }
 0x44d   : > { %v771_v62 = vmul.f32 1.442695, %v770_v61  ;;  %v431_v61 = vld [vmem:[%s8676_s2 + $0x10] sm:$0xff] }
 0x44f   : > { %7680 = vpow2.f32 %v771_v62  ;;  %v441_v62 = vadd.f32 %v7968_v53, %v431_v61  ;;  %v2507_v61 = vmul.f32 %v7905_v32, %v7905_v32 }
 0x459   : > { %v7681_v63 = vpop.eup %7680 }
 0x45a   : > { %v773_v0 = vsel %vm690_vm4, %v7681_v63, 0.0 }
 0x45b   : > { %774 = vadd.xlane.f32.xlu0 %v773_v0 }
 0x4e8   : > { %v775_v1 = vpop.xlane.xlu0 %774 }
 0x4e9   : > { %7682 = vrcp.f32 %v775_v1 }
 0x4f3   : > { %v7683_v2 = vpop.eup %7682 }
 0x4f4   : > { %v777_v3 = vmul.f32 %v7683_v2, %v7681_v63 }
 0x4f6   : > { %7155 = vmatmul.mubr.msk.f32.vlgmr.msra.gmra.mrb[8].mxu1 %vm690_vm4, %v777_v3 }
 0x4f7   : > { %7158 = vmatpush3.xpose.msk.msra.mxu1 %vm448_vm2, %v6693_v5  ;;  %7159 = vmatprep.mubr.msk.f32.mxu1 %vm7756_vm3, %v7755_v36 }
 0x4f8   : > { %7162 = vmatprep.subr.mxu1 %v7755_v36 }
 0x4fa   : > { %7160 = vmatmul.mubr.msk.f32.vlgmr.msra.gmra.mrb[10].mxu1 %vm448_vm2, %v7932_v45 }
 0x4fb   : > { %7163 = vmatpush3.xpose.msk.msra.mxu1 %vm448_vm2, %v6696_v7  ;;  %7164 = vmatprep.mubr.msk.f32.mxu1 %vm7756_vm3, %v7755_v36 }
 0x4fc   : > { %7167 = vmatprep.subr.mxu1 %v7755_v36 }
 0x4fe   : > { %7165 = vmatmul.mubr.msk.f32.vlgmr.msra.gmra.mrb[12].mxu1 %vm448_vm2, %v7932_v45 }
 0x4ff   : > { %7168 = vmatpush3.xpose.msk.msra.mxu1 %vm448_vm2, %v6699_v8  ;;  %7169 = vmatprep.mubr.msk.f32.mxu1 %vm7756_vm3, %v7755_v36 }
 0x500   : > { %7177 = vmatprep.subr.mxu1 %v7755_v36 }
 0x502   : > { %7170 = vmatmul.mubr.msk.f32.vlgmr.msra.gmra.mrb[14].mxu1 %vm448_vm2, %v7932_v45 }
 0x503   : > { %7179 = vmatprep.mubr.msk.f32.mxu1 %vm7756_vm3, %v7755_v36 }
 0x5c9   : > { %v847_v10 = vpop.f32.mrb[8].mxu1 }
 0x5ca   : > { %v7156_v11 = vpop.f32.mrb[9].mxu1 }
 0x5cb   : > { %v6720_v11 = vld [vmem:[%s8680_s6 + $0x70] sm:$0xff] }
 0x5cd   : > { %v924_v12 = vpop.f32.mrb[10].mxu1 }
 0x5ce   : > { %v7161_v14 = vpop.f32.mrb[11].mxu1 }
 0x5d1   : > { %v999_v15 = vpop.f32.mrb[12].mxu1 }
 0x5d2   : > { %v7166_v16 = vpop.f32.mrb[13].mxu1  ;;  %7173 = vmatpush3.xpose.msk.msra.mxu0 %vm690_vm4, %v999_v15 }
 0x5d3   : > { %7182 = vmatprep.subr.mxu0 %v7755_v36  ;;  %v6722_v16 = vld [vmem:[%s8680_s6 + $0x18] sm:$0xff] }
 0x5d5   : > { %v1074_v18 = vpop.f32.mrb[14].mxu1  ;;  %7175 = vmatmul.mubr.msk.f32.vlgmr.msra.gmra.mrb[2].mxu0 %vm690_vm4, %v924_v12 }
 0x5d6   : > { %v7171_v19 = vpop.f32.mrb[15].mxu1  ;;  %7178 = vmatpush3.msra.mxu1 %v1074_v18  ;;  %7184 = vmatprep.mubr.msk.f32.mxu0 %vm7756_vm3, %v7755_v36  ;;  %v6728_v18 = vld [vmem:[%s8680_s6 + $0x58] sm:$0xff] }
 0x5d7   : > { %7187 = vmatprep.subr.mxu1 %v7755_v36  ;;  %7183 = vmatpush3.msra.mxu0 %v6705_v38  ;;  %v6725_v19 = vld [vmem:[%s8680_s6 + $0x38] sm:$0xff] }
 0x5d8   : > { %7192 = vmatprep.subr.mxu0 %v7755_v36 }
 0x6a8   : > { %v1150_v24 = vpop.f32.mrb[2].mxu0 }
 0x6a9   : > { %v1151_v25 = vadd.f32 %v1150_v24, %v440_v22  ;;  %v7176_v27 = vpop.f32.mrb[3].mxu0 }
 0x6ab   : > { %v1154_v29 = vsel %vm690_vm4, %v1151_v25, -inf }
 0x6ac   : > { %1155 = vmax.xlane.f32.xlu1 %v1154_v29 }
 0x739   : > { %v1156_v30 = vpop.xlane.xlu1 %1155 }
 0x73a   : > { %v1157_v31 = vsub.f32 %v1151_v25, %v1156_v30 }
 0x73c   : > { %v1158_v34 = vmul.f32 1.442695, %v1157_v31 }
 0x73e   : > { %7684 = vpow2.f32 %v1158_v34 }
 0x748   : > { %v7685_v35 = vpop.eup %7684 }
 0x749   : > { %v1160_v37 = vsel %vm690_vm4, %v7685_v35, 0.0 }
 0x74a   : > { %1161 = vadd.xlane.f32.xlu1 %v1160_v37 }
 0x7d7   : > { %v1162_v39 = vpop.xlane.xlu1 %1161 }
 0x7d8   : > { %7686 = vrcp.f32 %v1162_v39 }
 0x7e2   : > { %v7687_v40 = vpop.eup %7686 }
 0x7e3   : > { %v1164_v41 = vmul.f32 %v7687_v40, %v7685_v35 }
 0x7e5   : > { %7180 = vmatmul.mubr.msk.f32.vlgmr.msra.gmra.mrb[16].mxu1 %vm690_vm4, %v1164_v41 }
 0x7e6   : > { %7188 = vmatpush3.msra.mxu1 %v6692_v42  ;;  %7189 = vmatprep.mubr.msk.f32.mxu1 %vm7756_vm3, %v7755_v36 }
 0x7e7   : > { %7197 = vmatprep.subr.mxu1 %v7755_v36 }
 0x7e9   : > { %7190 = vmatmul.mubr.msk.f32.vlgmr.msra.gmra.mrb[18].mxu1 %vm690_vm4, %v847_v10 }
 0x7ea   : > { %7199 = vmatprep.mubr.msk.f32.mxu1 %vm7756_vm3, %v7755_v36 }
 0x7ed   : > { %7198 = vmatpush3.xpose.msk.msra.mxu1 %vm448_vm2, %v6711_v43 }
 0x7ee   : > { %7207 = vmatprep.subr.mxu1 %v7755_v36 }
 0x7f0   : > { %7200 = vmatmul.mubr.msk.f32.vlgmr.msra.gmra.mrb[20].mxu1 %vm448_vm2, %v7932_v45 }
 0x7f1   : > { %7209 = vmatprep.mubr.msk.f32.mxu1 %vm7756_vm3, %v7755_v36 }
 0x8b8   : > { %v1234_v46 = vpop.f32.mrb[16].mxu1 }
 0x8b9   : > { %v7181_v47 = vpop.f32.mrb[17].mxu1  ;;  %7185 = vmatmul.mubr.msk.f32.vlgmr.msra.gmra.mrb[4].mxu0 %vm690_vm4, %v1234_v46 }
 0x8ba   : > { %7193 = vmatpush3.xpose.msk.msra.mxu0 %vm448_vm2, %v6708_v44  ;;  %7194 = vmatprep.mubr.msk.f32.mxu0 %vm7756_vm3, %v7755_v36 }
 0x8bb   : > { %7202 = vmatprep.subr.mxu0 %v7755_v36 }
 0x8bc   : > { %v1382_v49 = vpop.f32.mrb[18].mxu1 }
 0x8bd   : > { %v7191_v50 = vpop.f32.mrb[19].mxu1  ;;  %7195 = vmatmul.mubr.msk.f32.vlgmr.msra.gmra.mrb[6].mxu0 %vm448_vm2, %v7932_v45 }
 0x8be   : > { %7203 = vmatpush3.xpose.msk.msra.mxu0 %vm448_vm2, %v6714_v48  ;;  %7204 = vmatprep.mubr.msk.f32.mxu0 %vm7756_vm3, %v7755_v36 }
 0x8bf   : > { %7212 = vmatprep.subr.mxu0 %v7755_v36 }
 0x8c1   : > { %7205 = vmatmul.mubr.msk.f32.vlgmr.msra.gmra.mrb[8].mxu0 %vm448_vm2, %v7932_v45 }
 0x8c2   : > { %7214 = vmatprep.mubr.msk.f32.mxu0 %vm7756_vm3, %v7755_v36 }
 0x8c3   : > { %v1532_v51 = vpop.f32.mrb[20].mxu1 }
 0x8c4   : > { %v7201_v52 = vpop.f32.mrb[21].mxu1  ;;  %7208 = vmatpush3.xpose.msk.msra.mxu1 %vm690_vm4, %v1532_v51 }
 0x8c5   : > { %7217 = vmatprep.subr.mxu1 %v7755_v36 }
 0x98c   : > { %v1309_v54 = vpop.f32.mrb[4].mxu0 }
 0x98d   : > { %v1383_v55 = vadd.f32 %v1382_v49, %v1309_v54  ;;  %v7186_v56 = vpop.f32.mrb[5].mxu0  ;;  %v6734_v49 = vld [vmem:[%s8680_s6 + $0x78] sm:$0xff] }
 0x990   : > { %v1457_v57 = vpop.f32.mrb[6].mxu0 }
 0x991   : > { %v7196_v58 = vpop.f32.mrb[7].mxu0  ;;  %7210 = vmatmul.mubr.msk.f32.vlgmr.msra.gmra.mrb[22].mxu1 %vm690_vm4, %v1457_v57 }
 0x992   : > { %7219 = vmatprep.mubr.msk.f32.mxu1 %vm7756_vm3, %v7755_v36  ;;  %7218 = vmatpush3.msra.mxu1 %v6720_v11 }
 0x993   : > { %7227 = vmatprep.subr.mxu1 %v7755_v36 }
 0x994   : > { %v1607_v59 = vpop.f32.mrb[8].mxu0 }
 0x995   : > { %v7206_v60 = vpop.f32.mrb[9].mxu0  ;;  %7213 = vmatpush3.msra.mxu0 %v1607_v59 }
 0x996   : > { %7222 = vmatprep.subr.mxu0 %v7755_v36 }
 0xa64   : > { %v1683_v63 = vpop.f32.mrb[22].mxu1 }
 0xa65   : > { %v1684_v0 = vadd.f32 %v1683_v63, %v441_v62  ;;  %v7211_v1 = vpop.f32.mrb[23].mxu1  ;;  %v2508_v62 = vsel %vm448_vm2, %v2507_v61, 0.0  ;;  %v2323_v63 = vld [vmem:[%s8681_s7] sm:$0xff] }
 0xa66   : > { %v7757_v1 = vmov 0.0|0.0  }
 0xa67   : > { %v1687_v2 = vsel %vm690_vm4, %v1684_v0, -inf }
 0xa68   : > { %1688 = vmax.xlane.f32.xlu1 %v1687_v2  ;;  %v2325_v2 = vld [vmem:[%s8681_s7 + $0x10] sm:$0xff] }
 0xaf5   : > { %v1689_v3 = vpop.xlane.xlu1 %1688 }
 0xaf6   : > { %v1690_v5 = vsub.f32 %v1684_v0, %v1689_v3  ;;  %v2326_v3 = vld [vmem:[%s8681_s7 + $0x18] sm:$0xff] }
 0xaf8   : > { %v1691_v7 = vmul.f32 1.442695, %v1690_v5  ;;  %v7607_v5 = vpack.c.bf16 %v2326_v3, %v2325_v2 }
 0xafa   : > { %7688 = vpow2.f32 %v1691_v7  ;;  %v6738_v7 = vld [vmem:[%s8681_s7 + $0x20] sm:$0xff] }
 0xb04   : > { %v7689_v8 = vpop.eup %7688 }
 0xb05   : > { %v1693_v10 = vsel %vm690_vm4, %v7689_v8, 0.0 }
 0xb06   : > { %1694 = vadd.xlane.f32.xlu1 %v1693_v10 }
 0xb93   : > { %v1695_v12 = vpop.xlane.xlu1 %1694 }
 0xb94   : > { %7690 = vrcp.f32 %v1695_v12  ;;  %v6740_v12 = vld [vmem:[%s8681_s7 + $0x30] sm:$0xff] }
 0xb9e   : > { %v7691_v14 = vpop.eup %7690 }
 0xb9f   : > { %v1697_v15 = vmul.f32 %v7691_v14, %v7689_v8  ;;  %v6739_v8 = vld [vmem:[%s8681_s7 + $0x28] sm:$0xff]  ;;  %v6741_v14 = vld [vmem:[%s8681_s7 + $0x38] sm:$0xff] }
 0xba0   : > { %v7610_v10 = vpack.c.bf16 %v6739_v8, %v6738_v7 }
 0xba1   : > { %7215 = vmatmul.mubr.msk.f32.vlgmr.msra.gmra.mrb[10].mxu0 %vm690_vm4, %v1697_v15  ;;  %v7614_v15 = vpack.c.bf16 %v6741_v14, %v6740_v12  ;;  %v6765_v12 = vld [vmem:[%s8680_s6 + $0xa8] sm:$0xff] }
 0xba2   : > { %7223 = vmatpush3.xpose.msk.msra.mxu0 %vm448_vm2, %v6722_v16  ;;  %7224 = vmatprep.mubr.msk.f32.mxu0 %vm7756_vm3, %v7755_v36 }
 0xba3   : > { %7232 = vmatprep.subr.mxu0 %v7755_v36 }
 0xba5   : > { %7225 = vmatmul.mubr.msk.f32.vlgmr.msra.gmra.mrb[12].mxu0 %vm448_vm2, %v7932_v45 }
 0xba6   : > { %7233 = vmatpush3.xpose.msk.msra.mxu0 %vm448_vm2, %v6728_v18  ;;  %7234 = vmatprep.mubr.msk.f32.mxu0 %vm7756_vm3, %v7755_v36 }
 0xba7   : > { %7242 = vmatprep.subr.mxu0 %v7755_v36 }
 0xba9   : > { %7235 = vmatmul.mubr.msk.f32.vlgmr.msra.gmra.mrb[14].mxu0 %vm448_vm2, %v7932_v45 }
 0xbaa   : > { %7244 = vmatprep.mubr.msk.f32.mxu0 %vm7756_vm3, %v7755_v36 }
 0xc74   : > { %v1767_v21 = vpop.f32.mrb[10].mxu0 }
 0xc75   : > { %v7216_v22 = vpop.f32.mrb[11].mxu0  ;;  %7220 = vmatmul.mubr.msk.f32.vlgmr.msra.gmra.mrb[24].mxu1 %vm690_vm4, %v1767_v21 }
 0xc76   : > { %7228 = vmatpush3.xpose.msk.msra.mxu1 %vm448_vm2, %v6725_v19  ;;  %7229 = vmatprep.mubr.msk.f32.mxu1 %vm7756_vm3, %v7755_v36 }
 0xc77   : > { %7237 = vmatprep.subr.mxu1 %v7755_v36 }
 0xc78   : > { %v1918_v24 = vpop.f32.mrb[12].mxu0 }
 0xc79   : > { %v7226_v25 = vpop.f32.mrb[13].mxu0  ;;  %7230 = vmatmul.mubr.msk.f32.vlgmr.msra.gmra.mrb[26].mxu1 %vm448_vm2, %v7932_v45  ;;  %v432_v45 = vld [vmem:[%s8676_s2 + $0x18] sm:$0xff] }
 0xc7a   : > { %7239 = vmatprep.mubr.msk.f32.mxu1 %vm7756_vm3, %v7755_v36  ;;  %v442_v38 = vadd.f32 %v7968_v53, %v432_v45 }
 0xc7c   : > { %v2068_v27 = vpop.f32.mrb[14].mxu0 }
 0xc7d   : > { %v7236_v29 = vpop.f32.mrb[15].mxu0  ;;  %7243 = vmatpush3.msra.mxu0 %v2068_v27  ;;  %v6736_v27 = vld [vmem:[%s8679_s5 + $0x1] ss:$0 sm:$0xff] }
 0xc7e   : > { %7603 = vmatprep.subr.bf16.mxu0 %v7757_v1 }
 0xd48   : > { %v1842_v30 = vpop.f32.mrb[24].mxu1 }
 0xd49   : > { %v1846_v31 = vadd.f32 %v1842_v30, %v1383_v55  ;;  %v7221_v34 = vpop.f32.mrb[25].mxu1 }
 0xd4c   : > { %v1993_v35 = vpop.f32.mrb[26].mxu1 }
 0xd4d   : > { %v7231_v37 = vpop.f32.mrb[27].mxu1  ;;  %7238 = vmatpush3.xpose.msk.msra.mxu1 %vm690_vm4, %v1993_v35  ;;  %v6748_v35 = vld [vmem:[%s8679_s5 + $0x3] ss:$0 sm:$0xff] }
 0xd4e   : > { %7247 = vmatprep.subr.mxu1 %v7755_v36 }
 0xd50   : > { %7240 = vmatmul.mubr.msk.f32.vlgmr.msra.gmra.mrb[28].mxu1 %vm690_vm4, %v1918_v24 }
 0xd51   : > { %7249 = vmatprep.mubr.msk.f32.mxu1 %vm7756_vm3, %v7755_v36  ;;  %7248 = vmatpush3.msra.mxu1 %v6734_v49 }
 0xd52   : > { %7609 = vmatprep.subr.bf16.mxu1 %v7757_v1 }
 0xe23   : > { %v2144_v39 = vpop.f32.mrb[28].mxu1 }
 0xe24   : > { %v2145_v40 = vadd.f32 %v2144_v39, %v442_v38  ;;  %v7241_v41 = vpop.f32.mrb[29].mxu1  ;;  %v6752_v38 = vld [vmem:[%s8680_s6 + $0xa0] sm:$0xff] }
 0xe25   : > { %v6755_v39 = vld [vmem:[%s8680_s6 + $0xc0] sm:$0xff] }
 0xe26   : > { %v2148_v42 = vsel %vm690_vm4, %v2145_v40, -inf }
 0xe27   : > { %2149 = vmax.xlane.f32.xlu1 %v2148_v42 }
 0xeb4   : > { %v2150_v43 = vpop.xlane.xlu1 %2149 }
 0xeb5   : > { %v2151_v44 = vsub.f32 %v2145_v40, %v2150_v43 }
 0xeb7   : > { %v2152_v46 = vmul.f32 1.442695, %v2151_v44 }
 0xeb9   : > { %7692 = vpow2.f32 %v2152_v46 }
 0xec3   : > { %v7693_v47 = vpop.eup %7692 }
 0xec4   : > { %v2154_v48 = vsel %vm690_vm4, %v7693_v47, 0.0 }
 0xec5   : > { %2155 = vadd.xlane.f32.xlu1 %v2154_v48  ;;  %v6762_v48 = vld [vmem:[%s8680_s6 + $0x88] sm:$0xff] }
 0xf52   : > { %v2156_v53 = vpop.xlane.xlu1 %2155 }
 0xf53   : > { %7694 = vrcp.f32 %v2156_v53 }
 0xf5d   : > { %v7695_v50 = vpop.eup %7694 }
 0xf5e   : > { %v2158_v51 = vmul.f32 %v7695_v50, %v7693_v47  ;;  %v6768_v50 = vld [vmem:[%s8680_s6 + $0xc8] sm:$0xff] }
 0xf60   : > { %7245 = vmatmul.mubr.msk.f32.vlgmr.msra.gmra.mrb[16].mxu0 %vm690_vm4, %v2158_v51 }
 0xf61   : > { %7260 = vmatprep.mubr.msk.f32.mxu0 %vm7756_vm3, %v7755_v36 }
0x1033   : > { %v2228_v52 = vpop.f32.mrb[16].mxu0 }
0x1034   : > { %v7246_v54 = vpop.f32.mrb[17].mxu0  ;;  %7250 = vmatmul.mubr.msk.f32.vlgmr.msra.gmra.mrb[30].mxu1 %vm690_vm4, %v2228_v52 }
0x1035   : > { %7271 = vmatprep.mubr.msk.f32.mxu1 %vm7756_vm3, %v7755_v36  ;;  %7612 = vmatpush3.bf16.xpose.msk.msra.mxu1 %vm8164_vm6, %v7610_v10  ;;  %v443_v54 = vld [vmem:[%s8677_s3] sm:$0xff] }
0x1036   : > { %7613 = vmatprep.subr.bf16.mxu1 %v7757_v1 }
0x103d   : > { %7616 = vmatpush3.bf16.xpose.msk.msra.mxu1 %vm8164_vm6, %v7614_v15 }
0x103e   : > { %7289 = vmatprep.subr.mxu1 %v7755_v36 }
0x1107   : > { %v2303_v55 = vpop.f32.mrb[30].mxu1 }
0x1108   : > { %v2307_v56 = vadd.f32 %v2303_v55, %v1846_v31  ;;  %v7251_v57 = vpop.f32.mrb[31].mxu1  ;;  %v6749_v31 = vld [vmem:[%s8680_s6 + $0x80] sm:$0xff] }
0x110a   : > { %v8132_v58 = vadd.f32 %v2307_v56, %v7907_v33  ;;  %v2324_v33 = vld [vmem:[%s8681_s7 + $0x8] sm:$0xff] }
0x110b   : > { %v7604_v0 = vpack.c.bf16 %v2324_v33, %v2323_v63 }
0x110c   : > { %v2309_v59 = vmul.f32 %v8132_v58, %v8132_v58 }
0x110d   : > { %7605 = vmatpush3.bf16.msra.mxu0 %v7604_v0 }
0x110e   : > { %v2310_v60 = vsel %vm448_vm2, %v2309_v59, 0.0  ;;  %7606 = vmatprep.subr.bf16.mxu0 %v7757_v1 }
0x110f   : > { %2311 = vadd.xlane.f32.xlu1 %v2310_v60 }
0x1111   : > { %7608 = vmatpush3.bf16.msra.mxu0 %v7607_v5 }
0x1112   : > { %7274 = vmatprep.subr.mxu0 %v7755_v36 }
0x1113   : > { %2509 = vadd.xlane.f32.xlu1 %v2508_v62 }
0x119c   : > { %v2312_v16 = vpop.xlane.xlu1 %2311 }
0x119d   : > { %v2313_v18 = vmul.f32 0.03125, %v2312_v16 }
0x119f   : > { %v2314_v19 = vadd.f32 1e-06, %v2313_v18 }
0x11a0   : > { %v2510_v21 = vpop.xlane.xlu1 %2509 }
0x11a1   : > { %7696 = vrsqrt.f32 %v2314_v19  ;;  %v2511_v22 = vmul.f32 0.03125, %v2510_v21  ;;  %v444_v19 = vld [vmem:[%s8677_s3 + $0x8] sm:$0xff] }
0x11a3   : > { %v2512_v24 = vadd.f32 1e-06, %v2511_v22 }
0x11a5   : > { %7698 = vrsqrt.f32 %v2512_v24 }
0x11ab   : > { %v7697_v25 = vpop.eup %7696 }
0x11ac   : > { %v2316_v29 = vmul.f32 %v7697_v25, %v8132_v58 }
0x11ae   : > { %v2322_v30 = vmul.f32 %v6736_v27, %v2316_v29 }
0x11af   : > { %v7699_v34 = vpop.eup %7698 }
0x11b0   : > { %v2514_v37 = vmul.f32 %v7699_v34, %v7905_v32  ;;  %7261 = vmatmul.mubr.msk.f32.vlgmr.msra.gmra.mrb[18].mxu0 %vm448_vm2, %v2322_v30 }
0x11b1   : > { %7275 = vmatpush3.xpose.msk.msra.mxu0 %vm448_vm2, %v6749_v31  ;;  %7276 = vmatprep.mubr.msk.f32.mxu0 %vm7756_vm3, %v7755_v36 }
0x11b2   : > { %v8195_v45 = vmul.f32 %v6748_v35, %v2514_v37  ;;  %7279 = vmatprep.subr.mxu0 %v7755_v36  ;;  %v6774_v35 = vld [vmem:[%s8680_s6 + $0xe8] sm:$0xff] }
0x11b4   : > { %7277 = vmatmul.mubr.msk.f32.vlgmr.msra.gmra.mrb[20].mxu0 %vm448_vm2, %v8195_v45 }
0x11b5   : > { %7280 = vmatpush3.xpose.msk.msra.mxu0 %vm448_vm2, %v6752_v38  ;;  %7281 = vmatprep.mubr.msk.f32.mxu0 %vm7756_vm3, %v7755_v36 }
0x11b6   : > { %7284 = vmatprep.subr.mxu0 %v7755_v36 }
0x11b8   : > { %7282 = vmatmul.mubr.msk.f32.vlgmr.msra.gmra.mrb[22].mxu0 %vm448_vm2, %v8195_v45 }
0x11b9   : > { %7285 = vmatpush3.xpose.msk.msra.mxu0 %vm448_vm2, %v6755_v39  ;;  %7286 = vmatprep.mubr.msk.f32.mxu0 %vm7756_vm3, %v7755_v36 }
0x11ba   : > { %7294 = vmatprep.subr.mxu0 %v7755_v36 }
0x11bc   : > { %7287 = vmatmul.mubr.msk.f32.vlgmr.msra.gmra.mrb[24].mxu0 %vm448_vm2, %v8195_v45 }
0x11bd   : > { %7296 = vmatprep.mubr.msk.f32.mxu0 %vm7756_vm3, %v7755_v36 }
0x1283   : > { %v2396_v40 = vpop.f32.mrb[18].mxu0 }
0x1284   : > { %v2400_v41 = vmax.f32 %v2396_v40, 0.0  ;;  %v7262_v42 = vpop.f32.mrb[19].mxu0  ;;  %v6761_v40 = vld [vmem:[%s8680_s6 + $0xe0] sm:$0xff] }
0x1285   : > { %v6777_v42 = vld [vmem:[%s8680_s6 + $0x90] sm:$0xff] }
0x1286   : > { %7272 = vmatmul.mubr.msk.f32.vlgmr.msra.gmra.mrb[32].mxu1 %vm2406_vm5, %v2400_v41  ;;  %v6780_v41 = vld [vmem:[%s8680_s6 + $0xb0] sm:$0xff] }
0x1287   : > { %v2595_v43 = vpop.f32.mrb[20].mxu0  ;;  %7291 = vmatprep.mubr.msk.f32.mxu1 %vm7756_vm3, %v7755_v36 }
0x1288   : > { %v7278_v44 = vpop.f32.mrb[21].mxu0 }
0x128b   : > { %v2670_v46 = vpop.f32.mrb[22].mxu0 }
0x128c   : > { %v7283_v47 = vpop.f32.mrb[23].mxu0  ;;  %7290 = vmatpush3.xpose.msk.msra.mxu1 %vm690_vm4, %v2670_v46  ;;  %v6783_v46 = vld [vmem:[%s8680_s6 + $0xd0] sm:$0xff] }
0x128d   : > { %7299 = vmatprep.subr.mxu1 %v7755_v36 }
0x128f   : > { %v2745_v49 = vpop.f32.mrb[24].mxu0  ;;  %7292 = vmatmul.mubr.msk.f32.vlgmr.msra.gmra.mrb[34].mxu1 %vm690_vm4, %v2595_v43 }
0x1290   : > { %v7288_v53 = vpop.f32.mrb[25].mxu0  ;;  %7295 = vmatpush3.msra.mxu0 %v2745_v49  ;;  %7300 = vmatpush3.xpose.msk.msra.mxu1 %vm448_vm2, %v6762_v48 }
0x1291   : > { %7301 = vmatprep.mubr.msk.f32.mxu1 %vm7756_vm3, %v7755_v36  ;;  %7309 = vmatprep.subr.mxu1 %v7755_v36 }
0x1292   : > { %7304 = vmatprep.subr.mxu0 %v7755_v36 }
0x1293   : > { %7302 = vmatmul.mubr.msk.f32.vlgmr.msra.gmra.mrb[36].mxu1 %vm448_vm2, %v8195_v45 }
0x1294   : > { %7310 = vmatpush3.xpose.msk.msra.mxu1 %vm448_vm2, %v6768_v50  ;;  %7311 = vmatprep.mubr.msk.f32.mxu1 %vm7756_vm3, %v7755_v36 }
0x1295   : > { %7319 = vmatprep.subr.mxu1 %v7755_v36 }
0x1297   : > { %7312 = vmatmul.mubr.msk.f32.vlgmr.msra.gmra.mrb[38].mxu1 %vm448_vm2, %v8195_v45 }
0x1298   : > { %7321 = vmatprep.mubr.msk.f32.mxu1 %vm7756_vm3, %v7755_v36 }
0x1359   : > { %v8247_v51 = vpop.f32.mrb[32].mxu1 }
0x135a   : > { %v7273_v52 = vpop.f32.mrb[33].mxu1 }
0x1362   : > { %v2821_v55 = vpop.f32.mrb[34].mxu1 }
0x1363   : > { %v2822_v56 = vadd.f32 %v2821_v55, %v443_v54  ;;  %v7293_v57 = vpop.f32.mrb[35].mxu1 }
0x1365   : > { %v2825_v59 = vsel %vm690_vm4, %v2822_v56, -inf }
0x1366   : > { %2826 = vmax.xlane.f32.xlu0 %v2825_v59  ;;  %v2982_v60 = vpop.f32.mrb[36].mxu1 }
0x1367   : > { %v7303_v61 = vpop.f32.mrb[37].mxu1 }
0x136a   : > { %v3132_v62 = vpop.f32.mrb[38].mxu1 }
0x136b   : > { %v7313_v63 = vpop.f32.mrb[39].mxu1  ;;  %7320 = vmatpush3.msra.mxu1 %v3132_v62 }
0x136c   : > { %7329 = vmatprep.subr.mxu1 %v7755_v36 }
0x13f3   : > { %v2827_v33 = vpop.xlane.xlu0 %2826 }
0x13f4   : > { %v2828_v0 = vsub.f32 %v2822_v56, %v2827_v33 }
0x13f6   : > { %v2829_v2 = vmul.f32 1.442695, %v2828_v0 }
0x13f8   : > { %7700 = vpow2.f32 %v2829_v2 }
0x1402   : > { %v7701_v3 = vpop.eup %7700 }
0x1403   : > { %v2831_v5 = vsel %vm690_vm4, %v7701_v3, 0.0 }
0x1404   : > { %2832 = vadd.xlane.f32.xlu1 %v2831_v5 }
0x1491   : > { %v2833_v7 = vpop.xlane.xlu1 %2832 }
0x1492   : > { %7702 = vrcp.f32 %v2833_v7 }
0x149c   : > { %v7703_v8 = vpop.eup %7702 }
0x149d   : > { %v2835_v10 = vmul.f32 %v7703_v8, %v7701_v3  ;;  %v6789_v8 = vld [vmem:[%s8680_s6 + $0xf0] sm:$0xff] }
0x149f   : > { %7297 = vmatmul.mubr.msk.f32.vlgmr.msra.gmra.mrb[26].mxu0 %vm690_vm4, %v2835_v10 }
0x14a0   : > { %7305 = vmatpush3.xpose.msk.msra.mxu0 %vm448_vm2, %v6765_v12  ;;  %7306 = vmatprep.mubr.msk.f32.mxu0 %vm7756_vm3, %v7755_v36 }
0x14a1   : > { %7314 = vmatprep.subr.mxu0 %v7755_v36 }
0x14a3   : > { %7307 = vmatmul.mubr.msk.f32.vlgmr.msra.gmra.mrb[28].mxu0 %vm448_vm2, %v8195_v45 }
0x14a4   : > { %7316 = vmatprep.mubr.msk.f32.mxu0 %vm7756_vm3, %v7755_v36 }
0x1572   : > { %v2905_v14 = vpop.f32.mrb[26].mxu0 }
0x1573   : > { %v7298_v15 = vpop.f32.mrb[27].mxu0 }
0x1574   : > { %v6791_v15 = vld [vmem:[%s8680_s6 + $0x98] sm:$0xff] }
0x1576   : > { %v3057_v16 = vpop.f32.mrb[28].mxu0 }
0x1577   : > { %v7308_v18 = vpop.f32.mrb[29].mxu0  ;;  %7315 = vmatpush3.xpose.msk.msra.mxu0 %vm690_vm4, %v3057_v16  ;;  %v6797_v16 = vld [vmem:[%s8680_s6 + $0xd8] sm:$0xff] }
0x1578   : > { %7324 = vmatprep.subr.mxu0 %v7755_v36  ;;  %v6794_v18 = vld [vmem:[%s8680_s6 + $0xb8] sm:$0xff] }
0x157a   : > { %7317 = vmatmul.mubr.msk.f32.vlgmr.msra.gmra.mrb[30].mxu0 %vm690_vm4, %v2982_v60  ;;  %v445_v60 = vld [vmem:[%s8677_s3 + $0x10] sm:$0xff] }
0x157b   : > { %7326 = vmatprep.mubr.msk.f32.mxu0 %vm7756_vm3, %v7755_v36  ;;  %7325 = vmatpush3.msra.mxu0 %v6774_v35 }
0x157c   : > { %7334 = vmatprep.subr.mxu0 %v7755_v36 }
0x164d   : > { %v3208_v21 = vpop.f32.mrb[30].mxu0 }
0x164e   : > { %v3209_v22 = vadd.f32 %v3208_v21, %v444_v19  ;;  %v7318_v24 = vpop.f32.mrb[31].mxu0 }
0x1650   : > { %v3212_v25 = vsel %vm690_vm4, %v3209_v22, -inf }
0x1651   : > { %3213 = vmax.xlane.f32.xlu0 %v3212_v25 }
0x16de   : > { %v3214_v27 = vpop.xlane.xlu0 %3213 }
0x16df   : > { %v3215_v29 = vsub.f32 %v3209_v22, %v3214_v27 }
0x16e1   : > { %v3216_v30 = vmul.f32 1.442695, %v3215_v29 }
0x16e3   : > { %7704 = vpow2.f32 %v3216_v30 }
0x16ed   : > { %v7705_v31 = vpop.eup %7704 }
0x16ee   : > { %v3218_v34 = vsel %vm690_vm4, %v7705_v31, 0.0 }
0x16ef   : > { %3219 = vadd.xlane.f32.xlu1 %v3218_v34 }
0x177c   : > { %v3220_v37 = vpop.xlane.xlu1 %3219 }
0x177d   : > { %7706 = vrcp.f32 %v3220_v37  ;;  %v2492_v37 = vadd.f32 %v8247_v51, %v8132_v58  ;;  %v6803_v58 = vld [vmem:[%s8680_s6 + $0xf8] sm:$0xff] }
0x1787   : > { %v7707_v38 = vpop.eup %7706 }
0x1788   : > { %v3222_v39 = vmul.f32 %v7707_v38, %v7705_v31 }
0x178a   : > { %7322 = vmatmul.mubr.msk.f32.vlgmr.msra.gmra.mrb[40].mxu1 %vm690_vm4, %v3222_v39 }
0x178b   : > { %7330 = vmatpush3.msra.mxu1 %v6761_v40  ;;  %7331 = vmatprep.mubr.msk.f32.mxu1 %vm7756_vm3, %v7755_v36 }
0x178c   : > { %7339 = vmatprep.subr.mxu1 %v7755_v36 }
0x178e   : > { %7332 = vmatmul.mubr.msk.f32.vlgmr.msra.gmra.mrb[42].mxu1 %vm690_vm4, %v2905_v14 }
0x178f   : > { %7341 = vmatprep.mubr.msk.f32.mxu1 %vm7756_vm3, %v7755_v36 }
0x1792   : > { %7340 = vmatpush3.xpose.msk.msra.mxu1 %vm448_vm2, %v6780_v41 }
0x1793   : > { %7349 = vmatprep.subr.mxu1 %v7755_v36 }
0x1795   : > { %7342 = vmatmul.mubr.msk.f32.vlgmr.msra.gmra.mrb[44].mxu1 %vm448_vm2, %v8195_v45 }
0x1796   : > { %7351 = vmatprep.mubr.msk.f32.mxu1 %vm7756_vm3, %v7755_v36 }
0x185d   : > { %v3292_v43 = vpop.f32.mrb[40].mxu1 }
0x185e   : > { %v7323_v44 = vpop.f32.mrb[41].mxu1  ;;  %7327 = vmatmul.mubr.msk.f32.vlgmr.msra.gmra.mrb[32].mxu0 %vm690_vm4, %v3292_v43 }
0x185f   : > { %7335 = vmatpush3.xpose.msk.msra.mxu0 %vm448_vm2, %v6777_v42  ;;  %7336 = vmatprep.mubr.msk.f32.mxu0 %vm7756_vm3, %v7755_v36  ;;  %v2493_v42 = vmul.f32 %v2492_v37, %v2492_v37 }
0x1860   : > { %7344 = vmatprep.subr.mxu0 %v7755_v36 }
0x1861   : > { %v3440_v47 = vpop.f32.mrb[42].mxu1  ;;  %v2494_v43 = vsel %vm448_vm2, %v2493_v42, 0.0 }
0x1862   : > { %v7333_v48 = vpop.f32.mrb[43].mxu1  ;;  %7337 = vmatmul.mubr.msk.f32.vlgmr.msra.gmra.mrb[34].mxu0 %vm448_vm2, %v8195_v45 }
0x1863   : > { %7345 = vmatpush3.xpose.msk.msra.mxu0 %vm448_vm2, %v6783_v46  ;;  %7346 = vmatprep.mubr.msk.f32.mxu0 %vm7756_vm3, %v7755_v36 }
0x1864   : > { %7354 = vmatprep.subr.mxu0 %v7755_v36 }
0x1866   : > { %7347 = vmatmul.mubr.msk.f32.vlgmr.msra.gmra.mrb[36].mxu0 %vm448_vm2, %v8195_v45 }
0x1867   : > { %7356 = vmatprep.mubr.msk.f32.mxu0 %vm7756_vm3, %v7755_v36 }
0x1868   : > { %v3590_v49 = vpop.f32.mrb[44].mxu1 }
0x1869   : > { %v7343_v53 = vpop.f32.mrb[45].mxu1  ;;  %7350 = vmatpush3.xpose.msk.msra.mxu1 %vm690_vm4, %v3590_v49 }
0x186a   : > { %7359 = vmatprep.subr.mxu1 %v7755_v36 }
0x1931   : > { %v3367_v50 = vpop.f32.mrb[32].mxu0 }
0x1932   : > { %v3441_v52 = vadd.f32 %v3440_v47, %v3367_v50  ;;  %v7328_v54 = vpop.f32.mrb[33].mxu0 }
0x1935   : > { %v3515_v55 = vpop.f32.mrb[34].mxu0 }
0x1936   : > { %v7338_v56 = vpop.f32.mrb[35].mxu0  ;;  %7352 = vmatmul.mubr.msk.f32.vlgmr.msra.gmra.mrb[46].mxu1 %vm690_vm4, %v3515_v55 }
0x1937   : > { %7361 = vmatprep.mubr.msk.f32.mxu1 %vm7756_vm3, %v7755_v36  ;;  %7360 = vmatpush3.msra.mxu1 %v6789_v8 }
0x1938   : > { %7369 = vmatprep.subr.mxu1 %v7755_v36 }
0x1939   : > { %v3665_v57 = vpop.f32.mrb[36].mxu0 }
0x193a   : > { %v7348_v59 = vpop.f32.mrb[37].mxu0  ;;  %7355 = vmatpush3.msra.mxu0 %v3665_v57 }
0x193b   : > { %7364 = vmatprep.subr.mxu0 %v7755_v36  ;;  %v6809_v59 = vld [vmem:[%s8680_s6 + $0x120] sm:$0xff] }
0x1a09   : > { %v3741_v61 = vpop.f32.mrb[46].mxu1 }
0x1a0a   : > { %v3742_v62 = vadd.f32 %v3741_v61, %v445_v60  ;;  %v7353_v63 = vpop.f32.mrb[47].mxu1  ;;  %v6747_v60 = vld [vmem:[%s8679_s5 + $0x2] ss:$0 sm:$0xff] }
0x1a0c   : > { %v3745_v33 = vsel %vm690_vm4, %v3742_v62, -inf }
0x1a0d   : > { %3746 = vmax.xlane.f32.xlu0 %v3745_v33 }
0x1a9a   : > { %v3747_v0 = vpop.xlane.xlu0 %3746 }
0x1a9b   : > { %v3748_v2 = vsub.f32 %v3742_v62, %v3747_v0 }
0x1a9d   : > { %v3749_v3 = vmul.f32 1.442695, %v3748_v2 }
0x1a9f   : > { %7708 = vpow2.f32 %v3749_v3 }
0x1aa9   : > { %v7709_v5 = vpop.eup %7708 }
0x1aaa   : > { %v3751_v7 = vsel %vm690_vm4, %v7709_v5, 0.0 }
0x1aab   : > { %3752 = vadd.xlane.f32.xlu1 %v3751_v7 }
0x1b38   : > { %v3753_v10 = vpop.xlane.xlu1 %3752 }
0x1b39   : > { %7710 = vrcp.f32 %v3753_v10 }
0x1b43   : > { %v7711_v12 = vpop.eup %7710 }
0x1b44   : > { %v3755_v14 = vmul.f32 %v7711_v12, %v7709_v5  ;;  %v6806_v12 = vld [vmem:[%s8680_s6 + $0x100] sm:$0xff] }
0x1b46   : > { %7357 = vmatmul.mubr.msk.f32.vlgmr.msra.gmra.mrb[38].mxu0 %vm690_vm4, %v3755_v14 }
0x1b47   : > { %7365 = vmatpush3.xpose.msk.msra.mxu0 %vm448_vm2, %v6791_v15  ;;  %7366 = vmatprep.mubr.msk.f32.mxu0 %vm7756_vm3, %v7755_v36 }
0x1b48   : > { %7374 = vmatprep.subr.mxu0 %v7755_v36 }
0x1b4a   : > { %7367 = vmatmul.mubr.msk.f32.vlgmr.msra.gmra.mrb[40].mxu0 %vm448_vm2, %v8195_v45 }
0x1b4b   : > { %7375 = vmatpush3.xpose.msk.msra.mxu0 %vm448_vm2, %v6797_v16  ;;  %7376 = vmatprep.mubr.msk.f32.mxu0 %vm7756_vm3, %v7755_v36 }
0x1b4c   : > { %7384 = vmatprep.subr.mxu0 %v7755_v36 }
0x1b4e   : > { %7377 = vmatmul.mubr.msk.f32.vlgmr.msra.gmra.mrb[42].mxu0 %vm448_vm2, %v8195_v45 }
0x1b4f   : > { %7386 = vmatprep.mubr.msk.f32.mxu0 %vm7756_vm3, %v7755_v36 }
0x1c19   : > { %v3825_v19 = vpop.f32.mrb[38].mxu0 }
0x1c1a   : > { %v7358_v21 = vpop.f32.mrb[39].mxu0  ;;  %7362 = vmatmul.mubr.msk.f32.vlgmr.msra.gmra.mrb[48].mxu1 %vm690_vm4, %v3825_v19 }
0x1c1b   : > { %7370 = vmatpush3.xpose.msk.msra.mxu1 %vm448_vm2, %v6794_v18  ;;  %7371 = vmatprep.mubr.msk.f32.mxu1 %vm7756_vm3, %v7755_v36  ;;  %v6805_v18 = vld [vmem:[%s8679_s5 + $0x4] ss:$0 sm:$0xff] }
0x1c1c   : > { %7379 = vmatprep.subr.mxu1 %v7755_v36 }
0x1c1d   : > { %v3976_v22 = vpop.f32.mrb[40].mxu0 }
0x1c1e   : > { %v7368_v24 = vpop.f32.mrb[41].mxu0  ;;  %7372 = vmatmul.mubr.msk.f32.vlgmr.msra.gmra.mrb[50].mxu1 %vm448_vm2, %v8195_v45  ;;  %v446_v45 = vld [vmem:[%s8677_s3 + $0x18] sm:$0xff] }
0x1c1f   : > { %7381 = vmatprep.mubr.msk.f32.mxu1 %vm7756_vm3, %v7755_v36  ;;  %v6819_v24 = vld [vmem:[%s8680_s6 + $0x108] sm:$0xff] }
0x1c21   : > { %v4126_v25 = vpop.f32.mrb[42].mxu0 }
0x1c22   : > { %v7378_v27 = vpop.f32.mrb[43].mxu0  ;;  %7385 = vmatpush3.msra.mxu0 %v4126_v25 }
0x1c23   : > { %7394 = vmatprep.subr.mxu0 %v7755_v36 }
0x1ced   : > { %v3900_v29 = vpop.f32.mrb[48].mxu1 }
0x1cee   : > { %v3904_v30 = vadd.f32 %v3900_v29, %v3441_v52  ;;  %v7363_v31 = vpop.f32.mrb[49].mxu1  ;;  %v6825_v29 = vld [vmem:[%s8680_s6 + $0x148] sm:$0xff] }
0x1cf1   : > { %v4051_v34 = vpop.f32.mrb[50].mxu1 }
0x1cf2   : > { %v7373_v35 = vpop.f32.mrb[51].mxu1  ;;  %7380 = vmatpush3.xpose.msk.msra.mxu1 %vm690_vm4, %v4051_v34 }
0x1cf3   : > { %7389 = vmatprep.subr.mxu1 %v7755_v36  ;;  %v8462_v35 = vld [vmem:[%s7965_s15] ss:$0 sm:$0xff] }
0x1cf5   : > { %7382 = vmatmul.mubr.msk.f32.vlgmr.msra.gmra.mrb[52].mxu1 %vm690_vm4, %v3976_v22  ;;  %v6812_v22 = vld [vmem:[%s8680_s6 + $0x140] sm:$0xff] }
0x1cf6   : > { %7391 = vmatprep.mubr.msk.f32.mxu1 %vm7756_vm3, %v7755_v36  ;;  %7390 = vmatpush3.msra.mxu1 %v6803_v58 }
0x1cf7   : > { %7399 = vmatprep.subr.mxu1 %v7755_v36 }
0x1dc8   : > { %v4202_v38 = vpop.f32.mrb[52].mxu1 }
0x1dc9   : > { %v4203_v39 = vadd.f32 %v4202_v38, %v446_v45  ;;  %v7383_v40 = vpop.f32.mrb[53].mxu1 }
0x1dcb   : > { %v4206_v41 = vsel %vm690_vm4, %v4203_v39, -inf }
0x1dcc   : > { %4207 = vmax.xlane.f32.xlu0 %v4206_v41 }
0x1dd0   : > { %2495 = vadd.xlane.f32.xlu0 %v2494_v43 }
0x1e59   : > { %v4208_v44 = vpop.xlane.xlu0 %4207 }
0x1e5a   : > { %v4209_v46 = vsub.f32 %v4203_v39, %v4208_v44 }
0x1e5c   : > { %v4210_v47 = vmul.f32 1.442695, %v4209_v46 }
0x1e5d   : > { %v2496_v52 = vpop.xlane.xlu0 %2495 }
0x1e5e   : > { %7712 = vpow2.f32 %v4210_v47  ;;  %v2497_v54 = vmul.f32 0.03125, %v2496_v52 }
0x1e60   : > { %v2498_v55 = vadd.f32 1e-06, %v2497_v54 }
0x1e68   : > { %v7713_v48 = vpop.eup %7712 }
0x1e69   : > { %v4212_v49 = vsel %vm690_vm4, %v7713_v48, 0.0 }
0x1e6a   : > { %4213 = vadd.xlane.f32.xlu1 %v4212_v49 }
0x1ef7   : > { %v4214_v51 = vpop.xlane.xlu1 %4213 }
0x1ef8   : > { %7714 = vrcp.f32 %v4214_v51 }
0x1ef9   : > { %7716 = vrsqrt.f32 %v2498_v55 }
0x1f02   : > { %v7715_v53 = vpop.eup %7714 }
0x1f03   : > { %v4216_v50 = vmul.f32 %v7715_v53, %v7713_v48  ;;  %v7717_v56 = vpop.eup %7716  ;;  %v6822_v53 = vld [vmem:[%s8680_s6 + $0x128] sm:$0xff] }
0x1f04   : > { %v2500_v57 = vmul.f32 %v7717_v56, %v2492_v37 }
0x1f05   : > { %7387 = vmatmul.mubr.msk.f32.vlgmr.msra.gmra.mrb[44].mxu0 %vm690_vm4, %v4216_v50 }
0x1f06   : > { %7396 = vmatprep.mubr.msk.f32.mxu0 %vm7756_vm3, %v7755_v36  ;;  %v8400_v63 = vmul.f32 %v6747_v60, %v2500_v57  ;;  %7395 = vmatpush3.xpose.msk.msra.mxu0 %vm448_vm2, %v6806_v12  ;;  %v6818_v12 = vld [vmem:[%s8680_s6 + $0x160] sm:$0xff] }
0x1f07   : > { %7404 = vmatprep.subr.mxu0 %v7755_v36 }
0x1fd8   : > { %v4286_v61 = vpop.f32.mrb[44].mxu0 }
0x1fd9   : > { %v7388_v62 = vpop.f32.mrb[45].mxu0  ;;  %7392 = vmatmul.mubr.msk.f32.vlgmr.msra.gmra.mrb[54].mxu1 %vm690_vm4, %v4286_v61 }
0x1fda   : > { %7400 = vmatpush3.xpose.msk.msra.mxu1 %vm448_vm2, %v6809_v59  ;;  %7401 = vmatprep.mubr.msk.f32.mxu1 %vm7756_vm3, %v7755_v36 }
0x1fdb   : > { %7409 = vmatprep.subr.mxu1 %v7755_v36 }
0x1fdd   : > { %7402 = vmatmul.mubr.msk.f32.vlgmr.msra.gmra.mrb[56].mxu1 %vm448_vm2, %v8400_v63 }
0x1fde   : > { %7411 = vmatprep.mubr.msk.f32.mxu1 %vm7756_vm3, %v7755_v36 }
0x20ac   : > { %v4361_v33 = vpop.f32.mrb[54].mxu1 }
0x20ad   : > { %v4365_v0 = vadd.f32 %v4361_v33, %v3904_v30  ;;  %v7393_v2 = vpop.f32.mrb[55].mxu1 }
0x20af   : > { %v8408_v3 = vadd.f32 %v7905_v32, %v4365_v0 }
0x20b0   : > { %v4533_v5 = vpop.f32.mrb[56].mxu1 }
0x20b1   : > { %v7403_v7 = vpop.f32.mrb[57].mxu1  ;;  %7410 = vmatpush3.xpose.msk.msra.mxu1 %vm690_vm4, %v4533_v5  ;;  %v4367_v8 = vmul.f32 %v8408_v3, %v8408_v3  ;;  %v6831_v5 = vld [vmem:[%s8680_s6 + $0x168] sm:$0xff] }
0x20b2   : > { %7419 = vmatprep.subr.mxu1 %v7755_v36 }
0x20b3   : > { %v4368_v10 = vsel %vm448_vm2, %v4367_v8, 0.0 }
0x20b4   : > { %4369 = vadd.xlane.f32.xlu1 %v4368_v10 }
0x2141   : > { %v4370_v32 = vpop.xlane.xlu1 %4369 }
0x2142   : > { %v4371_v14 = vmul.f32 0.03125, %v4370_v32  ;;  %v6837_v32 = vld [vmem:[%s8680_s6 + $0x130] sm:$0xff] }
0x2144   : > { %v4372_v15 = vadd.f32 1e-06, %v4371_v14  ;;  %v6834_v14 = vld [vmem:[%s8680_s6 + $0x110] sm:$0xff] }
0x2146   : > { %7718 = vrsqrt.f32 %v4372_v15 }
0x2150   : > { %v7719_v16 = vpop.eup %7718 }
0x2151   : > { %v4374_v19 = vmul.f32 %v7719_v16, %v8408_v3 }
0x2153   : > { %v8424_v21 = vmul.f32 %v6805_v18, %v4374_v19  ;;  %v6840_v18 = vld [vmem:[%s8680_s6 + $0x150] sm:$0xff] }
0x2155   : > { %7397 = vmatmul.mubr.msk.f32.vlgmr.msra.gmra.mrb[46].mxu0 %vm448_vm2, %v8424_v21 }
0x2156   : > { %7405 = vmatpush3.xpose.msk.msra.mxu0 %vm448_vm2, %v6812_v22  ;;  %7406 = vmatprep.mubr.msk.f32.mxu0 %vm7756_vm3, %v7755_v36 }
0x2157   : > { %7414 = vmatprep.subr.mxu0 %v7755_v36 }
0x2159   : > { %7407 = vmatmul.mubr.msk.f32.vlgmr.msra.gmra.mrb[48].mxu0 %vm448_vm2, %v8400_v63 }
0x215a   : > { %7416 = vmatprep.mubr.msk.f32.mxu0 %vm7756_vm3, %v7755_v36 }
0x2228   : > { %v4455_v25 = vpop.f32.mrb[46].mxu0 }
0x2229   : > { %v7398_v27 = vpop.f32.mrb[47].mxu0  ;;  %7412 = vmatmul.mubr.msk.f32.vlgmr.msra.gmra.mrb[58].mxu1 %vm690_vm4, %v4455_v25 }
0x222a   : > { %7420 = vmatpush3.xpose.msk.msra.mxu1 %vm448_vm2, %v6819_v24  ;;  %7421 = vmatprep.mubr.msk.f32.mxu1 %vm7756_vm3, %v7755_v36 }
0x222b   : > { %7429 = vmatprep.subr.mxu1 %v7755_v36 }
0x222c   : > { %v4608_v30 = vpop.f32.mrb[48].mxu0 }
0x222d   : > { %v7408_v31 = vpop.f32.mrb[49].mxu0  ;;  %7415 = vmatpush3.msra.mxu0 %v4608_v30  ;;  %7422 = vmatmul.mubr.msk.f32.vlgmr.msra.gmra.mrb[60].mxu1 %vm448_vm2, %v8424_v21 }
0x222e   : > { %7430 = vmatpush3.xpose.msk.msra.mxu1 %vm448_vm2, %v6825_v29  ;;  %7431 = vmatprep.mubr.msk.f32.mxu1 %vm7756_vm3, %v7755_v36 }
0x222f   : > { %7439 = vmatprep.subr.mxu1 %v7755_v36  ;;  %7424 = vmatprep.subr.mxu0 %v7755_v36 }
0x2231   : > { %7432 = vmatmul.mubr.msk.f32.vlgmr.msra.gmra.mrb[62].mxu1 %vm448_vm2, %v8400_v63 }
0x2232   : > { %7441 = vmatprep.mubr.msk.f32.mxu1 %vm7756_vm3, %v7755_v36 }
0x22fc   : > { %v4684_v34 = vpop.f32.mrb[58].mxu1 }
0x22fd   : > { %v4685_v45 = vadd.f32 %v8462_v35, %v4684_v34  ;;  %v7413_v37 = vpop.f32.mrb[59].mxu1 }
0x22ff   : > { %v4688_v38 = vsel %vm690_vm4, %v4685_v45, -inf }
0x2300   : > { %4689 = vmax.xlane.f32.xlu0 %v4688_v38  ;;  %v4845_v39 = vpop.f32.mrb[60].mxu1 }
0x2301   : > { %v7423_v40 = vpop.f32.mrb[61].mxu1 }
0x2304   : > { %v4995_v41 = vpop.f32.mrb[62].mxu1 }
0x2305   : > { %v7433_v42 = vpop.f32.mrb[63].mxu1  ;;  %7440 = vmatpush3.msra.mxu1 %v4995_v41 }
0x2306   : > { %7449 = vmatprep.subr.mxu1 %v7755_v36 }
0x238d   : > { %v4690_v43 = vpop.xlane.xlu0 %4689 }
0x238e   : > { %v4691_v44 = vsub.f32 %v4685_v45, %v4690_v43 }
0x2390   : > { %v4692_v46 = vmul.f32 1.442695, %v4691_v44 }
0x2392   : > { %7720 = vpow2.f32 %v4692_v46 }
0x239c   : > { %v7721_v47 = vpop.eup %7720 }
0x239d   : > { %v4694_v48 = vsel %vm690_vm4, %v7721_v47, 0.0 }
0x239e   : > { %4695 = vadd.xlane.f32.xlu1 %v4694_v48  ;;  %v6846_v48 = vld [vmem:[%s8680_s6 + $0x170] sm:$0xff] }
0x242b   : > { %v4696_v49 = vpop.xlane.xlu1 %4695 }
0x242c   : > { %7722 = vrcp.f32 %v4696_v49 }
0x2436   : > { %v7723_v58 = vpop.eup %7722 }
0x2437   : > { %v4698_v51 = vmul.f32 %v7723_v58, %v7721_v47 }
0x2439   : > { %7417 = vmatmul.mubr.msk.f32.vlgmr.msra.gmra.mrb[50].mxu0 %vm690_vm4, %v4698_v51 }
0x243a   : > { %7425 = vmatpush3.xpose.msk.msra.mxu0 %vm448_vm2, %v6822_v53  ;;  %7426 = vmatprep.mubr.msk.f32.mxu0 %vm7756_vm3, %v7755_v36  ;;  %v6848_v53 = vld [vmem:[%s8680_s6 + $0x118] sm:$0xff] }
0x243b   : > { %7434 = vmatprep.subr.mxu0 %v7755_v36 }
0x243d   : > { %7427 = vmatmul.mubr.msk.f32.vlgmr.msra.gmra.mrb[52].mxu0 %vm448_vm2, %v8400_v63 }
0x243e   : > { %7436 = vmatprep.mubr.msk.f32.mxu0 %vm7756_vm3, %v7755_v36 }
0x250c   : > { %v4768_v50 = vpop.f32.mrb[50].mxu0 }
0x250d   : > { %v7418_v52 = vpop.f32.mrb[51].mxu0 }
0x250e   : > { %v6851_v52 = vld [vmem:[%s8680_s6 + $0x138] sm:$0xff] }
0x2510   : > { %v4920_v54 = vpop.f32.mrb[52].mxu0 }
0x2511   : > { %v7428_v55 = vpop.f32.mrb[53].mxu0  ;;  %7435 = vmatpush3.xpose.msk.msra.mxu0 %vm690_vm4, %v4920_v54 }
0x2512   : > { %7444 = vmatprep.subr.mxu0 %v7755_v36 }
0x2514   : > { %7437 = vmatmul.mubr.msk.f32.vlgmr.msra.gmra.mrb[54].mxu0 %vm690_vm4, %v4845_v39 }
0x2515   : > { %7446 = vmatprep.mubr.msk.f32.mxu0 %vm7756_vm3, %v7755_v36  ;;  %7445 = vmatpush3.msra.mxu0 %v6831_v5 }
0x2516   : > { %7454 = vmatprep.subr.mxu0 %v7755_v36 }
0x25e7   : > { %v5071_v56 = vpop.f32.mrb[54].mxu0 }
0x25e8   : > { %v5072_v57 = vadd.f32 %v8462_v35, %v5071_v56  ;;  %v7438_v59 = vpop.f32.mrb[55].mxu0 }
0x25ea   : > { %v5075_v60 = vsel %vm690_vm4, %v5072_v57, -inf }
0x25eb   : > { %5076 = vmax.xlane.f32.xlu0 %v5075_v60 }
0x2678   : > { %v5077_v61 = vpop.xlane.xlu0 %5076 }
0x2679   : > { %v5078_v62 = vsub.f32 %v5072_v57, %v5077_v61 }
0x267b   : > { %v5079_v33 = vmul.f32 1.442695, %v5078_v62 }
0x267d   : > { %7724 = vpow2.f32 %v5079_v33 }
0x2687   : > { %v7725_v0 = vpop.eup %7724 }
0x2688   : > { %v5081_v2 = vsel %vm690_vm4, %v7725_v0, 0.0 }
0x2689   : > { %5082 = vadd.xlane.f32.xlu1 %v5081_v2 }
0x2716   : > { %v5083_v7 = vpop.xlane.xlu1 %5082 }
0x2717   : > { %7726 = vrcp.f32 %v5083_v7 }
0x2721   : > { %v7727_v8 = vpop.eup %7726 }
0x2722   : > { %v5085_v10 = vmul.f32 %v7727_v8, %v7725_v0 }
0x2724   : > { %7442 = vmatmul.mubr.msk.f32.vlgmr.msra.gmra.mrb[64].mxu1 %vm690_vm4, %v5085_v10 }
0x2725   : > { %7450 = vmatpush3.msra.mxu1 %v6818_v12  ;;  %7451 = vmatprep.mubr.msk.f32.mxu1 %vm7756_vm3, %v7755_v36 }
0x2726   : > { %7459 = vmatprep.subr.mxu1 %v7755_v36 }
0x2728   : > { %7452 = vmatmul.mubr.msk.f32.vlgmr.msra.gmra.mrb[66].mxu1 %vm690_vm4, %v4768_v50  ;;  %v6854_v50 = vld [vmem:[%s8680_s6 + $0x158] sm:$0xff] }
0x2729   : > { %7461 = vmatprep.mubr.msk.f32.mxu1 %vm7756_vm3, %v7755_v36 }
0x272c   : > { %7460 = vmatpush3.xpose.msk.msra.mxu1 %vm448_vm2, %v6837_v32 }
0x272d   : > { %7469 = vmatprep.subr.mxu1 %v7755_v36 }
0x272f   : > { %7462 = vmatmul.mubr.msk.f32.vlgmr.msra.gmra.mrb[68].mxu1 %vm448_vm2, %v8400_v63 }
0x2730   : > { %7471 = vmatprep.mubr.msk.f32.mxu1 %vm7756_vm3, %v7755_v36 }
0x27f7   : > { %v5155_v15 = vpop.f32.mrb[64].mxu1 }
0x27f8   : > { %v7443_v16 = vpop.f32.mrb[65].mxu1  ;;  %7447 = vmatmul.mubr.msk.f32.vlgmr.msra.gmra.mrb[56].mxu0 %vm690_vm4, %v5155_v15  ;;  %v6860_v15 = vld [vmem:[%s8680_s6 + $0x178] sm:$0xff] }
0x27f9   : > { %7455 = vmatpush3.xpose.msk.msra.mxu0 %vm448_vm2, %v6834_v14  ;;  %7456 = vmatprep.mubr.msk.f32.mxu0 %vm7756_vm3, %v7755_v36 }
0x27fa   : > { %7464 = vmatprep.subr.mxu0 %v7755_v36 }
0x27fb   : > { %v5303_v19 = vpop.f32.mrb[66].mxu1 }
0x27fc   : > { %v7453_v22 = vpop.f32.mrb[67].mxu1  ;;  %7457 = vmatmul.mubr.msk.f32.vlgmr.msra.gmra.mrb[58].mxu0 %vm448_vm2, %v8424_v21 }
0x27fd   : > { %7465 = vmatpush3.xpose.msk.msra.mxu0 %vm448_vm2, %v6840_v18  ;;  %7466 = vmatprep.mubr.msk.f32.mxu0 %vm7756_vm3, %v7755_v36 }
0x27fe   : > { %7474 = vmatprep.subr.mxu0 %v7755_v36 }
0x2800   : > { %7467 = vmatmul.mubr.msk.f32.vlgmr.msra.gmra.mrb[60].mxu0 %vm448_vm2, %v8400_v63 }
0x2801   : > { %7476 = vmatprep.mubr.msk.f32.mxu0 %vm7756_vm3, %v7755_v36 }
0x2802   : > { %v5453_v24 = vpop.f32.mrb[68].mxu1 }
0x2803   : > { %v7463_v25 = vpop.f32.mrb[69].mxu1  ;;  %7470 = vmatpush3.xpose.msk.msra.mxu1 %vm690_vm4, %v5453_v24 }
0x2804   : > { %7479 = vmatprep.subr.mxu1 %v7755_v36 }
0x28cb   : > { %v5230_v27 = vpop.f32.mrb[56].mxu0 }
0x28cc   : > { %v5304_v29 = vadd.f32 %v5303_v19, %v5230_v27  ;;  %v7448_v30 = vpop.f32.mrb[57].mxu0 }
0x28cf   : > { %v5378_v31 = vpop.f32.mrb[58].mxu0 }
0x28d0   : > { %v7458_v34 = vpop.f32.mrb[59].mxu0  ;;  %7472 = vmatmul.mubr.msk.f32.vlgmr.msra.gmra.mrb[70].mxu1 %vm690_vm4, %v5378_v31 }
0x28d1   : > { %7481 = vmatprep.mubr.msk.f32.mxu1 %vm7756_vm3, %v7755_v36  ;;  %7480 = vmatpush3.msra.mxu1 %v6846_v48  ;;  %v6863_v34 = vld [vmem:[%s8681_s7 + $0x40] sm:$0xff] }
0x28d2   : > { %7489 = vmatprep.subr.mxu1 %v7755_v36 }
0x28d3   : > { %v5528_v45 = vpop.f32.mrb[60].mxu0 }
0x28d4   : > { %v7468_v37 = vpop.f32.mrb[61].mxu0  ;;  %7475 = vmatpush3.msra.mxu0 %v5528_v45  ;;  %v6864_v45 = vld [vmem:[%s8681_s7 + $0x48] sm:$0xff] }
0x28d5   : > { %7484 = vmatprep.subr.mxu0 %v7755_v36  ;;  %v7618_v37 = vpack.c.bf16 %v6864_v45, %v6863_v34 }
0x29a3   : > { %v5604_v38 = vpop.f32.mrb[70].mxu1 }
0x29a4   : > { %v5605_v39 = vadd.f32 %v8462_v35, %v5604_v38  ;;  %v7473_v40 = vpop.f32.mrb[71].mxu1  ;;  %v6866_v38 = vld [vmem:[%s8681_s7 + $0x58] sm:$0xff] }
0x29a5   : > { %v6868_v40 = vld [vmem:[%s8681_s7 + $0x60] sm:$0xff] }
0x29a6   : > { %v5608_v41 = vsel %vm690_vm4, %v5605_v39, -inf }
0x29a7   : > { %5609 = vmax.xlane.f32.xlu0 %v5608_v41  ;;  %v6869_v41 = vld [vmem:[%s8681_s7 + $0x68] sm:$0xff] }
0x2a34   : > { %v5610_v42 = vpop.xlane.xlu0 %5609 }
0x2a35   : > { %v5611_v43 = vsub.f32 %v5605_v39, %v5610_v42  ;;  %v7624_v42 = vpack.c.bf16 %v6869_v41, %v6868_v40 }
0x2a37   : > { %v5612_v44 = vmul.f32 1.442695, %v5611_v43  ;;  %v6870_v43 = vld [vmem:[%s8681_s7 + $0x70] sm:$0xff] }
0x2a39   : > { %7728 = vpow2.f32 %v5612_v44  ;;  %v6871_v44 = vld [vmem:[%s8681_s7 + $0x78] sm:$0xff] }
0x2a43   : > { %v7729_v46 = vpop.eup %7728 }
0x2a44   : > { %v5614_v47 = vsel %vm690_vm4, %v7729_v46, 0.0 }
0x2a45   : > { %5615 = vadd.xlane.f32.xlu1 %v5614_v47 }
0x2ad2   : > { %v5616_v49 = vpop.xlane.xlu1 %5615 }
0x2ad3   : > { %7730 = vrcp.f32 %v5616_v49 }
0x2add   : > { %v7731_v58 = vpop.eup %7730 }
0x2ade   : > { %v5618_v51 = vmul.f32 %v7731_v58, %v7729_v46  ;;  %v7628_v46 = vpack.c.bf16 %v6871_v44, %v6870_v43 }
0x2ae0   : > { %7477 = vmatmul.mubr.msk.f32.vlgmr.msra.gmra.mrb[62].mxu0 %vm690_vm4, %v5618_v51  ;;  %v6862_v51 = vld [vmem:[%s8679_s5 + $0x5] ss:$0 sm:$0xff] }
0x2ae1   : > { %7485 = vmatpush3.xpose.msk.msra.mxu0 %vm448_vm2, %v6848_v53  ;;  %7486 = vmatprep.mubr.msk.f32.mxu0 %vm7756_vm3, %v7755_v36 }
0x2ae2   : > { %7494 = vmatprep.subr.mxu0 %v7755_v36 }
0x2ae4   : > { %7487 = vmatmul.mubr.msk.f32.vlgmr.msra.gmra.mrb[64].mxu0 %vm448_vm2, %v8424_v21 }
0x2ae5   : > { %7495 = vmatpush3.xpose.msk.msra.mxu0 %vm448_vm2, %v6854_v50  ;;  %7496 = vmatprep.mubr.msk.f32.mxu0 %vm7756_vm3, %v7755_v36 }
0x2ae6   : > { %7504 = vmatprep.subr.mxu0 %v7755_v36 }
0x2ae8   : > { %7497 = vmatmul.mubr.msk.f32.vlgmr.msra.gmra.mrb[66].mxu0 %vm448_vm2, %v8400_v63 }
0x2ae9   : > { %7506 = vmatprep.mubr.msk.f32.mxu0 %vm7756_vm3, %v7755_v36 }
0x2bb3   : > { %v5688_v54 = vpop.f32.mrb[62].mxu0 }
0x2bb4   : > { %v7478_v55 = vpop.f32.mrb[63].mxu0  ;;  %7482 = vmatmul.mubr.msk.f32.vlgmr.msra.gmra.mrb[72].mxu1 %vm690_vm4, %v5688_v54 }
0x2bb5   : > { %7490 = vmatpush3.xpose.msk.msra.mxu1 %vm448_vm2, %v6851_v52  ;;  %7491 = vmatprep.mubr.msk.f32.mxu1 %vm7756_vm3, %v7755_v36 }
0x2bb6   : > { %7499 = vmatprep.subr.mxu1 %v7755_v36 }
0x2bb7   : > { %v5839_v21 = vpop.f32.mrb[64].mxu0 }
0x2bb8   : > { %v7488_v56 = vpop.f32.mrb[65].mxu0  ;;  %7492 = vmatmul.mubr.msk.f32.vlgmr.msra.gmra.mrb[74].mxu1 %vm448_vm2, %v8400_v63 }
0x2bb9   : > { %7501 = vmatprep.mubr.msk.f32.mxu1 %vm7756_vm3, %v7755_v36 }
0x2bbb   : > { %v5989_v57 = vpop.f32.mrb[66].mxu0 }
0x2bbc   : > { %v7498_v59 = vpop.f32.mrb[67].mxu0  ;;  %7505 = vmatpush3.msra.mxu0 %v5989_v57 }
0x2bbd   : > { %7617 = vmatprep.subr.bf16.mxu0 %v7757_v1  ;;  %v338_v59 = vld [vmem:[%s7850_s30 + $0x10] sm:$0xff]  ;;  %s6674_s30 = sshll.u32 %s8688_s28, 3 }
0x2bbe   : > { %vm6569_vm8 = vcmp.ne.s32.totalorder %v338_v59, 4294967196  ;;  %s319_s21 = scalar_lea.vmem %s8682_s8, %s6674_s30 }
0x2c87   : > { %v5763_v60 = vpop.f32.mrb[72].mxu1 }
0x2c88   : > { %v5767_v61 = vadd.f32 %v5763_v60, %v5304_v29  ;;  %v7483_v62 = vpop.f32.mrb[73].mxu1  ;;  %v6895_v60 = vsel %vm6569_vm8, 1.0, %v7755_v36 }
0x2c8b   : > { %v5914_v33 = vpop.f32.mrb[74].mxu1 }
0x2c8c   : > { %v7493_v0 = vpop.f32.mrb[75].mxu1  ;;  %7500 = vmatpush3.xpose.msk.msra.mxu1 %vm690_vm4, %v5914_v33 }
0x2c8d   : > { %7509 = vmatprep.subr.mxu1 %v7755_v36  ;;  %v6582_v0 = vsel %vm6574_vm10, %v6895_v60, 0.0 }
0x2c8f   : > { %7502 = vmatmul.mubr.msk.f32.vlgmr.msra.gmra.mrb[76].mxu1 %vm690_vm4, %v5839_v21 }
0x2c90   : > { %7511 = vmatprep.mubr.msk.f32.mxu1 %vm7756_vm3, %v7755_v36  ;;  %7510 = vmatpush3.msra.mxu1 %v6860_v15 }
0x2c91   : > { %7623 = vmatprep.subr.bf16.mxu1 %v7757_v1 }
0x2d62   : > { %v6065_v63 = vpop.f32.mrb[76].mxu1 }
0x2d63   : > { %v6066_v2 = vadd.f32 %v8462_v35, %v6065_v63  ;;  %v7503_v5 = vpop.f32.mrb[77].mxu1  ;;  %v6583_v63 = vrot.slane %v6582_v0, 4 }
0x2d65   : > { %v6069_v7 = vsel %vm690_vm4, %v6066_v2, -inf }
0x2d66   : > { %6070 = vmax.xlane.f32.xlu0 %v6069_v7 }
0x2df3   : > { %v6071_v8 = vpop.xlane.xlu0 %6070 }
0x2df4   : > { %v6072_v10 = vsub.f32 %v6066_v2, %v6071_v8  ;;  %v6584_v2 = vadd.f32 %v6583_v63, %v6582_v0 }
0x2df6   : > { %v6073_v12 = vmul.f32 1.442695, %v6072_v10  ;;  %v6585_v5 = vrot.slane %v6584_v2, 2 }
0x2df8   : > { %7732 = vpow2.f32 %v6073_v12  ;;  %v6586_v7 = vadd.f32 %v6585_v5, %v6584_v2 }
0x2dfa   : > { %v6587_v8 = vrot.slane %v6586_v7, 1 }
0x2dfc   : > { %v6588_v10 = vadd.f32 %v6587_v8, %v6586_v7 }
0x2e02   : > { %v7733_v32 = vpop.eup %7732 }
0x2e03   : > { %v6075_v14 = vsel %vm690_vm4, %v7733_v32, 0.0 }
0x2e04   : > { %6076 = vadd.xlane.f32.xlu1 %v6075_v14 }
0x2e91   : > { %v6077_v35 = vpop.xlane.xlu1 %6076 }
0x2e92   : > { %7734 = vrcp.f32 %v6077_v35 }
0x2e9c   : > { %v7735_v16 = vpop.eup %7734 }
0x2e9d   : > { %v6079_v18 = vmul.f32 %v7735_v16, %v7733_v32 }
0x2e9f   : > { %7507 = vmatmul.mubr.msk.f32.vlgmr.msra.gmra.mrb[68].mxu0 %vm690_vm4, %v6079_v18 }
0x2ea0   : > { %7522 = vmatprep.mubr.msk.f32.mxu0 %vm7756_vm3, %v7755_v36  ;;  %7619 = vmatpush3.bf16.msra.mxu0 %v7618_v37 }
0x2ea1   : > { %7620 = vmatprep.subr.bf16.mxu0 %v7757_v1 }
0x2f72   : > { %v6149_v19 = vpop.f32.mrb[68].mxu0 }
0x2f73   : > { %v7508_v22 = vpop.f32.mrb[69].mxu0  ;;  %7512 = vmatmul.mubr.msk.f32.vlgmr.msra.gmra.mrb[78].mxu1 %vm690_vm4, %v6149_v19 }
0x2f74   : > { %7533 = vmatprep.mubr.msk.f32.mxu1 %vm7756_vm3, %v7755_v36  ;;  %7626 = vmatpush3.bf16.xpose.msk.msra.mxu1 %vm8164_vm6, %v7624_v42 }
0x2f75   : > { %7627 = vmatprep.subr.bf16.mxu1 %v7757_v1 }
0x2f7c   : > { %7630 = vmatpush3.bf16.xpose.msk.msra.mxu1 %vm8164_vm6, %v7628_v46 }
0x3046   : > { %v6224_v24 = vpop.f32.mrb[78].mxu1 }
0x3047   : > { %v6228_v25 = vadd.f32 %v6224_v24, %v5767_v61  ;;  %v7513_v27 = vpop.f32.mrb[79].mxu1 }
0x3049   : > { %v6229_v29 = vadd.f32 %v6228_v25, %v8408_v3  ;;  %v6865_v3 = vld [vmem:[%s8681_s7 + $0x50] sm:$0xff] }
0x304a   : > { %v7621_v39 = vpack.c.bf16 %v6866_v38, %v6865_v3 }
0x304b   : > { %v6230_v30 = vmul.f32 %v6229_v29, %v6229_v29 }
0x304c   : > { %7622 = vmatpush3.bf16.msra.mxu0 %v7621_v39 }
0x304d   : > { %v6231_v31 = vsel %vm448_vm2, %v6230_v30, 0.0  ;;  %7631 = vmatprep.subr.bf16.mxu0 %v7757_v1 }
0x304e   : > { %6232 = vadd.xlane.f32.xlu0 %v6231_v31 }
0x30db   : > { %v6233_v47 = vpop.xlane.xlu0 %6232 }
0x30dc   : > { %v6234_v48 = vmul.f32 0.03125, %v6233_v47 }
0x30de   : > { %v6235_v49 = vadd.f32 1e-06, %v6234_v48 }
0x30e0   : > { %7736 = vrsqrt.f32 %v6235_v49 }
0x30ea   : > { %v7737_v58 = vpop.eup %7736 }
0x30eb   : > { %v6237_v53 = vmul.f32 %v7737_v58, %v6229_v29 }
0x30ed   : > { %v6243_v50 = vmul.f32 %v6862_v51, %v6237_v53 }
0x30ef   : > { %7523 = vmatmul.mubr.msk.f32.vlgmr.msra.gmra.mrb[70].mxu0 %vm448_vm2, %v6243_v50 }
0x30f0   : > { %7568 = vmatprep.mubr.msk.f32.mxu0 %vm7756_vm3, %v7755_v36  ;;  %7634 = vmatpush3.bf16.xpose.msk.msra.mxu0 %vm7633_vm7, %v7823_v4 }
0x30f1   : > { %7635 = vmatprep.subr.bf16.mxu0 %v7757_v1 }
0x30f8   : > { %7638 = vmatpush3.bf16.xpose.msk.msra.mxu0 %vm7633_vm7, %v7828_v6 }
0x30f9   : > { %7639 = vmatprep.subr.bf16.mxu0 %v7757_v1 }
0x3100   : > { %7642 = vmatpush3.bf16.xpose.msk.msra.mxu0 %vm7633_vm7, %v7839_v9 }
0x3101   : > { %7643 = vmatprep.subr.bf16.mxu0 %v7757_v1 }
0x3108   : > { %7646 = vmatpush3.bf16.xpose.msk.msra.mxu0 %vm7633_vm7, %v7855_v13 }
0x3109   : > { %7647 = vmatprep.subr.bf16.mxu0 %v7757_v1 }
0x3110   : > { %7650 = vmatpush3.bf16.xpose.msk.msra.mxu0 %vm7633_vm7, %v7866_v17 }
0x3111   : > { %7651 = vmatprep.subr.bf16.mxu0 %v7757_v1 }
0x3118   : > { %7654 = vmatpush3.bf16.xpose.msk.msra.mxu0 %vm7633_vm7, %v7876_v20 }
0x3119   : > { %7655 = vmatprep.subr.bf16.mxu0 %v7757_v1 }
0x3120   : > { %7658 = vmatpush3.bf16.xpose.msk.msra.mxu0 %vm7633_vm7, %v7886_v23  ;;  %v6877_v23 = vld [vmem:[%s8679_s5 + $0x6] ss:$0 sm:$0xff] }
0x3121   : > { %7659 = vmatprep.subr.bf16.mxu0 %v7757_v1 }
0x3128   : > { %7662 = vmatpush3.bf16.xpose.msk.msra.mxu0 %vm7633_vm7, %v7896_v26 }
0x31c2   : > { %v6318_v52 = vpop.f32.mrb[70].mxu0 }
0x31c3   : > { %v6322_v54 = vmax.f32 %v6318_v52, 0.0  ;;  %v7524_v11 = vpop.f32.mrb[71].mxu0 }
0x31c5   : > { %7534 = vmatmul.mubr.msk.f32.vlgmr.msra.gmra.mrb[80].mxu1 %vm2406_vm5, %v6322_v54 }
0x3298   : > { %v6409_v4 = vpop.f32.mrb[80].mxu1 }
0x3299   : > { %v6413_v6 = vadd.f32 %v6409_v4, %v6229_v29  ;;  %v7535_v9 = vpop.f32.mrb[81].mxu1 }
0x329b   : > { %v6414_v13 = vmul.f32 %v6413_v6, %v6413_v6 }
0x329d   : > { %v6415_v55 = vsel %vm448_vm2, %v6414_v13, 0.0 }
0x329e   : > { %6416 = vadd.xlane.f32.xlu1 %v6415_v55 }
0x332b   : > { %v6417_v17 = vpop.xlane.xlu1 %6416 }
0x332c   : > { %v6418_v21 = vmul.f32 0.03125, %v6417_v17 }
0x332e   : > { %v6419_v56 = vadd.f32 1e-06, %v6418_v21 }
0x3330   : > { %7738 = vrsqrt.f32 %v6419_v56 }
0x333a   : > { %v7739_v20 = vpop.eup %7738 }
0x333b   : > { %v6421_v1 = vmul.f32 %v7739_v20, %v6413_v6 }
0x333d   : > { %v6427_v57 = vmul.f32 %v6877_v23, %v6421_v1 }
0x333f   : > { %v6428_v26 = vmul.f32 0.17677669, %v6427_v57 }
0x3341   : > { %7569 = vmatmul.mubr.msk.f32.vlgmr.msra.gmra.mrb[72].mxu0 %vm448_vm2, %v6428_v26 }
0x3414   : > { %v6546_v61 = vpop.f32.mrb[72].mxu0 }
0x3415   : > { %v7570_v62 = vpop.f32.mrb[73].mxu0  ;;  %v6551_v33 = vsel %vm6550_vm9, %v6546_v61, -1e+09 }
0x3416   : > { %6552 = vmax.xlane.f32.xlu0 %v6551_v33 }
0x342c   : > { %6563 = vperm.xlu0 %7676, %v338_v59  }
0x3430   : > { %6600 = vperm.xlu0 %7676, %v6588_v10  }
0x34a3   : > { %v6553_v12 = vpop.xlane.xlu0 %6552 }
0x34a4   : > { %v6554_v32 = vsub.f32 %v6551_v33, %v6553_v12 }
0x34a6   : > { %v6555_v14 = vmul.f32 1.442695, %v6554_v32 }
0x34a8   : > { %7740 = vpow2.f32 %v6555_v14 }
0x34ab   : > { %v6564_v16 = vpop.permute.xlu0 %6563 }
0x34ac   : > { %vm6565_vm11 = vcmp.eq.s32.totalorder %v7901_v28, %v6564_v16 }
0x34af   : > { %v6601_v38 = vpop.permute.xlu0 %6600 }
0x34b0   : > { %v6603_v42 = vsel %vm6597_vm13, %v6601_v38, 0.0 }
0x34b2   : > { %v7741_v36 = vpop.eup %7740 }
0x34b3   : > { %6557 = vadd.xlane.f32.xlu1 %v7741_v36 }
0x3540   : > { %v6558_v15 = vpop.xlane.xlu1 %6557 }
0x3541   : > { %7742 = vlog2.f32 %v6558_v15 }
0x354b   : > { %v7743_v35 = vpop.eup %7742 }
0x354c   : > { %v6560_v18 = vmul.f32 0.6931472, %v7743_v35 }
0x354e   : > { %v6561_v19 = vsub.f32 %v6554_v32, %v6560_v18 }
0x3550   : > { %v6566_v22 = vsel %vm6565_vm11, %v6561_v19, 0.0 }
0x3551   : > { %6567 = vadd.xlane.f32.xlu1 %v6566_v22 }
0x35de   : > { %v6568_v24 = vpop.xlane.xlu1 %6567 }
0x35df   : > { %v6572_v25 = vsub.f32 0.0, %v6568_v24 }
0x35e1   : > { %v6573_v27 = vmul.f32 %v6895_v60, %v6572_v25 }
0x35e3   : > { %v6575_v29 = vsel %vm6574_vm10, %v6573_v27, 0.0 }
0x35e4   : > { %v6576_v30 = vrot.slane %v6575_v29, 4 }
0x35e6   : > { %v6577_v31 = vadd.f32 %v6576_v30, %v6575_v29 }
0x35e8   : > { %v6578_v34 = vrot.slane %v6577_v31, 2 }
0x35ea   : > { %v6579_v45 = vadd.f32 %v6578_v34, %v6577_v31 }
0x35ec   : > { %v6580_v37 = vrot.slane %v6579_v45, 1 }
0x35ee   : > { %v6581_v3 = vadd.f32 %v6580_v37, %v6579_v45 }
0x35f0   : > { %6592 = vperm.xlu1 %7677, %v6581_v3  }
0x366f   : > { %v6593_v39 = vpop.permute.xlu1 %6592 }
0x3670   : > { %v6595_v40 = vsel %vm6589_vm12, %v6593_v39, 0.0 }
0x3671   : > { %v6596_v41 = vadd.f32 %v6595_v40, %v6546_v61 }
0x3673   : > { %v6604_v43 = vadd.f32 %v6603_v42, %v6596_v41 }
0x3675   : > { %6605 = vst [vmem:[%s319_s21] sm:$0xff] %v6604_v43 }
0x3676 PF: > { %s18_s27 = sadd.s32 1, %s7751_s27  }
0x3677   : > { %p15_p5 = scmp.ge.s32.totalorder %s18_s27, 4  }
0x3679   :  { %17 = sbr.rel (!%p15_p5) target bundleno = 1 (0x1), region = 135 }

</bundles_post_ra>
